<compile_context>
chip_gen: v6e
topology: v6e:2x2x1
jax: 0.10.0
libtpu: 0.0.40
codegen_flags: <defaults>
</compile_context>

<pallas_src>
import functools

import jax
import jax.numpy as jnp
from jax.experimental import pallas as pl
from jax.experimental.pallas import tpu as pltpu


# Static network structure: activation applied after each of the 8 linear layers.
_ACTS = ("relu", "relu", "relu", "none", "relu", "relu", "relu", "sigmoid")


def _layer_dims(data_dim, latent_dim):
    return (
        (data_dim, 1024),   # encoder[0]
        (1024, 256),        # encoder[2]
        (256, 64),          # encoder[4]
        (64, latent_dim),   # encoder_mu
        (latent_dim, 64),   # decoder[0]
        (64, 256),          # decoder[2]
        (256, 1024),        # decoder[4]
        (1024, data_dim),   # decoder[6]
    )


def _fused_ae_kernel(x_ref, *refs):
    """Whole autoencoder forward for one batch tile.

    refs = (w0, b0, w1, b1, ..., w7, b7, o_ref); all in VMEM.
    Intermediate activations stay on-chip as values (tiny: <= tm x 1024 f32).
    """
    o_ref = refs[-1]
    wb = refs[:-1]

    h = x_ref[...]
    for idx, act in enumerate(_ACTS):
        w = wb[2 * idx][...]
        b = wb[2 * idx + 1][...]   # (1, N) — broadcasts over batch rows
        h = jnp.dot(h, w, preferred_element_type=jnp.float32) + b
        if act == "relu":
            h = jnp.maximum(h, 0.0)
        elif act == "sigmoid":
            h = jax.nn.sigmoid(h)   # exp goes to the EUP slot
        # act == "none": identity
    o_ref[...] = h.astype(o_ref.dtype)


@functools.partial(jax.jit, static_argnames=("block_m",))
def autoencoder_forward(params, x, *, block_m=128):
    """Full forward pass (encoder -> encoder_mu -> decoder) as one Pallas kernel.

    params: {"w": (w0..w7), "b": (b0..b7)} with w_i: [in_i, out_i], b_i: [1, out_i].
    x: [B, data_dim] float32.
    """
    ws, bs = params["w"], params["b"]
    M, data_dim_in = x.shape
    data_dim = ws[-1].shape[1]

    # Choose a batch tile.  For small batches the tile is the whole batch
    # (block_shape == full array dim, so no (8,128) divisibility constraint);
    # for large batches we tile at block_m rows and pad to a multiple.
    if M <= block_m:
        tm = M
        m_pad = M
        xp = x
    else:
        tm = block_m
        m_pad = pl.cdiv(M, tm) * tm
        xp = jnp.pad(x, ((0, m_pad - M), (0, 0))) if m_pad != M else x

    grid = (m_pad // tm,)

    flat = []
    flat_specs = []
    for w, b in zip(ws, bs):
        flat.append(w)
        flat_specs.append(pl.BlockSpec(w.shape, lambda i: (0, 0)))   # resident
        flat.append(b)
        flat_specs.append(pl.BlockSpec(b.shape, lambda i: (0, 0)))   # resident

    out = pl.pallas_call(
        _fused_ae_kernel,
        out_shape=jax.ShapeDtypeStruct((m_pad, data_dim), x.dtype),
        grid=grid,
        in_specs=[pl.BlockSpec((tm, data_dim_in), lambda i: (i, 0))] + flat_specs,
        out_specs=pl.BlockSpec((tm, data_dim), lambda i: (i, 0)),
        compiler_params=pltpu.CompilerParams(
            dimension_semantics=("parallel",),     # batch tiles are independent
            vmem_limit_bytes=64 << 20,
        ),
    )(xp, *flat)

    return out[:M] if m_pad != M else out


def init_linear_params(key, in_features, out_features):
    """PyTorch-style init: U(-1/sqrt(in), 1/sqrt(in)).

    Weight stored as [in_features, out_features]; bias stored as [1, out_features].
    """
    kw, kb = jax.random.split(key)
    bound = 1.0 / (in_features ** 0.5)
    w = jax.random.uniform(
        kw, (in_features, out_features), jnp.float32, minval=-bound, maxval=bound
    )
    b = jax.random.uniform(
        kb, (1, out_features), jnp.float32, minval=-bound, maxval=bound
    )
    return w, b


def init_autoencoder_params(key, data_dim, latent_dim):
    dims = _layer_dims(data_dim, latent_dim)
    keys = jax.random.split(key, len(dims))
    ws, bs = [], []
    for k, (fin, fout) in zip(keys, dims):
        w, b = init_linear_params(k, fin, fout)
        ws.append(w)
        bs.append(b)
    return {"w": tuple(ws), "b": tuple(bs)}


def autoencoder_forward_ref(params, x):
    """Pure-JAX reference for correctness checking (full-precision matmuls)."""
    h = x
    for (w, b), act in zip(zip(params["w"], params["b"]), _ACTS):
        h = jnp.dot(h, w, precision=jax.lax.Precision.HIGHEST) + b
        if act == "relu":
            h = jnp.maximum(h, 0.0)
        elif act == "sigmoid":
            h = jax.nn.sigmoid(h)
    return h


if __name__ == "__main__":
    data_dim = 256
    latent_dim = 16
    batch = 8

    key = jax.random.PRNGKey(0)
    k_params, k_x = jax.random.split(key)

    params = init_autoencoder_params(k_params, data_dim, latent_dim)
    x = jax.random.uniform(k_x, (batch, data_dim), jnp.float32)  # data in [0,1)

    recon = autoencoder_forward(params, x)
    recon = jax.block_until_ready(recon)

    ref = autoencoder_forward_ref(params, x)
    assert recon.shape == (batch, data_dim), recon.shape
    assert jnp.allclose(recon, ref, atol=1e-3, rtol=1e-3), "mismatch vs reference"

    print("KERNEL_OK")
</pallas_src>

<mosaic_0001>
module attributes {stable_mosaic.version = 11 : i64} {
  func.func @_fused_ae_kernel(%arg0: i32, %arg1: memref<8x256xf32, #tpu.memory_space<vmem>>, %arg2: memref<256x1024xf32, #tpu.memory_space<vmem>>, %arg3: memref<1x1024xf32, #tpu.memory_space<vmem>>, %arg4: memref<1024x256xf32, #tpu.memory_space<vmem>>, %arg5: memref<1x256xf32, #tpu.memory_space<vmem>>, %arg6: memref<256x64xf32, #tpu.memory_space<vmem>>, %arg7: memref<1x64xf32, #tpu.memory_space<vmem>>, %arg8: memref<64x16xf32, #tpu.memory_space<vmem>>, %arg9: memref<1x16xf32, #tpu.memory_space<vmem>>, %arg10: memref<16x64xf32, #tpu.memory_space<vmem>>, %arg11: memref<1x64xf32, #tpu.memory_space<vmem>>, %arg12: memref<64x256xf32, #tpu.memory_space<vmem>>, %arg13: memref<1x256xf32, #tpu.memory_space<vmem>>, %arg14: memref<256x1024xf32, #tpu.memory_space<vmem>>, %arg15: memref<1x1024xf32, #tpu.memory_space<vmem>>, %arg16: memref<1024x256xf32, #tpu.memory_space<vmem>>, %arg17: memref<1x256xf32, #tpu.memory_space<vmem>>, %arg18: memref<8x256xf32, #tpu.memory_space<vmem>>) attributes {dimension_semantics = [#tpu.dimension_semantics<parallel>], iteration_bounds = array<i64: 1>, scalar_prefetch = 0 : i64, scratch_operands = 0 : i64, tpu.core_type = #tpu.core_type<tc>, window_params = [{transform_indices = @transform_0, window_bounds = array<i64: 8, 256>}, {pipeline_mode = #tpu.pipeline_mode<synchronous>, transform_indices = @transform_1, window_bounds = array<i64: 256, 1024>}, {pipeline_mode = #tpu.pipeline_mode<synchronous>, transform_indices = @transform_2, window_bounds = array<i64: 1, 1024>}, {pipeline_mode = #tpu.pipeline_mode<synchronous>, transform_indices = @transform_3, window_bounds = array<i64: 1024, 256>}, {pipeline_mode = #tpu.pipeline_mode<synchronous>, transform_indices = @transform_4, window_bounds = array<i64: 1, 256>}, {pipeline_mode = #tpu.pipeline_mode<synchronous>, transform_indices = @transform_5, window_bounds = array<i64: 256, 64>}, {pipeline_mode = #tpu.pipeline_mode<synchronous>, transform_indices = @transform_6, window_bounds = array<i64: 1, 64>}, {pipeline_mode = #tpu.pipeline_mode<synchronous>, transform_indices = @transform_7, window_bounds = array<i64: 64, 16>}, {pipeline_mode = #tpu.pipeline_mode<synchronous>, transform_indices = @transform_8, window_bounds = array<i64: 1, 16>}, {pipeline_mode = #tpu.pipeline_mode<synchronous>, transform_indices = @transform_9, window_bounds = array<i64: 16, 64>}, {pipeline_mode = #tpu.pipeline_mode<synchronous>, transform_indices = @transform_10, window_bounds = array<i64: 1, 64>}, {pipeline_mode = #tpu.pipeline_mode<synchronous>, transform_indices = @transform_11, window_bounds = array<i64: 64, 256>}, {pipeline_mode = #tpu.pipeline_mode<synchronous>, transform_indices = @transform_12, window_bounds = array<i64: 1, 256>}, {pipeline_mode = #tpu.pipeline_mode<synchronous>, transform_indices = @transform_13, window_bounds = array<i64: 256, 1024>}, {pipeline_mode = #tpu.pipeline_mode<synchronous>, transform_indices = @transform_14, window_bounds = array<i64: 1, 1024>}, {pipeline_mode = #tpu.pipeline_mode<synchronous>, transform_indices = @transform_15, window_bounds = array<i64: 1024, 256>}, {pipeline_mode = #tpu.pipeline_mode<synchronous>, transform_indices = @transform_16, window_bounds = array<i64: 1, 256>}, {transform_indices = @transform_17, window_bounds = array<i64: 8, 256>}]} {
    %c0 = arith.constant 0 : index
    %c0_0 = arith.constant 0 : index
    %0 = vector.load %arg1[%c0, %c0_0] : memref<8x256xf32, #tpu.memory_space<vmem>>, vector<8x256xf32>
    %c0_1 = arith.constant 0 : index
    %c0_2 = arith.constant 0 : index
    %1 = vector.load %arg2[%c0_1, %c0_2] : memref<256x1024xf32, #tpu.memory_space<vmem>>, vector<256x1024xf32>
    %c0_3 = arith.constant 0 : index
    %c0_4 = arith.constant 0 : index
    %2 = vector.load %arg3[%c0_3, %c0_4] : memref<1x1024xf32, #tpu.memory_space<vmem>>, vector<1x1024xf32>
    %cst = arith.constant dense<0.000000e+00> : vector<8x1024xf32>
    %3 = tpu.matmul %0, %1, %cst {dimension_numbers = #tpu.dot_dimension_numbers<[1], [0], [0], [1], [0, 0, 1, 1], [], []>} : vector<8x256xf32>, vector<256x1024xf32>, vector<8x1024xf32> -> vector<8x1024xf32>
    %4 = vector.broadcast %2 : vector<1x1024xf32> to vector<8x1024xf32>
    %5 = arith.addf %3, %4 : vector<8x1024xf32>
    %cst_5 = arith.constant 0.000000e+00 : f32
    %6 = vector.broadcast %cst_5 : f32 to vector<8x1024xf32>
    %7 = arith.maximumf %5, %6 : vector<8x1024xf32>
    %c0_6 = arith.constant 0 : index
    %c0_7 = arith.constant 0 : index
    %8 = vector.load %arg4[%c0_6, %c0_7] : memref<1024x256xf32, #tpu.memory_space<vmem>>, vector<1024x256xf32>
    %c0_8 = arith.constant 0 : index
    %c0_9 = arith.constant 0 : index
    %9 = vector.load %arg5[%c0_8, %c0_9] : memref<1x256xf32, #tpu.memory_space<vmem>>, vector<1x256xf32>
    %cst_10 = arith.constant dense<0.000000e+00> : vector<8x256xf32>
    %10 = tpu.matmul %7, %8, %cst_10 {dimension_numbers = #tpu.dot_dimension_numbers<[1], [0], [0], [1], [0, 0, 1, 1], [], []>} : vector<8x1024xf32>, vector<1024x256xf32>, vector<8x256xf32> -> vector<8x256xf32>
    %11 = vector.broadcast %9 : vector<1x256xf32> to vector<8x256xf32>
    %12 = arith.addf %10, %11 : vector<8x256xf32>
    %cst_11 = arith.constant 0.000000e+00 : f32
    %13 = vector.broadcast %cst_11 : f32 to vector<8x256xf32>
    %14 = arith.maximumf %12, %13 : vector<8x256xf32>
    %c0_12 = arith.constant 0 : index
    %c0_13 = arith.constant 0 : index
    %15 = vector.load %arg6[%c0_12, %c0_13] : memref<256x64xf32, #tpu.memory_space<vmem>>, vector<256x64xf32>
    %c0_14 = arith.constant 0 : index
    %c0_15 = arith.constant 0 : index
    %16 = vector.load %arg7[%c0_14, %c0_15] : memref<1x64xf32, #tpu.memory_space<vmem>>, vector<1x64xf32>
    %cst_16 = arith.constant dense<0.000000e+00> : vector<8x64xf32>
    %17 = tpu.matmul %14, %15, %cst_16 {dimension_numbers = #tpu.dot_dimension_numbers<[1], [0], [0], [1], [0, 0, 1, 1], [], []>} : vector<8x256xf32>, vector<256x64xf32>, vector<8x64xf32> -> vector<8x64xf32>
    %18 = vector.broadcast %16 : vector<1x64xf32> to vector<8x64xf32>
    %19 = arith.addf %17, %18 : vector<8x64xf32>
    %cst_17 = arith.constant 0.000000e+00 : f32
    %20 = vector.broadcast %cst_17 : f32 to vector<8x64xf32>
    %21 = arith.maximumf %19, %20 : vector<8x64xf32>
    %c0_18 = arith.constant 0 : index
    %c0_19 = arith.constant 0 : index
    %22 = vector.load %arg8[%c0_18, %c0_19] : memref<64x16xf32, #tpu.memory_space<vmem>>, vector<64x16xf32>
    %c0_20 = arith.constant 0 : index
    %c0_21 = arith.constant 0 : index
    %23 = vector.load %arg9[%c0_20, %c0_21] : memref<1x16xf32, #tpu.memory_space<vmem>>, vector<1x16xf32>
    %cst_22 = arith.constant dense<0.000000e+00> : vector<8x16xf32>
    %24 = tpu.matmul %21, %22, %cst_22 {dimension_numbers = #tpu.dot_dimension_numbers<[1], [0], [0], [1], [0, 0, 1, 1], [], []>} : vector<8x64xf32>, vector<64x16xf32>, vector<8x16xf32> -> vector<8x16xf32>
    %25 = vector.broadcast %23 : vector<1x16xf32> to vector<8x16xf32>
    %26 = arith.addf %24, %25 : vector<8x16xf32>
    %c0_23 = arith.constant 0 : index
    %c0_24 = arith.constant 0 : index
    %27 = vector.load %arg10[%c0_23, %c0_24] : memref<16x64xf32, #tpu.memory_space<vmem>>, vector<16x64xf32>
    %c0_25 = arith.constant 0 : index
    %c0_26 = arith.constant 0 : index
    %28 = vector.load %arg11[%c0_25, %c0_26] : memref<1x64xf32, #tpu.memory_space<vmem>>, vector<1x64xf32>
    %cst_27 = arith.constant dense<0.000000e+00> : vector<8x64xf32>
    %29 = tpu.matmul %26, %27, %cst_27 {dimension_numbers = #tpu.dot_dimension_numbers<[1], [0], [0], [1], [0, 0, 1, 1], [], []>} : vector<8x16xf32>, vector<16x64xf32>, vector<8x64xf32> -> vector<8x64xf32>
    %30 = vector.broadcast %28 : vector<1x64xf32> to vector<8x64xf32>
    %31 = arith.addf %29, %30 : vector<8x64xf32>
    %cst_28 = arith.constant 0.000000e+00 : f32
    %32 = vector.broadcast %cst_28 : f32 to vector<8x64xf32>
    %33 = arith.maximumf %31, %32 : vector<8x64xf32>
    %c0_29 = arith.constant 0 : index
    %c0_30 = arith.constant 0 : index
    %34 = vector.load %arg12[%c0_29, %c0_30] : memref<64x256xf32, #tpu.memory_space<vmem>>, vector<64x256xf32>
    %c0_31 = arith.constant 0 : index
    %c0_32 = arith.constant 0 : index
    %35 = vector.load %arg13[%c0_31, %c0_32] : memref<1x256xf32, #tpu.memory_space<vmem>>, vector<1x256xf32>
    %cst_33 = arith.constant dense<0.000000e+00> : vector<8x256xf32>
    %36 = tpu.matmul %33, %34, %cst_33 {dimension_numbers = #tpu.dot_dimension_numbers<[1], [0], [0], [1], [0, 0, 1, 1], [], []>} : vector<8x64xf32>, vector<64x256xf32>, vector<8x256xf32> -> vector<8x256xf32>
    %37 = vector.broadcast %35 : vector<1x256xf32> to vector<8x256xf32>
    %38 = arith.addf %36, %37 : vector<8x256xf32>
    %cst_34 = arith.constant 0.000000e+00 : f32
    %39 = vector.broadcast %cst_34 : f32 to vector<8x256xf32>
    %40 = arith.maximumf %38, %39 : vector<8x256xf32>
    %c0_35 = arith.constant 0 : index
    %c0_36 = arith.constant 0 : index
    %41 = vector.load %arg14[%c0_35, %c0_36] : memref<256x1024xf32, #tpu.memory_space<vmem>>, vector<256x1024xf32>
    %c0_37 = arith.constant 0 : index
    %c0_38 = arith.constant 0 : index
    %42 = vector.load %arg15[%c0_37, %c0_38] : memref<1x1024xf32, #tpu.memory_space<vmem>>, vector<1x1024xf32>
    %cst_39 = arith.constant dense<0.000000e+00> : vector<8x1024xf32>
    %43 = tpu.matmul %40, %41, %cst_39 {dimension_numbers = #tpu.dot_dimension_numbers<[1], [0], [0], [1], [0, 0, 1, 1], [], []>} : vector<8x256xf32>, vector<256x1024xf32>, vector<8x1024xf32> -> vector<8x1024xf32>
    %44 = vector.broadcast %42 : vector<1x1024xf32> to vector<8x1024xf32>
    %45 = arith.addf %43, %44 : vector<8x1024xf32>
    %cst_40 = arith.constant 0.000000e+00 : f32
    %46 = vector.broadcast %cst_40 : f32 to vector<8x1024xf32>
    %47 = arith.maximumf %45, %46 : vector<8x1024xf32>
    %c0_41 = arith.constant 0 : index
    %c0_42 = arith.constant 0 : index
    %48 = vector.load %arg16[%c0_41, %c0_42] : memref<1024x256xf32, #tpu.memory_space<vmem>>, vector<1024x256xf32>
    %c0_43 = arith.constant 0 : index
    %c0_44 = arith.constant 0 : index
    %49 = vector.load %arg17[%c0_43, %c0_44] : memref<1x256xf32, #tpu.memory_space<vmem>>, vector<1x256xf32>
    %cst_45 = arith.constant dense<0.000000e+00> : vector<8x256xf32>
    %50 = tpu.matmul %47, %48, %cst_45 {dimension_numbers = #tpu.dot_dimension_numbers<[1], [0], [0], [1], [0, 0, 1, 1], [], []>} : vector<8x1024xf32>, vector<1024x256xf32>, vector<8x256xf32> -> vector<8x256xf32>
    %51 = vector.broadcast %49 : vector<1x256xf32> to vector<8x256xf32>
    %52 = arith.addf %50, %51 : vector<8x256xf32>
    %53 = arith.negf %52 : vector<8x256xf32>
    %54 = math.exp %53 : vector<8x256xf32>
    %cst_46 = arith.constant 1.000000e+00 : f32
    %55 = vector.broadcast %cst_46 : f32 to vector<8x256xf32>
    %56 = arith.addf %55, %54 : vector<8x256xf32>
    %57 = arith.divf %55, %56 : vector<8x256xf32>
    %c0_47 = arith.constant 0 : index
    %c0_48 = arith.constant 0 : index
    %58 = vector.load %arg18[%c0_47, %c0_48] : memref<8x256xf32, #tpu.memory_space<vmem>>, vector<8x256xf32>
    tpu.vector_store %arg18[%c0_47, %c0_48], %57 {strides = array<i32>} : memref<8x256xf32, #tpu.memory_space<vmem>>, vector<8x256xf32>,
    return
  }
  func.func @transform_0(%arg0: i32) -> (i32, i32) {
    %c0_i32 = arith.constant 0 : i32
    %c0_i32_0 = arith.constant 0 : i32
    return %arg0, %c0_i32 : i32, i32
  }
  func.func @transform_1(%arg0: i32) -> (i32, i32) {
    %c0_i32 = arith.constant 0 : i32
    %c0_i32_0 = arith.constant 0 : i32
    %c0_i32_1 = arith.constant 0 : i32
    return %c0_i32, %c0_i32_0 : i32, i32
  }
  func.func @transform_2(%arg0: i32) -> (i32, i32) {
    %c0_i32 = arith.constant 0 : i32
    %c0_i32_0 = arith.constant 0 : i32
    %c0_i32_1 = arith.constant 0 : i32
    return %c0_i32, %c0_i32_0 : i32, i32
  }
  func.func @transform_3(%arg0: i32) -> (i32, i32) {
    %c0_i32 = arith.constant 0 : i32
    %c0_i32_0 = arith.constant 0 : i32
    %c0_i32_1 = arith.constant 0 : i32
    return %c0_i32, %c0_i32_0 : i32, i32
  }
  func.func @transform_4(%arg0: i32) -> (i32, i32) {
    %c0_i32 = arith.constant 0 : i32
    %c0_i32_0 = arith.constant 0 : i32
    %c0_i32_1 = arith.constant 0 : i32
    return %c0_i32, %c0_i32_0 : i32, i32
  }
  func.func @transform_5(%arg0: i32) -> (i32, i32) {
    %c0_i32 = arith.constant 0 : i32
    %c0_i32_0 = arith.constant 0 : i32
    %c0_i32_1 = arith.constant 0 : i32
    return %c0_i32, %c0_i32_0 : i32, i32
  }
  func.func @transform_6(%arg0: i32) -> (i32, i32) {
    %c0_i32 = arith.constant 0 : i32
    %c0_i32_0 = arith.constant 0 : i32
    %c0_i32_1 = arith.constant 0 : i32
    return %c0_i32, %c0_i32_0 : i32, i32
  }
  func.func @transform_7(%arg0: i32) -> (i32, i32) {
    %c0_i32 = arith.constant 0 : i32
    %c0_i32_0 = arith.constant 0 : i32
    %c0_i32_1 = arith.constant 0 : i32
    return %c0_i32, %c0_i32_0 : i32, i32
  }
  func.func @transform_8(%arg0: i32) -> (i32, i32) {
    %c0_i32 = arith.constant 0 : i32
    %c0_i32_0 = arith.constant 0 : i32
    %c0_i32_1 = arith.constant 0 : i32
    return %c0_i32, %c0_i32_0 : i32, i32
  }
  func.func @transform_9(%arg0: i32) -> (i32, i32) {
    %c0_i32 = arith.constant 0 : i32
    %c0_i32_0 = arith.constant 0 : i32
    %c0_i32_1 = arith.constant 0 : i32
    return %c0_i32, %c0_i32_0 : i32, i32
  }
  func.func @transform_10(%arg0: i32) -> (i32, i32) {
    %c0_i32 = arith.constant 0 : i32
    %c0_i32_0 = arith.constant 0 : i32
    %c0_i32_1 = arith.constant 0 : i32
    return %c0_i32, %c0_i32_0 : i32, i32
  }
  func.func @transform_11(%arg0: i32) -> (i32, i32) {
    %c0_i32 = arith.constant 0 : i32
    %c0_i32_0 = arith.constant 0 : i32
    %c0_i32_1 = arith.constant 0 : i32
    return %c0_i32, %c0_i32_0 : i32, i32
  }
  func.func @transform_12(%arg0: i32) -> (i32, i32) {
    %c0_i32 = arith.constant 0 : i32
    %c0_i32_0 = arith.constant 0 : i32
    %c0_i32_1 = arith.constant 0 : i32
    return %c0_i32, %c0_i32_0 : i32, i32
  }
  func.func @transform_13(%arg0: i32) -> (i32, i32) {
    %c0_i32 = arith.constant 0 : i32
    %c0_i32_0 = arith.constant 0 : i32
    %c0_i32_1 = arith.constant 0 : i32
    return %c0_i32, %c0_i32_0 : i32, i32
  }
  func.func @transform_14(%arg0: i32) -> (i32, i32) {
    %c0_i32 = arith.constant 0 : i32
    %c0_i32_0 = arith.constant 0 : i32
    %c0_i32_1 = arith.constant 0 : i32
    return %c0_i32, %c0_i32_0 : i32, i32
  }
  func.func @transform_15(%arg0: i32) -> (i32, i32) {
    %c0_i32 = arith.constant 0 : i32
    %c0_i32_0 = arith.constant 0 : i32
    %c0_i32_1 = arith.constant 0 : i32
    return %c0_i32, %c0_i32_0 : i32, i32
  }
  func.func @transform_16(%arg0: i32) -> (i32, i32) {
    %c0_i32 = arith.constant 0 : i32
    %c0_i32_0 = arith.constant 0 : i32
    %c0_i32_1 = arith.constant 0 : i32
    return %c0_i32, %c0_i32_0 : i32, i32
  }
  func.func @transform_17(%arg0: i32) -> (i32, i32) {
    %c0_i32 = arith.constant 0 : i32
    %c0_i32_0 = arith.constant 0 : i32
    return %arg0, %c0_i32 : i32, i32
  }
}

</mosaic_0001>

<bundles_post_ra>
// kernel: autoencoder_forward.1
= control target key start
LH: loop header
LB: loop body
LE: loop exit
PB: predicated region body
PF: predicated region fallthrough
CT: control target
= control target key end

     0   :  { %s3453_s0 = inlined_call_operand.vmem [shape: f32[8,256], index: 0, kind: input, shape index: {}]   ;;  %s3454_s1 = inlined_call_operand.hbm [shape: f32[256,1024], index: 1, kind: input, shape index: {}]   ;;  %s3455_s2 = inlined_call_operand.vmem [shape: f32[1,1024], index: 2, kind: input, shape index: {}]   ;;  %s3456_s3 = inlined_call_operand.hbm [shape: f32[1024,256], index: 3, kind: input, shape index: {}]   ;;  %s3457_s4 = inlined_call_operand.vmem [shape: f32[1,256], index: 4, kind: input, shape index: {}]   ;;  %s3458_s5 = inlined_call_operand.vmem [shape: f32[256,64], index: 5, kind: input, shape index: {}]   ;;  %s3459_s6 = inlined_call_operand.vmem [shape: f32[1,64], index: 6, kind: input, shape index: {}]   ;;  %s3460_s7 = inlined_call_operand.vmem [shape: f32[64,16], index: 7, kind: input, shape index: {}]   ;;  %s3461_s8 = inlined_call_operand.vmem [shape: f32[1,16], index: 8, kind: input, shape index: {}]   ;;  %s3462_s9 = inlined_call_operand.vmem [shape: f32[16,64], index: 9, kind: input, shape index: {}]   ;;  %s3463_s10 = inlined_call_operand.vmem [shape: f32[1,64], index: 10, kind: input, shape index: {}]   ;;  %s3464_s11 = inlined_call_operand.vmem [shape: f32[64,256], index: 11, kind: input, shape index: {}]   ;;  %s3465_s12 = inlined_call_operand.vmem [shape: f32[1,256], index: 12, kind: input, shape index: {}]   ;;  %s3466_s13 = inlined_call_operand.hbm [shape: f32[256,1024], index: 13, kind: input, shape index: {}]   ;;  %s3467_s14 = inlined_call_operand.vmem [shape: f32[1,1024], index: 14, kind: input, shape index: {}]   ;;  %s3468_s15 = inlined_call_operand.hbm [shape: f32[1024,256], index: 15, kind: input, shape index: {}]   ;;  %s3469_s16 = inlined_call_operand.vmem [shape: f32[1,256], index: 16, kind: input, shape index: {}]   ;;  %s3470_s17 = inlined_call_operand.hbm [shape: f32[8,256], index: 17, kind: output, shape index: {}]  }
   0x1   :  { %3472 = sst [smem:[#allocation15_spill]] %s3453_s0 }
   0x2   :  { %3473 = sst [smem:[#allocation16_spill]] %s3454_s1 }
   0x3   :  { %22 = vsyncpa [#allocation3], 0 }
   0x4   :  { %23 = vsyncpa [#allocation6], 0 }
   0x5   :  { %24 = vsyncpa [#allocation9], 0 }
   0x6   :  { %25 = vsyncpa [#allocation4], 0  ;;  %s3026_s24 = smov [#allocation5]  }
   0x7   :  { %s47_s25 = sshll.u32 %s3026_s24, 4  ;;  %s48_s25 = int_to_ptr.vmem [resolvable:$true] %s47_s25 }
   0x8   :  { %s2926_s26 = scalar_lea.vmem %s48_s25, 32768  ;;  %p2931_p1 = scmp.lt.s32.totalorder %s48_s25, %s48_s25 }
   0x9   :  { %p2927_p0 = scmp.ne.s32.totalorder %s48_s25, %s2926_s26  ;;  %p2932_p2 = scmp.lt.s32.totalorder %s2926_s26, %s2926_s26 }
   0xb   :  { %p2933_p3 = por %p2932_p2, %p2931_p1 }
   0xd   :  { %p2934_p4 = pnand %p2933_p3, %p2927_p0 }
   0xf   :  { %2937 = shalt.err (!%p2934_p4)
}
  0x10   :  { %s3027_s27 = smov 256   ;;  %s3028_s28 = smov 16  }
  0x11   :  { %53 = dma.hbm_to_vmem [thread:$0]  %s3456_s3, 32768, %s48_s25, [#allocation6], %s3027_s27, %s3027_s27, %s3028_s28  }
  0x12   :  { %s3029_s30 = smov [#allocation2]  }
  0x13   :  { %s33_s18 = sshll.u32 %s3029_s30, 4  ;;  %s34_s18 = int_to_ptr.vmem [resolvable:$true] %s33_s18 }
  0x14   :  { %s2946_s19 = scalar_lea.vmem %s34_s18, 32768  ;;  %p2951_p6 = scmp.lt.s32.totalorder %s34_s18, %s34_s18 }
  0x15   :  { %p2947_p5 = scmp.ne.s32.totalorder %s34_s18, %s2946_s19  ;;  %p2952_p7 = scmp.lt.s32.totalorder %s2946_s19, %s2946_s19 }
  0x17   :  { %p2953_p8 = por %p2952_p7, %p2951_p6 }
  0x19   :  { %p2954_p9 = pnand %p2953_p8, %p2947_p5 }
  0x1b   :  { %2957 = shalt.err (!%p2954_p9)
}
  0x1c   :  { %s3030_s1 = smov 1024   ;;  %s3031_s20 = smov 64  }
  0x1d   :  { %s3474_s23 = sld [smem:[#allocation16_spill]]  ;;  %s3032_s24 = smov [#allocation7]  }
  0x1e   :  { %s77_s26 = sshll.u32 %s3032_s24, 4  ;;  %s3033_s29 = smov [#allocation8]   ;;  %s78_s26 = int_to_ptr.vmem [resolvable:$true] %s77_s26 }
  0x1f   :  { %s91_s3 = sshll.u32 %s3033_s29, 4  ;;  %s2966_s25 = scalar_lea.vmem %s78_s26, 32768  ;;  %s92_s3 = int_to_ptr.vmem [resolvable:$true] %s91_s3 }
  0x20   :  { %p2967_p10 = scmp.ne.s32.totalorder %s78_s26, %s2966_s25  ;;  %p2971_p11 = scmp.lt.s32.totalorder %s78_s26, %s78_s26 }
  0x21   :  { %p2972_p12 = scmp.lt.s32.totalorder %s2966_s25, %s2966_s25 }
  0x23   :  { %39 = dma.hbm_to_vmem [thread:$0]  %s3474_s23, 32768, %s34_s18, [#allocation3], %s3030_s1, %s3030_s1, %s3031_s20  }
  0x24   :  { %p2973_p13 = por %p2972_p12, %p2971_p11 }
  0x26   :  { %p2974_p0 = pnand %p2973_p13, %p2967_p10 }
  0x28   :  { %2977 = shalt.err (!%p2974_p0)
}
  0x29   :  { %83 = dma.hbm_to_vmem [thread:$0]  %s3466_s13, 32768, %s78_s26, [#allocation6], %s3030_s1, %s3030_s1, %s3031_s20  }
  0x2a   :  { %s2986_s19 = scalar_lea.vmem %s92_s3, 32768  ;;  %p2991_p2 = scmp.lt.s32.totalorder %s92_s3, %s92_s3 }
  0x2b   :  { %p2987_p1 = scmp.ne.s32.totalorder %s92_s3, %s2986_s19  ;;  %p2992_p3 = scmp.lt.s32.totalorder %s2986_s19, %s2986_s19 }
  0x2d   :  { %p2993_p4 = por %p2992_p3, %p2991_p2 }
  0x2f   :  { %p2994_p5 = pnand %p2993_p4, %p2987_p1 }
  0x31   :  { %2997 = shalt.err (!%p2994_p5)
}
  0x32   :  { %97 = dma.hbm_to_vmem [thread:$0]  %s3468_s15, 32768, %s92_s3, [#allocation9], %s3027_s27, %s3027_s27, %s3028_s28  }
  0x33   :  { %3018 = dma.done.wait [#allocation3], 32768  }
  0x34   :  { %3019 = vsyncadd [#allocation3], 4294934528 }
  0x35   :  { %3020 = dma.done.wait [#allocation6], 65536  }
  0x36   :  { %3021 = vsyncadd [#allocation6], 4294901760 }
  0x37   :  { %3022 = dma.done.wait [#allocation9], 32768  }
  0x38   :  { %3023 = vsyncadd [#allocation9], 4294934528  ;;  %v235_v0 = vld [vmem:[#allocation2 + $0x3c8] sm:$0xff]  ;;  %v237_v1 = vld [vmem:[#allocation2 + $0x3d8] sm:$0xff]  ;;  %s3475_s27 = sld [smem:[#allocation15_spill]]  ;;  %vm3035_vm0 = vmmov 0  }
  0x39   :  { %v234_v2 = vld [vmem:[#allocation2 + $0x3c0] sm:$0xff]  ;;  %412 = vmatprep.subr.mxu0 %v235_v0  ;;  %483 = vmatprep.subr.mxu1 %v237_v1  ;;  %v236_v3 = vld [vmem:[#allocation2 + $0x3d0] sm:$0xff]  ;;  %v227_v4 = vld [vmem:[#allocation2 + $0x388] sm:$0xff]  ;;  %vm1383_vm1 = vcmask 523264   ;;  %vm1466_vm2 = vcmask 130048  }
  0x3a   :  { %v229_v5 = vld [vmem:[#allocation2 + $0x398] sm:$0xff]  ;;  %413 = vmatpush1.msra.mxu0 %v234_v2  ;;  %484 = vmatpush1.msra.mxu1 %v236_v3  ;;  %v226_v6 = vld [vmem:[#allocation2 + $0x380] sm:$0xff]  ;;  %v228_v7 = vld [vmem:[#allocation2 + $0x390] sm:$0xff] }
  0x3b   :  { %v219_v8 = vld [vmem:[#allocation2 + $0x348] sm:$0xff]  ;;  %414 = vmatprep.subr.mxu0 %v227_v4  ;;  %485 = vmatprep.subr.mxu1 %v229_v5  ;;  %v221_v9 = vld [vmem:[#allocation2 + $0x358] sm:$0xff]  ;;  %v218_v10 = vld [vmem:[#allocation2 + $0x340] sm:$0xff] }
  0x3c   :  { %v220_v11 = vld [vmem:[#allocation2 + $0x350] sm:$0xff]  ;;  %415 = vmatpush1.msra.mxu0 %v226_v6  ;;  %486 = vmatpush1.msra.mxu1 %v228_v7  ;;  %v211_v12 = vld [vmem:[#allocation2 + $0x308] sm:$0xff]  ;;  %v213_v13 = vld [vmem:[#allocation2 + $0x318] sm:$0xff] }
  0x3d   :  { %416 = vmatprep.subr.mxu0 %v219_v8  ;;  %487 = vmatprep.subr.mxu1 %v221_v9  ;;  %v210_v14 = vld [vmem:[#allocation2 + $0x300] sm:$0xff]  ;;  %v212_v15 = vld [vmem:[#allocation2 + $0x310] sm:$0xff]  ;;  %v203_v16 = vld [vmem:[#allocation2 + $0x2c8] sm:$0xff] }
  0x3e   :  { %417 = vmatpush1.msra.mxu0 %v218_v10  ;;  %488 = vmatpush1.msra.mxu1 %v220_v11  ;;  %v205_v17 = vld [vmem:[#allocation2 + $0x2d8] sm:$0xff]  ;;  %v202_v18 = vld [vmem:[#allocation2 + $0x2c0] sm:$0xff]  ;;  %v204_v19 = vld [vmem:[#allocation2 + $0x2d0] sm:$0xff] }
  0x3f   :  { %418 = vmatprep.subr.mxu0 %v211_v12  ;;  %489 = vmatprep.subr.mxu1 %v213_v13  ;;  %v195_v20 = vld [vmem:[#allocation2 + $0x288] sm:$0xff]  ;;  %v197_v21 = vld [vmem:[#allocation2 + $0x298] sm:$0xff]  ;;  %v194_v22 = vld [vmem:[#allocation2 + $0x280] sm:$0xff] }
  0x40   :  { %419 = vmatpush1.msra.mxu0 %v210_v14  ;;  %490 = vmatpush1.msra.mxu1 %v212_v15  ;;  %v196_v23 = vld [vmem:[#allocation2 + $0x290] sm:$0xff]  ;;  %v187_v24 = vld [vmem:[#allocation2 + $0x248] sm:$0xff]  ;;  %v189_v25 = vld [vmem:[#allocation2 + $0x258] sm:$0xff] }
  0x41   :  { %420 = vmatprep.subr.mxu0 %v203_v16  ;;  %491 = vmatprep.subr.mxu1 %v205_v17  ;;  %v186_v26 = vld [vmem:[#allocation2 + $0x240] sm:$0xff]  ;;  %v188_v27 = vld [vmem:[#allocation2 + $0x250] sm:$0xff]  ;;  %v179_v28 = vld [vmem:[#allocation2 + $0x208] sm:$0xff] }
  0x42   :  { %421 = vmatpush1.msra.mxu0 %v202_v18  ;;  %492 = vmatpush1.msra.mxu1 %v204_v19  ;;  %v181_v29 = vld [vmem:[#allocation2 + $0x218] sm:$0xff]  ;;  %v178_v30 = vld [vmem:[#allocation2 + $0x200] sm:$0xff]  ;;  %v180_v31 = vld [vmem:[#allocation2 + $0x210] sm:$0xff] }
  0x43   :  { %422 = vmatprep.subr.mxu0 %v195_v20  ;;  %493 = vmatprep.subr.mxu1 %v197_v21  ;;  %v171_v32 = vld [vmem:[#allocation2 + $0x1c8] sm:$0xff]  ;;  %v173_v33 = vld [vmem:[#allocation2 + $0x1d8] sm:$0xff]  ;;  %v170_v34 = vld [vmem:[#allocation2 + $0x1c0] sm:$0xff] }
  0x44   :  { %423 = vmatpush1.msra.mxu0 %v194_v22  ;;  %494 = vmatpush1.msra.mxu1 %v196_v23  ;;  %v172_v35 = vld [vmem:[#allocation2 + $0x1d0] sm:$0xff]  ;;  %v163_v36 = vld [vmem:[#allocation2 + $0x188] sm:$0xff]  ;;  %v165_v37 = vld [vmem:[#allocation2 + $0x198] sm:$0xff] }
  0x45   :  { %424 = vmatprep.subr.mxu0 %v187_v24  ;;  %495 = vmatprep.subr.mxu1 %v189_v25  ;;  %v162_v38 = vld [vmem:[#allocation2 + $0x180] sm:$0xff]  ;;  %v164_v39 = vld [vmem:[#allocation2 + $0x190] sm:$0xff]  ;;  %v155_v40 = vld [vmem:[#allocation2 + $0x148] sm:$0xff] }
  0x46   :  { %425 = vmatpush1.msra.mxu0 %v186_v26  ;;  %496 = vmatpush1.msra.mxu1 %v188_v27  ;;  %v157_v41 = vld [vmem:[#allocation2 + $0x158] sm:$0xff]  ;;  %v154_v42 = vld [vmem:[#allocation2 + $0x140] sm:$0xff]  ;;  %v156_v43 = vld [vmem:[#allocation2 + $0x150] sm:$0xff] }
  0x47   :  { %426 = vmatprep.subr.mxu0 %v179_v28  ;;  %497 = vmatprep.subr.mxu1 %v181_v29  ;;  %v147_v44 = vld [vmem:[#allocation2 + $0x108] sm:$0xff]  ;;  %v149_v45 = vld [vmem:[#allocation2 + $0x118] sm:$0xff]  ;;  %v146_v46 = vld [vmem:[#allocation2 + $0x100] sm:$0xff] }
  0x48   :  { %427 = vmatpush1.msra.mxu0 %v178_v30  ;;  %498 = vmatpush1.msra.mxu1 %v180_v31  ;;  %v148_v47 = vld [vmem:[#allocation2 + $0x110] sm:$0xff]  ;;  %v139_v48 = vld [vmem:[#allocation2 + $0xc8] sm:$0xff]  ;;  %v141_v49 = vld [vmem:[#allocation2 + $0xd8] sm:$0xff] }
  0x49   :  { %428 = vmatprep.subr.mxu0 %v171_v32  ;;  %499 = vmatprep.subr.mxu1 %v173_v33  ;;  %v138_v50 = vld [vmem:[#allocation2 + $0xc0] sm:$0xff]  ;;  %v140_v51 = vld [vmem:[#allocation2 + $0xd0] sm:$0xff]  ;;  %v131_v52 = vld [vmem:[#allocation2 + $0x88] sm:$0xff] }
  0x4a   :  { %429 = vmatpush1.msra.mxu0 %v170_v34  ;;  %500 = vmatpush1.msra.mxu1 %v172_v35  ;;  %v133_v53 = vld [vmem:[#allocation2 + $0x98] sm:$0xff]  ;;  %v130_v54 = vld [vmem:[#allocation2 + $0x80] sm:$0xff]  ;;  %v132_v55 = vld [vmem:[#allocation2 + $0x90] sm:$0xff] }
  0x4b   :  { %430 = vmatprep.subr.mxu0 %v163_v36  ;;  %501 = vmatprep.subr.mxu1 %v165_v37  ;;  %v123_v56 = vld [vmem:[#allocation2 + $0x48] sm:$0xff]  ;;  %v125_v57 = vld [vmem:[#allocation2 + $0x58] sm:$0xff]  ;;  %v122_v58 = vld [vmem:[#allocation2 + $0x40] sm:$0xff] }
  0x4c   :  { %431 = vmatpush1.msra.mxu0 %v162_v38  ;;  %502 = vmatpush1.msra.mxu1 %v164_v39  ;;  %v124_v59 = vld [vmem:[#allocation2 + $0x50] sm:$0xff]  ;;  %v115_v60 = vld [vmem:[#allocation2 + $0x8] sm:$0xff]  ;;  %v117_v61 = vld [vmem:[#allocation2 + $0x18] sm:$0xff] }
  0x4d   :  { %432 = vmatprep.subr.mxu0 %v155_v40  ;;  %503 = vmatprep.subr.mxu1 %v157_v41  ;;  %v114_v62 = vld [vmem:[#allocation2] sm:$0xff]  ;;  %v116_v63 = vld [vmem:[#allocation2 + $0x10] sm:$0xff]  ;;  %v363_v0 = vld [vmem:[#allocation2 + $0x7c8] sm:$0xff] }
  0x4e   :  { %433 = vmatpush1.msra.mxu0 %v154_v42  ;;  %504 = vmatpush1.msra.mxu1 %v156_v43  ;;  %v365_v1 = vld [vmem:[#allocation2 + $0x7d8] sm:$0xff]  ;;  %v362_v2 = vld [vmem:[#allocation2 + $0x7c0] sm:$0xff]  ;;  %v364_v3 = vld [vmem:[#allocation2 + $0x7d0] sm:$0xff] }
  0x4f   :  { %434 = vmatprep.subr.mxu0 %v147_v44  ;;  %505 = vmatprep.subr.mxu1 %v149_v45  ;;  %v355_v4 = vld [vmem:[#allocation2 + $0x788] sm:$0xff]  ;;  %v357_v5 = vld [vmem:[#allocation2 + $0x798] sm:$0xff]  ;;  %v354_v6 = vld [vmem:[#allocation2 + $0x780] sm:$0xff] }
  0x50   :  { %435 = vmatpush1.msra.mxu0 %v146_v46  ;;  %506 = vmatpush1.msra.mxu1 %v148_v47  ;;  %v356_v7 = vld [vmem:[#allocation2 + $0x790] sm:$0xff]  ;;  %v347_v8 = vld [vmem:[#allocation2 + $0x748] sm:$0xff]  ;;  %v349_v9 = vld [vmem:[#allocation2 + $0x758] sm:$0xff] }
  0x51   :  { %436 = vmatprep.subr.mxu0 %v139_v48  ;;  %507 = vmatprep.subr.mxu1 %v141_v49  ;;  %v346_v10 = vld [vmem:[#allocation2 + $0x740] sm:$0xff]  ;;  %v348_v11 = vld [vmem:[#allocation2 + $0x750] sm:$0xff]  ;;  %v339_v12 = vld [vmem:[#allocation2 + $0x708] sm:$0xff] }
  0x52   :  { %437 = vmatpush1.msra.mxu0 %v138_v50  ;;  %508 = vmatpush1.msra.mxu1 %v140_v51  ;;  %v341_v13 = vld [vmem:[#allocation2 + $0x718] sm:$0xff]  ;;  %v338_v14 = vld [vmem:[#allocation2 + $0x700] sm:$0xff]  ;;  %v340_v15 = vld [vmem:[#allocation2 + $0x710] sm:$0xff] }
  0x53   :  { %438 = vmatprep.subr.mxu0 %v131_v52  ;;  %509 = vmatprep.subr.mxu1 %v133_v53  ;;  %v331_v16 = vld [vmem:[#allocation2 + $0x6c8] sm:$0xff]  ;;  %v333_v17 = vld [vmem:[#allocation2 + $0x6d8] sm:$0xff]  ;;  %v330_v18 = vld [vmem:[#allocation2 + $0x6c0] sm:$0xff] }
  0x54   :  { %439 = vmatpush1.msra.mxu0 %v130_v54  ;;  %510 = vmatpush1.msra.mxu1 %v132_v55  ;;  %v332_v19 = vld [vmem:[#allocation2 + $0x6d0] sm:$0xff]  ;;  %v323_v20 = vld [vmem:[#allocation2 + $0x688] sm:$0xff]  ;;  %v325_v21 = vld [vmem:[#allocation2 + $0x698] sm:$0xff] }
  0x55   :  { %440 = vmatprep.subr.mxu0 %v123_v56  ;;  %511 = vmatprep.subr.mxu1 %v125_v57  ;;  %v322_v22 = vld [vmem:[#allocation2 + $0x680] sm:$0xff]  ;;  %v324_v23 = vld [vmem:[#allocation2 + $0x690] sm:$0xff]  ;;  %v315_v24 = vld [vmem:[#allocation2 + $0x648] sm:$0xff] }
  0x56   :  { %441 = vmatpush1.msra.mxu0 %v122_v58  ;;  %512 = vmatpush1.msra.mxu1 %v124_v59  ;;  %v317_v25 = vld [vmem:[#allocation2 + $0x658] sm:$0xff]  ;;  %v314_v26 = vld [vmem:[#allocation2 + $0x640] sm:$0xff]  ;;  %v316_v27 = vld [vmem:[#allocation2 + $0x650] sm:$0xff] }
  0x57   :  { %442 = vmatprep.subr.mxu0 %v115_v60  ;;  %513 = vmatprep.subr.mxu1 %v117_v61  ;;  %v307_v28 = vld [vmem:[#allocation2 + $0x608] sm:$0xff]  ;;  %v309_v29 = vld [vmem:[#allocation2 + $0x618] sm:$0xff]  ;;  %v306_v30 = vld [vmem:[#allocation2 + $0x600] sm:$0xff] }
  0x58   :  { %443 = vmatpush1.msra.mxu0 %v114_v62  ;;  %514 = vmatpush1.msra.mxu1 %v116_v63  ;;  %v308_v31 = vld [vmem:[#allocation2 + $0x610] sm:$0xff]  ;;  %v299_v32 = vld [vmem:[#allocation2 + $0x5c8] sm:$0xff]  ;;  %v301_v33 = vld [vmem:[#allocation2 + $0x5d8] sm:$0xff] }
  0x59   :  { %444 = vmatprep.subr.mxu0 %v363_v0  ;;  %515 = vmatprep.subr.mxu1 %v365_v1  ;;  %v298_v34 = vld [vmem:[#allocation2 + $0x5c0] sm:$0xff]  ;;  %v300_v35 = vld [vmem:[#allocation2 + $0x5d0] sm:$0xff]  ;;  %v291_v36 = vld [vmem:[#allocation2 + $0x588] sm:$0xff] }
  0x5a   :  { %445 = vmatpush2.msra.mxu0 %v362_v2  ;;  %516 = vmatpush2.msra.mxu1 %v364_v3  ;;  %v293_v37 = vld [vmem:[#allocation2 + $0x598] sm:$0xff]  ;;  %v290_v38 = vld [vmem:[#allocation2 + $0x580] sm:$0xff]  ;;  %v292_v39 = vld [vmem:[#allocation2 + $0x590] sm:$0xff] }
  0x5b   :  { %446 = vmatprep.subr.mxu0 %v355_v4  ;;  %517 = vmatprep.subr.mxu1 %v357_v5  ;;  %v283_v40 = vld [vmem:[#allocation2 + $0x548] sm:$0xff]  ;;  %v285_v41 = vld [vmem:[#allocation2 + $0x558] sm:$0xff]  ;;  %v282_v42 = vld [vmem:[#allocation2 + $0x540] sm:$0xff] }
  0x5c   :  { %447 = vmatpush2.msra.mxu0 %v354_v6  ;;  %518 = vmatpush2.msra.mxu1 %v356_v7  ;;  %v284_v43 = vld [vmem:[#allocation2 + $0x550] sm:$0xff]  ;;  %v275_v44 = vld [vmem:[#allocation2 + $0x508] sm:$0xff]  ;;  %v277_v45 = vld [vmem:[#allocation2 + $0x518] sm:$0xff] }
  0x5d   :  { %448 = vmatprep.subr.mxu0 %v347_v8  ;;  %519 = vmatprep.subr.mxu1 %v349_v9  ;;  %v274_v46 = vld [vmem:[#allocation2 + $0x500] sm:$0xff]  ;;  %v276_v47 = vld [vmem:[#allocation2 + $0x510] sm:$0xff]  ;;  %v267_v48 = vld [vmem:[#allocation2 + $0x4c8] sm:$0xff] }
  0x5e   :  { %449 = vmatpush2.msra.mxu0 %v346_v10  ;;  %520 = vmatpush2.msra.mxu1 %v348_v11  ;;  %v269_v49 = vld [vmem:[#allocation2 + $0x4d8] sm:$0xff]  ;;  %v266_v50 = vld [vmem:[#allocation2 + $0x4c0] sm:$0xff]  ;;  %v268_v51 = vld [vmem:[#allocation2 + $0x4d0] sm:$0xff] }
  0x5f   :  { %450 = vmatprep.subr.mxu0 %v339_v12  ;;  %521 = vmatprep.subr.mxu1 %v341_v13  ;;  %v259_v52 = vld [vmem:[#allocation2 + $0x488] sm:$0xff]  ;;  %v261_v53 = vld [vmem:[#allocation2 + $0x498] sm:$0xff]  ;;  %v258_v54 = vld [vmem:[#allocation2 + $0x480] sm:$0xff] }
  0x60   :  { %451 = vmatpush2.msra.mxu0 %v338_v14  ;;  %522 = vmatpush2.msra.mxu1 %v340_v15  ;;  %v260_v55 = vld [vmem:[#allocation2 + $0x490] sm:$0xff]  ;;  %v251_v56 = vld [vmem:[#allocation2 + $0x448] sm:$0xff]  ;;  %v253_v57 = vld [vmem:[#allocation2 + $0x458] sm:$0xff] }
  0x61   :  { %452 = vmatprep.subr.mxu0 %v331_v16  ;;  %523 = vmatprep.subr.mxu1 %v333_v17  ;;  %v250_v58 = vld [vmem:[#allocation2 + $0x440] sm:$0xff]  ;;  %v252_v59 = vld [vmem:[#allocation2 + $0x450] sm:$0xff]  ;;  %v243_v60 = vld [vmem:[#allocation2 + $0x408] sm:$0xff] }
  0x62   :  { %453 = vmatpush2.msra.mxu0 %v330_v18  ;;  %524 = vmatpush2.msra.mxu1 %v332_v19  ;;  %v245_v61 = vld [vmem:[#allocation2 + $0x418] sm:$0xff]  ;;  %v242_v62 = vld [vmem:[#allocation2 + $0x400] sm:$0xff]  ;;  %v3148_v63 = vld [vmem:[%s3475_s27 + $0x8] sm:$0xff] }
  0x63   :  { %454 = vmatprep.subr.mxu0 %v323_v20  ;;  %525 = vmatprep.subr.mxu1 %v325_v21  ;;  %v244_v0 = vld [vmem:[#allocation2 + $0x410] sm:$0xff]  ;;  %v3153_v1 = vld [vmem:[%s3475_s27] sm:$0xff]  ;;  %v239_v2 = vld [vmem:[#allocation2 + $0x3e8] sm:$0xff] }
  0x64   :  { %455 = vmatpush2.msra.mxu0 %v322_v22  ;;  %526 = vmatpush2.msra.mxu1 %v324_v23  ;;  %v241_v3 = vld [vmem:[#allocation2 + $0x3f8] sm:$0xff]  ;;  %v238_v4 = vld [vmem:[#allocation2 + $0x3e0] sm:$0xff]  ;;  %v240_v5 = vld [vmem:[#allocation2 + $0x3f0] sm:$0xff] }
  0x65   :  { %456 = vmatprep.subr.mxu0 %v315_v24  ;;  %527 = vmatprep.subr.mxu1 %v317_v25  ;;  %v231_v6 = vld [vmem:[#allocation2 + $0x3a8] sm:$0xff]  ;;  %v233_v7 = vld [vmem:[#allocation2 + $0x3b8] sm:$0xff]  ;;  %v230_v8 = vld [vmem:[#allocation2 + $0x3a0] sm:$0xff] }
  0x66   :  { %457 = vmatpush2.msra.mxu0 %v314_v26  ;;  %528 = vmatpush2.msra.mxu1 %v316_v27  ;;  %v232_v9 = vld [vmem:[#allocation2 + $0x3b0] sm:$0xff]  ;;  %v223_v10 = vld [vmem:[#allocation2 + $0x368] sm:$0xff]  ;;  %v225_v11 = vld [vmem:[#allocation2 + $0x378] sm:$0xff] }
  0x67   :  { %458 = vmatprep.subr.mxu0 %v307_v28  ;;  %529 = vmatprep.subr.mxu1 %v309_v29  ;;  %v222_v12 = vld [vmem:[#allocation2 + $0x360] sm:$0xff]  ;;  %v224_v13 = vld [vmem:[#allocation2 + $0x370] sm:$0xff]  ;;  %v215_v14 = vld [vmem:[#allocation2 + $0x328] sm:$0xff] }
  0x68   :  { %459 = vmatpush2.msra.mxu0 %v306_v30  ;;  %530 = vmatpush2.msra.mxu1 %v308_v31  ;;  %v217_v15 = vld [vmem:[#allocation2 + $0x338] sm:$0xff]  ;;  %v214_v16 = vld [vmem:[#allocation2 + $0x320] sm:$0xff]  ;;  %v216_v17 = vld [vmem:[#allocation2 + $0x330] sm:$0xff] }
  0x69   :  { %460 = vmatprep.subr.mxu0 %v299_v32  ;;  %531 = vmatprep.subr.mxu1 %v301_v33  ;;  %v207_v18 = vld [vmem:[#allocation2 + $0x2e8] sm:$0xff]  ;;  %v209_v19 = vld [vmem:[#allocation2 + $0x2f8] sm:$0xff]  ;;  %v206_v20 = vld [vmem:[#allocation2 + $0x2e0] sm:$0xff] }
  0x6a   :  { %461 = vmatpush2.msra.mxu0 %v298_v34  ;;  %532 = vmatpush2.msra.mxu1 %v300_v35  ;;  %v208_v21 = vld [vmem:[#allocation2 + $0x2f0] sm:$0xff]  ;;  %v199_v22 = vld [vmem:[#allocation2 + $0x2a8] sm:$0xff]  ;;  %v201_v23 = vld [vmem:[#allocation2 + $0x2b8] sm:$0xff] }
  0x6b   :  { %462 = vmatprep.subr.mxu0 %v291_v36  ;;  %533 = vmatprep.subr.mxu1 %v293_v37  ;;  %v198_v24 = vld [vmem:[#allocation2 + $0x2a0] sm:$0xff]  ;;  %v200_v25 = vld [vmem:[#allocation2 + $0x2b0] sm:$0xff]  ;;  %v191_v26 = vld [vmem:[#allocation2 + $0x268] sm:$0xff] }
  0x6c   :  { %463 = vmatpush2.msra.mxu0 %v290_v38  ;;  %534 = vmatpush2.msra.mxu1 %v292_v39  ;;  %v193_v27 = vld [vmem:[#allocation2 + $0x278] sm:$0xff]  ;;  %v190_v28 = vld [vmem:[#allocation2 + $0x260] sm:$0xff]  ;;  %v192_v29 = vld [vmem:[#allocation2 + $0x270] sm:$0xff] }
  0x6d   :  { %464 = vmatprep.subr.mxu0 %v283_v40  ;;  %535 = vmatprep.subr.mxu1 %v285_v41  ;;  %v183_v30 = vld [vmem:[#allocation2 + $0x228] sm:$0xff]  ;;  %v185_v31 = vld [vmem:[#allocation2 + $0x238] sm:$0xff]  ;;  %v182_v32 = vld [vmem:[#allocation2 + $0x220] sm:$0xff] }
  0x6e   :  { %465 = vmatpush2.msra.mxu0 %v282_v42  ;;  %536 = vmatpush2.msra.mxu1 %v284_v43  ;;  %v184_v33 = vld [vmem:[#allocation2 + $0x230] sm:$0xff]  ;;  %v175_v34 = vld [vmem:[#allocation2 + $0x1e8] sm:$0xff]  ;;  %v177_v35 = vld [vmem:[#allocation2 + $0x1f8] sm:$0xff] }
  0x6f   :  { %466 = vmatprep.subr.mxu0 %v275_v44  ;;  %537 = vmatprep.subr.mxu1 %v277_v45  ;;  %v174_v36 = vld [vmem:[#allocation2 + $0x1e0] sm:$0xff]  ;;  %v176_v37 = vld [vmem:[#allocation2 + $0x1f0] sm:$0xff]  ;;  %v167_v38 = vld [vmem:[#allocation2 + $0x1a8] sm:$0xff] }
  0x70   :  { %467 = vmatpush2.msra.mxu0 %v274_v46  ;;  %538 = vmatpush2.msra.mxu1 %v276_v47  ;;  %v169_v39 = vld [vmem:[#allocation2 + $0x1b8] sm:$0xff]  ;;  %v166_v40 = vld [vmem:[#allocation2 + $0x1a0] sm:$0xff]  ;;  %v168_v41 = vld [vmem:[#allocation2 + $0x1b0] sm:$0xff] }
  0x71   :  { %468 = vmatprep.subr.mxu0 %v267_v48  ;;  %539 = vmatprep.subr.mxu1 %v269_v49  ;;  %v159_v42 = vld [vmem:[#allocation2 + $0x168] sm:$0xff]  ;;  %v161_v43 = vld [vmem:[#allocation2 + $0x178] sm:$0xff]  ;;  %v158_v44 = vld [vmem:[#allocation2 + $0x160] sm:$0xff] }
  0x72   :  { %469 = vmatpush2.msra.mxu0 %v266_v50  ;;  %540 = vmatpush2.msra.mxu1 %v268_v51  ;;  %v160_v45 = vld [vmem:[#allocation2 + $0x170] sm:$0xff]  ;;  %v151_v46 = vld [vmem:[#allocation2 + $0x128] sm:$0xff]  ;;  %v153_v47 = vld [vmem:[#allocation2 + $0x138] sm:$0xff] }
  0x73   :  { %470 = vmatprep.subr.mxu0 %v259_v52  ;;  %541 = vmatprep.subr.mxu1 %v261_v53  ;;  %v150_v48 = vld [vmem:[#allocation2 + $0x120] sm:$0xff]  ;;  %v152_v49 = vld [vmem:[#allocation2 + $0x130] sm:$0xff]  ;;  %v143_v50 = vld [vmem:[#allocation2 + $0xe8] sm:$0xff] }
  0x74   :  { %471 = vmatpush2.msra.mxu0 %v258_v54  ;;  %542 = vmatpush2.msra.mxu1 %v260_v55  ;;  %v145_v51 = vld [vmem:[#allocation2 + $0xf8] sm:$0xff]  ;;  %v142_v52 = vld [vmem:[#allocation2 + $0xe0] sm:$0xff]  ;;  %v144_v53 = vld [vmem:[#allocation2 + $0xf0] sm:$0xff] }
  0x75   :  { %472 = vmatprep.subr.mxu0 %v251_v56  ;;  %543 = vmatprep.subr.mxu1 %v253_v57  ;;  %v135_v54 = vld [vmem:[#allocation2 + $0xa8] sm:$0xff]  ;;  %v137_v55 = vld [vmem:[#allocation2 + $0xb8] sm:$0xff]  ;;  %v134_v56 = vld [vmem:[#allocation2 + $0xa0] sm:$0xff] }
  0x76   :  { %473 = vmatpush2.msra.mxu0 %v250_v58  ;;  %544 = vmatpush2.msra.mxu1 %v252_v59  ;;  %v136_v57 = vld [vmem:[#allocation2 + $0xb0] sm:$0xff]  ;;  %v127_v58 = vld [vmem:[#allocation2 + $0x68] sm:$0xff]  ;;  %v129_v59 = vld [vmem:[#allocation2 + $0x78] sm:$0xff] }
  0x77   :  { %474 = vmatprep.subr.mxu0 %v243_v60  ;;  %545 = vmatprep.subr.mxu1 %v245_v61  ;;  %v126_v60 = vld [vmem:[#allocation2 + $0x60] sm:$0xff]  ;;  %v128_v61 = vld [vmem:[#allocation2 + $0x70] sm:$0xff] }
  0x78   :  { %475 = vmatpush2.msra.mxu0 %v242_v62  ;;  %476 = vmatprep.mubr.f32.mxu0 %v3148_v63  ;;  %v119_v62 = vld [vmem:[#allocation2 + $0x28] sm:$0xff] }
  0x79   :  { %546 = vmatpush2.msra.mxu1 %v244_v0  ;;  %547 = vmatprep.mubr.f32.mxu1 %v3148_v63  ;;  %v121_v0 = vld [vmem:[#allocation2 + $0x38] sm:$0xff] }
  0x7a   :  { %477 = vmatmul.mubr.f32.vlgmr.msra.gmra.mxu0 %v3153_v1  ;;  %548 = vmatmul.mubr.f32.vlgmr.msra.gmra.mxu1 %v3153_v1 }
  0x7b   :  { %554 = vmatprep.subr.mxu0 %v239_v2  ;;  %625 = vmatprep.subr.mxu1 %v241_v3  ;;  %v118_v2 = vld [vmem:[#allocation2 + $0x20] sm:$0xff]  ;;  %v120_v3 = vld [vmem:[#allocation2 + $0x30] sm:$0xff] }
  0x7c   :  { %555 = vmatpush1.msra.mxu0 %v238_v4  ;;  %626 = vmatpush1.msra.mxu1 %v240_v5  ;;  %v367_v4 = vld [vmem:[#allocation2 + $0x7e8] sm:$0xff]  ;;  %v369_v5 = vld [vmem:[#allocation2 + $0x7f8] sm:$0xff] }
  0x7d   :  { %556 = vmatprep.subr.mxu0 %v231_v6  ;;  %627 = vmatprep.subr.mxu1 %v233_v7  ;;  %v366_v6 = vld [vmem:[#allocation2 + $0x7e0] sm:$0xff]  ;;  %v368_v7 = vld [vmem:[#allocation2 + $0x7f0] sm:$0xff] }
  0x7e   :  { %557 = vmatpush1.msra.mxu0 %v230_v8  ;;  %628 = vmatpush1.msra.mxu1 %v232_v9  ;;  %v359_v8 = vld [vmem:[#allocation2 + $0x7a8] sm:$0xff]  ;;  %v361_v9 = vld [vmem:[#allocation2 + $0x7b8] sm:$0xff] }
  0x7f   :  { %558 = vmatprep.subr.mxu0 %v223_v10  ;;  %629 = vmatprep.subr.mxu1 %v225_v11  ;;  %v358_v10 = vld [vmem:[#allocation2 + $0x7a0] sm:$0xff]  ;;  %v360_v11 = vld [vmem:[#allocation2 + $0x7b0] sm:$0xff] }
  0x80   :  { %559 = vmatpush1.msra.mxu0 %v222_v12  ;;  %630 = vmatpush1.msra.mxu1 %v224_v13  ;;  %v351_v12 = vld [vmem:[#allocation2 + $0x768] sm:$0xff]  ;;  %v353_v13 = vld [vmem:[#allocation2 + $0x778] sm:$0xff] }
  0x81   :  { %560 = vmatprep.subr.mxu0 %v215_v14  ;;  %631 = vmatprep.subr.mxu1 %v217_v15  ;;  %v350_v14 = vld [vmem:[#allocation2 + $0x760] sm:$0xff]  ;;  %v352_v15 = vld [vmem:[#allocation2 + $0x770] sm:$0xff] }
  0x82   :  { %561 = vmatpush1.msra.mxu0 %v214_v16  ;;  %632 = vmatpush1.msra.mxu1 %v216_v17  ;;  %v343_v16 = vld [vmem:[#allocation2 + $0x728] sm:$0xff]  ;;  %v345_v17 = vld [vmem:[#allocation2 + $0x738] sm:$0xff] }
  0x83   :  { %562 = vmatprep.subr.mxu0 %v207_v18  ;;  %633 = vmatprep.subr.mxu1 %v209_v19  ;;  %v342_v18 = vld [vmem:[#allocation2 + $0x720] sm:$0xff]  ;;  %v344_v19 = vld [vmem:[#allocation2 + $0x730] sm:$0xff] }
  0x84   :  { %563 = vmatpush1.msra.mxu0 %v206_v20  ;;  %634 = vmatpush1.msra.mxu1 %v208_v21  ;;  %v335_v20 = vld [vmem:[#allocation2 + $0x6e8] sm:$0xff]  ;;  %v337_v21 = vld [vmem:[#allocation2 + $0x6f8] sm:$0xff] }
  0x85   :  { %564 = vmatprep.subr.mxu0 %v199_v22  ;;  %635 = vmatprep.subr.mxu1 %v201_v23  ;;  %v334_v22 = vld [vmem:[#allocation2 + $0x6e0] sm:$0xff]  ;;  %v336_v23 = vld [vmem:[#allocation2 + $0x6f0] sm:$0xff] }
  0x86   :  { %565 = vmatpush1.msra.mxu0 %v198_v24  ;;  %636 = vmatpush1.msra.mxu1 %v200_v25  ;;  %v327_v24 = vld [vmem:[#allocation2 + $0x6a8] sm:$0xff]  ;;  %v329_v25 = vld [vmem:[#allocation2 + $0x6b8] sm:$0xff] }
  0x87   :  { %566 = vmatprep.subr.mxu0 %v191_v26  ;;  %637 = vmatprep.subr.mxu1 %v193_v27  ;;  %v326_v26 = vld [vmem:[#allocation2 + $0x6a0] sm:$0xff]  ;;  %v328_v27 = vld [vmem:[#allocation2 + $0x6b0] sm:$0xff] }
  0x88   :  { %567 = vmatpush1.msra.mxu0 %v190_v28  ;;  %638 = vmatpush1.msra.mxu1 %v192_v29  ;;  %v319_v28 = vld [vmem:[#allocation2 + $0x668] sm:$0xff]  ;;  %v321_v29 = vld [vmem:[#allocation2 + $0x678] sm:$0xff] }
  0x89   :  { %568 = vmatprep.subr.mxu0 %v183_v30  ;;  %639 = vmatprep.subr.mxu1 %v185_v31  ;;  %v318_v30 = vld [vmem:[#allocation2 + $0x660] sm:$0xff]  ;;  %v320_v31 = vld [vmem:[#allocation2 + $0x670] sm:$0xff] }
  0x8a   :  { %569 = vmatpush1.msra.mxu0 %v182_v32  ;;  %640 = vmatpush1.msra.mxu1 %v184_v33  ;;  %v311_v32 = vld [vmem:[#allocation2 + $0x628] sm:$0xff]  ;;  %v313_v33 = vld [vmem:[#allocation2 + $0x638] sm:$0xff] }
  0x8b   :  { %570 = vmatprep.subr.mxu0 %v175_v34  ;;  %641 = vmatprep.subr.mxu1 %v177_v35  ;;  %v310_v34 = vld [vmem:[#allocation2 + $0x620] sm:$0xff]  ;;  %v312_v35 = vld [vmem:[#allocation2 + $0x630] sm:$0xff] }
  0x8c   :  { %571 = vmatpush1.msra.mxu0 %v174_v36  ;;  %642 = vmatpush1.msra.mxu1 %v176_v37  ;;  %v303_v36 = vld [vmem:[#allocation2 + $0x5e8] sm:$0xff]  ;;  %v305_v37 = vld [vmem:[#allocation2 + $0x5f8] sm:$0xff] }
  0x8d   :  { %572 = vmatprep.subr.mxu0 %v167_v38  ;;  %643 = vmatprep.subr.mxu1 %v169_v39  ;;  %v302_v38 = vld [vmem:[#allocation2 + $0x5e0] sm:$0xff]  ;;  %v304_v39 = vld [vmem:[#allocation2 + $0x5f0] sm:$0xff] }
  0x8e   :  { %573 = vmatpush1.msra.mxu0 %v166_v40  ;;  %644 = vmatpush1.msra.mxu1 %v168_v41  ;;  %v295_v40 = vld [vmem:[#allocation2 + $0x5a8] sm:$0xff]  ;;  %v297_v41 = vld [vmem:[#allocation2 + $0x5b8] sm:$0xff] }
  0x8f   :  { %574 = vmatprep.subr.mxu0 %v159_v42  ;;  %645 = vmatprep.subr.mxu1 %v161_v43  ;;  %v294_v42 = vld [vmem:[#allocation2 + $0x5a0] sm:$0xff]  ;;  %v296_v43 = vld [vmem:[#allocation2 + $0x5b0] sm:$0xff] }
  0x90   :  { %575 = vmatpush1.msra.mxu0 %v158_v44  ;;  %646 = vmatpush1.msra.mxu1 %v160_v45  ;;  %v287_v44 = vld [vmem:[#allocation2 + $0x568] sm:$0xff]  ;;  %v289_v45 = vld [vmem:[#allocation2 + $0x578] sm:$0xff] }
  0x91   :  { %576 = vmatprep.subr.mxu0 %v151_v46  ;;  %647 = vmatprep.subr.mxu1 %v153_v47  ;;  %v286_v46 = vld [vmem:[#allocation2 + $0x560] sm:$0xff]  ;;  %v288_v47 = vld [vmem:[#allocation2 + $0x570] sm:$0xff] }
  0x92   :  { %577 = vmatpush1.msra.mxu0 %v150_v48  ;;  %648 = vmatpush1.msra.mxu1 %v152_v49  ;;  %v279_v48 = vld [vmem:[#allocation2 + $0x528] sm:$0xff]  ;;  %v281_v49 = vld [vmem:[#allocation2 + $0x538] sm:$0xff] }
  0x93   :  { %578 = vmatprep.subr.mxu0 %v143_v50  ;;  %649 = vmatprep.subr.mxu1 %v145_v51  ;;  %v278_v50 = vld [vmem:[#allocation2 + $0x520] sm:$0xff]  ;;  %v280_v51 = vld [vmem:[#allocation2 + $0x530] sm:$0xff] }
  0x94   :  { %579 = vmatpush1.msra.mxu0 %v142_v52  ;;  %650 = vmatpush1.msra.mxu1 %v144_v53  ;;  %v271_v52 = vld [vmem:[#allocation2 + $0x4e8] sm:$0xff]  ;;  %v273_v53 = vld [vmem:[#allocation2 + $0x4f8] sm:$0xff] }
  0x95   :  { %580 = vmatprep.subr.mxu0 %v135_v54  ;;  %651 = vmatprep.subr.mxu1 %v137_v55  ;;  %v270_v54 = vld [vmem:[#allocation2 + $0x4e0] sm:$0xff]  ;;  %v272_v55 = vld [vmem:[#allocation2 + $0x4f0] sm:$0xff] }
  0x96   :  { %581 = vmatpush1.msra.mxu0 %v134_v56  ;;  %652 = vmatpush1.msra.mxu1 %v136_v57  ;;  %v263_v56 = vld [vmem:[#allocation2 + $0x4a8] sm:$0xff]  ;;  %v265_v57 = vld [vmem:[#allocation2 + $0x4b8] sm:$0xff] }
  0x97   :  { %582 = vmatprep.subr.mxu0 %v127_v58  ;;  %653 = vmatprep.subr.mxu1 %v129_v59  ;;  %v262_v58 = vld [vmem:[#allocation2 + $0x4a0] sm:$0xff]  ;;  %v264_v59 = vld [vmem:[#allocation2 + $0x4b0] sm:$0xff] }
  0x98   :  { %583 = vmatpush1.msra.mxu0 %v126_v60  ;;  %654 = vmatpush1.msra.mxu1 %v128_v61  ;;  %v255_v60 = vld [vmem:[#allocation2 + $0x468] sm:$0xff]  ;;  %v257_v61 = vld [vmem:[#allocation2 + $0x478] sm:$0xff] }
  0x99   :  { %584 = vmatprep.subr.mxu0 %v119_v62  ;;  %655 = vmatprep.subr.mxu1 %v121_v0  ;;  %v254_v62 = vld [vmem:[#allocation2 + $0x460] sm:$0xff]  ;;  %v256_v0 = vld [vmem:[#allocation2 + $0x470] sm:$0xff] }
  0x9a   :  { %585 = vmatpush1.msra.mxu0 %v118_v2  ;;  %656 = vmatpush1.msra.mxu1 %v120_v3  ;;  %v247_v2 = vld [vmem:[#allocation2 + $0x428] sm:$0xff]  ;;  %v249_v3 = vld [vmem:[#allocation2 + $0x438] sm:$0xff] }
  0x9b   :  { %586 = vmatprep.subr.mxu0 %v367_v4  ;;  %657 = vmatprep.subr.mxu1 %v369_v5  ;;  %v246_v4 = vld [vmem:[#allocation2 + $0x420] sm:$0xff]  ;;  %v248_v5 = vld [vmem:[#allocation2 + $0x430] sm:$0xff] }
  0x9c   :  { %587 = vmatpush2.msra.mxu0 %v366_v6  ;;  %658 = vmatpush2.msra.mxu1 %v368_v7  ;;  %v735_v6 = vld [vmem:[#allocation5 + $0xf8] sm:$0xff] }
  0x9d   :  { %588 = vmatprep.subr.mxu0 %v359_v8  ;;  %659 = vmatprep.subr.mxu1 %v361_v9  ;;  %v799_v7 = vld [vmem:[#allocation5 + $0x2f8] sm:$0xff]  ;;  %v734_v8 = vld [vmem:[#allocation5 + $0xf0] sm:$0xff] }
  0x9e   :  { %589 = vmatpush2.msra.mxu0 %v358_v10  ;;  %660 = vmatpush2.msra.mxu1 %v360_v11  ;;  %v798_v9 = vld [vmem:[#allocation5 + $0x2f0] sm:$0xff]  ;;  %v733_v10 = vld [vmem:[#allocation5 + $0xe8] sm:$0xff] }
  0x9f   :  { %590 = vmatprep.subr.mxu0 %v351_v12  ;;  %661 = vmatprep.subr.mxu1 %v353_v13  ;;  %v797_v11 = vld [vmem:[#allocation5 + $0x2e8] sm:$0xff]  ;;  %v732_v12 = vld [vmem:[#allocation5 + $0xe0] sm:$0xff] }
  0xa0   :  { %591 = vmatpush2.msra.mxu0 %v350_v14  ;;  %662 = vmatpush2.msra.mxu1 %v352_v15  ;;  %v796_v13 = vld [vmem:[#allocation5 + $0x2e0] sm:$0xff]  ;;  %v731_v14 = vld [vmem:[#allocation5 + $0xd8] sm:$0xff] }
  0xa1   :  { %592 = vmatprep.subr.mxu0 %v343_v16  ;;  %663 = vmatprep.subr.mxu1 %v345_v17  ;;  %v795_v15 = vld [vmem:[#allocation5 + $0x2d8] sm:$0xff]  ;;  %v730_v16 = vld [vmem:[#allocation5 + $0xd0] sm:$0xff]  ;;  %v729_v17 = vld [vmem:[#allocation5 + $0xc8] sm:$0xff] }
  0xa2   :  { %593 = vmatpush2.msra.mxu0 %v342_v18  ;;  %664 = vmatpush2.msra.mxu1 %v344_v19  ;;  %v793_v18 = vld [vmem:[#allocation5 + $0x2c8] sm:$0xff]  ;;  %v792_v19 = vld [vmem:[#allocation5 + $0x2c0] sm:$0xff] }
  0xa3   :  { %594 = vmatprep.subr.mxu0 %v335_v20  ;;  %665 = vmatprep.subr.mxu1 %v337_v21  ;;  %v727_v20 = vld [vmem:[#allocation5 + $0xb8] sm:$0xff] }
  0xa4   :  { %595 = vmatpush2.msra.mxu0 %v334_v22  ;;  %666 = vmatpush2.msra.mxu1 %v336_v23  ;;  %v791_v21 = vld [vmem:[#allocation5 + $0x2b8] sm:$0xff]  ;;  %v726_v22 = vld [vmem:[#allocation5 + $0xb0] sm:$0xff] }
  0xa5   :  { %596 = vmatprep.subr.mxu0 %v327_v24  ;;  %667 = vmatprep.subr.mxu1 %v329_v25  ;;  %v790_v23 = vld [vmem:[#allocation5 + $0x2b0] sm:$0xff]  ;;  %v725_v24 = vld [vmem:[#allocation5 + $0xa8] sm:$0xff] }
  0xa6   :  { %597 = vmatpush2.msra.mxu0 %v326_v26  ;;  %668 = vmatpush2.msra.mxu1 %v328_v27  ;;  %v789_v25 = vld [vmem:[#allocation5 + $0x2a8] sm:$0xff]  ;;  %v724_v26 = vld [vmem:[#allocation5 + $0xa0] sm:$0xff] }
  0xa7   :  { %598 = vmatprep.subr.mxu0 %v319_v28  ;;  %669 = vmatprep.subr.mxu1 %v321_v29  ;;  %v788_v27 = vld [vmem:[#allocation5 + $0x2a0] sm:$0xff]  ;;  %v723_v28 = vld [vmem:[#allocation5 + $0x98] sm:$0xff] }
  0xa8   :  { %599 = vmatpush2.msra.mxu0 %v318_v30  ;;  %670 = vmatpush2.msra.mxu1 %v320_v31  ;;  %v787_v29 = vld [vmem:[#allocation5 + $0x298] sm:$0xff]  ;;  %v722_v30 = vld [vmem:[#allocation5 + $0x90] sm:$0xff] }
  0xa9   :  { %600 = vmatprep.subr.mxu0 %v311_v32  ;;  %671 = vmatprep.subr.mxu1 %v313_v33  ;;  %v786_v31 = vld [vmem:[#allocation5 + $0x290] sm:$0xff]  ;;  %v721_v32 = vld [vmem:[#allocation5 + $0x88] sm:$0xff] }
  0xaa   :  { %601 = vmatpush2.msra.mxu0 %v310_v34  ;;  %672 = vmatpush2.msra.mxu1 %v312_v35  ;;  %v785_v33 = vld [vmem:[#allocation5 + $0x288] sm:$0xff]  ;;  %v720_v34 = vld [vmem:[#allocation5 + $0x80] sm:$0xff] }
  0xab   :  { %602 = vmatprep.subr.mxu0 %v303_v36  ;;  %673 = vmatprep.subr.mxu1 %v305_v37  ;;  %v784_v35 = vld [vmem:[#allocation5 + $0x280] sm:$0xff]  ;;  %v719_v36 = vld [vmem:[#allocation5 + $0x78] sm:$0xff] }
  0xac   :  { %603 = vmatpush2.msra.mxu0 %v302_v38  ;;  %674 = vmatpush2.msra.mxu1 %v304_v39  ;;  %v783_v37 = vld [vmem:[#allocation5 + $0x278] sm:$0xff]  ;;  %v718_v38 = vld [vmem:[#allocation5 + $0x70] sm:$0xff] }
  0xad   :  { %604 = vmatprep.subr.mxu0 %v295_v40  ;;  %675 = vmatprep.subr.mxu1 %v297_v41  ;;  %v782_v39 = vld [vmem:[#allocation5 + $0x270] sm:$0xff]  ;;  %v717_v40 = vld [vmem:[#allocation5 + $0x68] sm:$0xff] }
  0xae   :  { %605 = vmatpush2.msra.mxu0 %v294_v42  ;;  %676 = vmatpush2.msra.mxu1 %v296_v43  ;;  %v781_v41 = vld [vmem:[#allocation5 + $0x268] sm:$0xff]  ;;  %v716_v42 = vld [vmem:[#allocation5 + $0x60] sm:$0xff] }
  0xaf   :  { %606 = vmatprep.subr.mxu0 %v287_v44  ;;  %677 = vmatprep.subr.mxu1 %v289_v45  ;;  %v780_v43 = vld [vmem:[#allocation5 + $0x260] sm:$0xff]  ;;  %v715_v44 = vld [vmem:[#allocation5 + $0x58] sm:$0xff] }
  0xb0   :  { %607 = vmatpush2.msra.mxu0 %v286_v46  ;;  %678 = vmatpush2.msra.mxu1 %v288_v47  ;;  %v779_v45 = vld [vmem:[#allocation5 + $0x258] sm:$0xff]  ;;  %v714_v46 = vld [vmem:[#allocation5 + $0x50] sm:$0xff] }
  0xb1   :  { %608 = vmatprep.subr.mxu0 %v279_v48  ;;  %679 = vmatprep.subr.mxu1 %v281_v49  ;;  %v778_v47 = vld [vmem:[#allocation5 + $0x250] sm:$0xff]  ;;  %v713_v48 = vld [vmem:[#allocation5 + $0x48] sm:$0xff] }
  0xb2   :  { %609 = vmatpush2.msra.mxu0 %v278_v50  ;;  %680 = vmatpush2.msra.mxu1 %v280_v51  ;;  %v777_v49 = vld [vmem:[#allocation5 + $0x248] sm:$0xff]  ;;  %v712_v50 = vld [vmem:[#allocation5 + $0x40] sm:$0xff] }
  0xb3   :  { %610 = vmatprep.subr.mxu0 %v271_v52  ;;  %681 = vmatprep.subr.mxu1 %v273_v53  ;;  %v776_v51 = vld [vmem:[#allocation5 + $0x240] sm:$0xff]  ;;  %v711_v52 = vld [vmem:[#allocation5 + $0x38] sm:$0xff] }
  0xb4   :  { %611 = vmatpush2.msra.mxu0 %v270_v54  ;;  %682 = vmatpush2.msra.mxu1 %v272_v55  ;;  %v775_v53 = vld [vmem:[#allocation5 + $0x238] sm:$0xff]  ;;  %v710_v54 = vld [vmem:[#allocation5 + $0x30] sm:$0xff] }
  0xb5   :  { %612 = vmatprep.subr.mxu0 %v263_v56  ;;  %683 = vmatprep.subr.mxu1 %v265_v57  ;;  %v774_v55 = vld [vmem:[#allocation5 + $0x230] sm:$0xff]  ;;  %v709_v56 = vld [vmem:[#allocation5 + $0x28] sm:$0xff] }
  0xb6   :  { %613 = vmatpush2.msra.mxu0 %v262_v58  ;;  %684 = vmatpush2.msra.mxu1 %v264_v59  ;;  %v773_v57 = vld [vmem:[#allocation5 + $0x228] sm:$0xff]  ;;  %v708_v58 = vld [vmem:[#allocation5 + $0x20] sm:$0xff] }
  0xb7   :  { %614 = vmatprep.subr.mxu0 %v255_v60  ;;  %685 = vmatprep.subr.mxu1 %v257_v61  ;;  %v772_v59 = vld [vmem:[#allocation5 + $0x220] sm:$0xff]  ;;  %v707_v60 = vld [vmem:[#allocation5 + $0x18] sm:$0xff] }
  0xb8   :  { %615 = vmatpush2.msra.mxu0 %v254_v62  ;;  %686 = vmatpush2.msra.mxu1 %v256_v0  ;;  %v771_v61 = vld [vmem:[#allocation5 + $0x218] sm:$0xff]  ;;  %v706_v62 = vld [vmem:[#allocation5 + $0x10] sm:$0xff] }
  0xb9   :  { %616 = vmatprep.subr.mxu0 %v247_v2  ;;  %687 = vmatprep.subr.mxu1 %v249_v3  ;;  %v770_v0 = vld [vmem:[#allocation5 + $0x210] sm:$0xff]  ;;  %v705_v2 = vld [vmem:[#allocation5 + $0x8] sm:$0xff] }
  0xba   :  { %617 = vmatpush2.msra.mxu0 %v246_v4  ;;  %618 = vmatprep.mubr.f32.mxu0 %v3148_v63  ;;  %v769_v3 = vld [vmem:[#allocation5 + $0x208] sm:$0xff]  ;;  %v704_v4 = vld [vmem:[#allocation5] sm:$0xff] }
  0xbb   :  { %688 = vmatpush2.msra.mxu1 %v248_v5  ;;  %689 = vmatprep.mubr.f32.mxu1 %v3148_v63  ;;  %v794_v63 = vld [vmem:[#allocation5 + $0x2d0] sm:$0xff]  ;;  %v768_v5 = vld [vmem:[#allocation5 + $0x200] sm:$0xff] }
  0xbc   :  { %619 = vmatmul.mubr.f32.vlgmr.msra.gmra.mxu0 %v3153_v1  ;;  %690 = vmatmul.mubr.f32.vlgmr.msra.gmra.mxu1 %v3153_v1  ;;  %v728_v1 = vld [vmem:[#allocation5 + $0xc0] sm:$0xff] }
  0xbd   :  { %972 = vmatprep.subr.mxu0 %v735_v6  ;;  %1043 = vmatprep.subr.mxu1 %v799_v7  ;;  %v767_v6 = vld [vmem:[#allocation5 + $0x1f8] sm:$0xff] }
  0xbe   :  { %973 = vmatpush1.msra.mxu0 %v734_v8  ;;  %1044 = vmatpush1.msra.mxu1 %v798_v9  ;;  %v831_v7 = vld [vmem:[#allocation5 + $0x3f8] sm:$0xff]  ;;  %v766_v8 = vld [vmem:[#allocation5 + $0x1f0] sm:$0xff] }
  0xbf   :  { %974 = vmatprep.subr.mxu0 %v733_v10  ;;  %1045 = vmatprep.subr.mxu1 %v797_v11  ;;  %v830_v9 = vld [vmem:[#allocation5 + $0x3f0] sm:$0xff]  ;;  %v765_v10 = vld [vmem:[#allocation5 + $0x1e8] sm:$0xff] }
  0xc0   :  { %975 = vmatpush1.msra.mxu0 %v732_v12  ;;  %1046 = vmatpush1.msra.mxu1 %v796_v13  ;;  %v829_v11 = vld [vmem:[#allocation5 + $0x3e8] sm:$0xff]  ;;  %v764_v12 = vld [vmem:[#allocation5 + $0x1e0] sm:$0xff] }
  0xc1   :  { %976 = vmatprep.subr.mxu0 %v731_v14  ;;  %1047 = vmatprep.subr.mxu1 %v795_v15  ;;  %v828_v13 = vld [vmem:[#allocation5 + $0x3e0] sm:$0xff]  ;;  %v763_v14 = vld [vmem:[#allocation5 + $0x1d8] sm:$0xff] }
  0xc2   :  { %977 = vmatpush1.msra.mxu0 %v730_v16  ;;  %1048 = vmatpush1.msra.mxu1 %v794_v63  ;;  %v827_v15 = vld [vmem:[#allocation5 + $0x3d8] sm:$0xff]  ;;  %v762_v16 = vld [vmem:[#allocation5 + $0x1d0] sm:$0xff] }
  0xc3   :  { %978 = vmatprep.subr.mxu0 %v729_v17  ;;  %1049 = vmatprep.subr.mxu1 %v793_v18  ;;  %v826_v63 = vld [vmem:[#allocation5 + $0x3d0] sm:$0xff]  ;;  %v761_v17 = vld [vmem:[#allocation5 + $0x1c8] sm:$0xff] }
  0xc4   :  { %979 = vmatpush1.msra.mxu0 %v728_v1  ;;  %1050 = vmatpush1.msra.mxu1 %v792_v19  ;;  %v825_v18 = vld [vmem:[#allocation5 + $0x3c8] sm:$0xff]  ;;  %v760_v1 = vld [vmem:[#allocation5 + $0x1c0] sm:$0xff] }
  0xc5   :  { %980 = vmatprep.subr.mxu0 %v727_v20  ;;  %1051 = vmatprep.subr.mxu1 %v791_v21  ;;  %v824_v19 = vld [vmem:[#allocation5 + $0x3c0] sm:$0xff]  ;;  %v759_v20 = vld [vmem:[#allocation5 + $0x1b8] sm:$0xff] }
  0xc6   :  { %981 = vmatpush1.msra.mxu0 %v726_v22  ;;  %1052 = vmatpush1.msra.mxu1 %v790_v23  ;;  %v823_v21 = vld [vmem:[#allocation5 + $0x3b8] sm:$0xff]  ;;  %v758_v22 = vld [vmem:[#allocation5 + $0x1b0] sm:$0xff] }
  0xc7   :  { %982 = vmatprep.subr.mxu0 %v725_v24  ;;  %1053 = vmatprep.subr.mxu1 %v789_v25  ;;  %v822_v23 = vld [vmem:[#allocation5 + $0x3b0] sm:$0xff]  ;;  %v757_v24 = vld [vmem:[#allocation5 + $0x1a8] sm:$0xff] }
  0xc8   :  { %983 = vmatpush1.msra.mxu0 %v724_v26  ;;  %1054 = vmatpush1.msra.mxu1 %v788_v27  ;;  %v821_v25 = vld [vmem:[#allocation5 + $0x3a8] sm:$0xff]  ;;  %v756_v26 = vld [vmem:[#allocation5 + $0x1a0] sm:$0xff] }
  0xc9   :  { %984 = vmatprep.subr.mxu0 %v723_v28  ;;  %1055 = vmatprep.subr.mxu1 %v787_v29  ;;  %v820_v27 = vld [vmem:[#allocation5 + $0x3a0] sm:$0xff]  ;;  %v755_v28 = vld [vmem:[#allocation5 + $0x198] sm:$0xff] }
  0xca   :  { %985 = vmatpush1.msra.mxu0 %v722_v30  ;;  %1056 = vmatpush1.msra.mxu1 %v786_v31  ;;  %v819_v29 = vld [vmem:[#allocation5 + $0x398] sm:$0xff]  ;;  %v754_v30 = vld [vmem:[#allocation5 + $0x190] sm:$0xff] }
  0xcb   :  { %986 = vmatprep.subr.mxu0 %v721_v32  ;;  %1057 = vmatprep.subr.mxu1 %v785_v33  ;;  %v818_v31 = vld [vmem:[#allocation5 + $0x390] sm:$0xff]  ;;  %v753_v32 = vld [vmem:[#allocation5 + $0x188] sm:$0xff] }
  0xcc   :  { %987 = vmatpush1.msra.mxu0 %v720_v34  ;;  %1058 = vmatpush1.msra.mxu1 %v784_v35  ;;  %v817_v33 = vld [vmem:[#allocation5 + $0x388] sm:$0xff]  ;;  %v752_v34 = vld [vmem:[#allocation5 + $0x180] sm:$0xff] }
  0xcd   :  { %988 = vmatprep.subr.mxu0 %v719_v36  ;;  %1059 = vmatprep.subr.mxu1 %v783_v37  ;;  %v816_v35 = vld [vmem:[#allocation5 + $0x380] sm:$0xff]  ;;  %v751_v36 = vld [vmem:[#allocation5 + $0x178] sm:$0xff] }
  0xce   :  { %989 = vmatpush1.msra.mxu0 %v718_v38  ;;  %1060 = vmatpush1.msra.mxu1 %v782_v39  ;;  %v815_v37 = vld [vmem:[#allocation5 + $0x378] sm:$0xff]  ;;  %v750_v38 = vld [vmem:[#allocation5 + $0x170] sm:$0xff] }
  0xcf   :  { %990 = vmatprep.subr.mxu0 %v717_v40  ;;  %1061 = vmatprep.subr.mxu1 %v781_v41  ;;  %v814_v39 = vld [vmem:[#allocation5 + $0x370] sm:$0xff]  ;;  %v749_v40 = vld [vmem:[#allocation5 + $0x168] sm:$0xff] }
  0xd0   :  { %991 = vmatpush1.msra.mxu0 %v716_v42  ;;  %1062 = vmatpush1.msra.mxu1 %v780_v43  ;;  %v813_v41 = vld [vmem:[#allocation5 + $0x368] sm:$0xff]  ;;  %v748_v42 = vld [vmem:[#allocation5 + $0x160] sm:$0xff] }
  0xd1   :  { %992 = vmatprep.subr.mxu0 %v715_v44  ;;  %1063 = vmatprep.subr.mxu1 %v779_v45  ;;  %v812_v43 = vld [vmem:[#allocation5 + $0x360] sm:$0xff]  ;;  %v747_v44 = vld [vmem:[#allocation5 + $0x158] sm:$0xff] }
  0xd2   :  { %993 = vmatpush1.msra.mxu0 %v714_v46  ;;  %1064 = vmatpush1.msra.mxu1 %v778_v47  ;;  %v811_v45 = vld [vmem:[#allocation5 + $0x358] sm:$0xff]  ;;  %v746_v46 = vld [vmem:[#allocation5 + $0x150] sm:$0xff] }
  0xd3   :  { %994 = vmatprep.subr.mxu0 %v713_v48  ;;  %1065 = vmatprep.subr.mxu1 %v777_v49  ;;  %v810_v47 = vld [vmem:[#allocation5 + $0x350] sm:$0xff]  ;;  %v745_v48 = vld [vmem:[#allocation5 + $0x148] sm:$0xff] }
  0xd4   :  { %995 = vmatpush1.msra.mxu0 %v712_v50  ;;  %1066 = vmatpush1.msra.mxu1 %v776_v51  ;;  %v809_v49 = vld [vmem:[#allocation5 + $0x348] sm:$0xff]  ;;  %v744_v50 = vld [vmem:[#allocation5 + $0x140] sm:$0xff] }
  0xd5   :  { %996 = vmatprep.subr.mxu0 %v711_v52  ;;  %1067 = vmatprep.subr.mxu1 %v775_v53  ;;  %v808_v51 = vld [vmem:[#allocation5 + $0x340] sm:$0xff]  ;;  %v743_v52 = vld [vmem:[#allocation5 + $0x138] sm:$0xff] }
  0xd6   :  { %997 = vmatpush1.msra.mxu0 %v710_v54  ;;  %1068 = vmatpush1.msra.mxu1 %v774_v55  ;;  %v807_v53 = vld [vmem:[#allocation5 + $0x338] sm:$0xff]  ;;  %v742_v54 = vld [vmem:[#allocation5 + $0x130] sm:$0xff] }
  0xd7   :  { %998 = vmatprep.subr.mxu0 %v709_v56  ;;  %1069 = vmatprep.subr.mxu1 %v773_v57  ;;  %v806_v55 = vld [vmem:[#allocation5 + $0x330] sm:$0xff]  ;;  %v741_v56 = vld [vmem:[#allocation5 + $0x128] sm:$0xff] }
  0xd8   :  { %999 = vmatpush1.msra.mxu0 %v708_v58  ;;  %1070 = vmatpush1.msra.mxu1 %v772_v59  ;;  %v805_v57 = vld [vmem:[#allocation5 + $0x328] sm:$0xff]  ;;  %v740_v58 = vld [vmem:[#allocation5 + $0x120] sm:$0xff] }
  0xd9   :  { %1000 = vmatprep.subr.mxu0 %v707_v60  ;;  %1071 = vmatprep.subr.mxu1 %v771_v61  ;;  %v804_v59 = vld [vmem:[#allocation5 + $0x320] sm:$0xff]  ;;  %v739_v60 = vld [vmem:[#allocation5 + $0x118] sm:$0xff] }
  0xda   :  { %1001 = vmatpush1.msra.mxu0 %v706_v62  ;;  %1072 = vmatpush1.msra.mxu1 %v770_v0  ;;  %v803_v61 = vld [vmem:[#allocation5 + $0x318] sm:$0xff]  ;;  %v738_v62 = vld [vmem:[#allocation5 + $0x110] sm:$0xff] }
  0xdb   :  { %1002 = vmatprep.subr.mxu0 %v705_v2  ;;  %1073 = vmatprep.subr.mxu1 %v769_v3  ;;  %v802_v0 = vld [vmem:[#allocation5 + $0x310] sm:$0xff]  ;;  %v737_v2 = vld [vmem:[#allocation5 + $0x108] sm:$0xff] }
  0xdc   :  { %1003 = vmatpush1.msra.mxu0 %v704_v4  ;;  %1074 = vmatpush1.msra.mxu1 %v768_v5  ;;  %v801_v3 = vld [vmem:[#allocation5 + $0x308] sm:$0xff]  ;;  %v736_v4 = vld [vmem:[#allocation5 + $0x100] sm:$0xff] }
  0xdd   :  { %1004 = vmatprep.subr.mxu0 %v767_v6  ;;  %1075 = vmatprep.subr.mxu1 %v831_v7  ;;  %v800_v5 = vld [vmem:[#allocation5 + $0x300] sm:$0xff]  ;;  %v863_v6 = vld [vmem:[#allocation5 + $0x4f8] sm:$0xff] }
  0xde   :  { %1005 = vmatpush2.msra.mxu0 %v766_v8  ;;  %1076 = vmatpush2.msra.mxu1 %v830_v9  ;;  %v927_v7 = vld [vmem:[#allocation5 + $0x6f8] sm:$0xff]  ;;  %v372_v8 = vlaneseq }
  0xdf   :  { %1006 = vmatprep.subr.mxu0 %v765_v10  ;;  %1077 = vmatprep.subr.mxu1 %v829_v11 }
  0xe0   :  { %1007 = vmatpush2.msra.mxu0 %v764_v12  ;;  %1078 = vmatpush2.msra.mxu1 %v828_v13  ;;  %v3163_v9 = vshrl.u32 %v372_v8, 7  ;;  %v3172_v12 = vld [vmem:[%s3455_s2] sm:$0xff]  ;;  %v906_v8 = vld [vmem:[#allocation5 + $0x650] sm:$0xff] }
  0xe1   :  { %1008 = vmatprep.subr.mxu0 %v763_v14  ;;  %1079 = vmatprep.subr.mxu1 %v827_v15 }
  0xe2   :  { %1009 = vmatpush2.msra.mxu0 %v762_v16  ;;  %1080 = vmatpush2.msra.mxu1 %v826_v63  ;;  %v382_v10 = vsub.s32 2, %v3163_v9  ;;  %v3167_v11 = vsub.s32 0, %v3163_v9  ;;  %v3175_v13 = vsub.s32 1, %v3163_v9  ;;  %v386_v14 = vsub.s32 3, %v3163_v9 }
  0xe3   :  { %1010 = vmatprep.subr.mxu0 %v761_v17  ;;  %1081 = vmatprep.subr.mxu1 %v825_v18 }
  0xe4   :  { %1011 = vmatpush2.msra.mxu0 %v760_v1  ;;  %1082 = vmatpush2.msra.mxu1 %v824_v19  ;;  %v383_v15 = vrot.slane %v3172_v12, %v382_v10  ;;  %v375_v16 = vrot.slane %v3172_v12, %v3167_v11  ;;  %v379_v63 = vrot.slane %v3172_v12, %v3175_v13 }
  0xe5   :  { %1012 = vmatprep.subr.mxu0 %v759_v20  ;;  %1083 = vmatprep.subr.mxu1 %v823_v21  ;;  %v387_v17 = vrot.slane %v3172_v12, %v386_v14 }
  0xe6   :  { %1013 = vmatpush2.msra.mxu0 %v758_v22  ;;  %1084 = vmatpush2.msra.mxu1 %v822_v23 }
  0xe7   :  { %1014 = vmatprep.subr.mxu0 %v757_v24  ;;  %1085 = vmatprep.subr.mxu1 %v821_v25 }
  0xe8   :  { %1015 = vmatpush2.msra.mxu0 %v756_v26  ;;  %1086 = vmatpush2.msra.mxu1 %v820_v27 }
  0xe9   :  { %1016 = vmatprep.subr.mxu0 %v755_v28  ;;  %1087 = vmatprep.subr.mxu1 %v819_v29  ;;  %v862_v29 = vld [vmem:[#allocation5 + $0x4f0] sm:$0xff] }
  0xea   :  { %1017 = vmatpush2.msra.mxu0 %v754_v30  ;;  %1088 = vmatpush2.msra.mxu1 %v818_v31  ;;  %v926_v30 = vld [vmem:[#allocation5 + $0x6f0] sm:$0xff]  ;;  %v861_v31 = vld [vmem:[#allocation5 + $0x4e8] sm:$0xff] }
  0xeb   :  { %1018 = vmatprep.subr.mxu0 %v753_v32  ;;  %1089 = vmatprep.subr.mxu1 %v817_v33  ;;  %v925_v32 = vld [vmem:[#allocation5 + $0x6e8] sm:$0xff]  ;;  %v860_v33 = vld [vmem:[#allocation5 + $0x4e0] sm:$0xff] }
  0xec   :  { %1019 = vmatpush2.msra.mxu0 %v752_v34  ;;  %1090 = vmatpush2.msra.mxu1 %v816_v35  ;;  %v924_v34 = vld [vmem:[#allocation5 + $0x6e0] sm:$0xff]  ;;  %v859_v35 = vld [vmem:[#allocation5 + $0x4d8] sm:$0xff] }
  0xed   :  { %1020 = vmatprep.subr.mxu0 %v751_v36  ;;  %1091 = vmatprep.subr.mxu1 %v815_v37  ;;  %v923_v36 = vld [vmem:[#allocation5 + $0x6d8] sm:$0xff]  ;;  %v858_v37 = vld [vmem:[#allocation5 + $0x4d0] sm:$0xff] }
  0xee   :  { %1021 = vmatpush2.msra.mxu0 %v750_v38  ;;  %1092 = vmatpush2.msra.mxu1 %v814_v39  ;;  %v922_v38 = vld [vmem:[#allocation5 + $0x6d0] sm:$0xff]  ;;  %v857_v39 = vld [vmem:[#allocation5 + $0x4c8] sm:$0xff] }
  0xef   :  { %1022 = vmatprep.subr.mxu0 %v749_v40  ;;  %1093 = vmatprep.subr.mxu1 %v813_v41  ;;  %v921_v40 = vld [vmem:[#allocation5 + $0x6c8] sm:$0xff]  ;;  %v856_v41 = vld [vmem:[#allocation5 + $0x4c0] sm:$0xff] }
  0xf0   :  { %1023 = vmatpush2.msra.mxu0 %v748_v42  ;;  %1094 = vmatpush2.msra.mxu1 %v812_v43  ;;  %v920_v42 = vld [vmem:[#allocation5 + $0x6c0] sm:$0xff]  ;;  %v855_v43 = vld [vmem:[#allocation5 + $0x4b8] sm:$0xff] }
  0xf1   :  { %1024 = vmatprep.subr.mxu0 %v747_v44  ;;  %1095 = vmatprep.subr.mxu1 %v811_v45  ;;  %v919_v44 = vld [vmem:[#allocation5 + $0x6b8] sm:$0xff]  ;;  %v854_v45 = vld [vmem:[#allocation5 + $0x4b0] sm:$0xff] }
  0xf2   :  { %1025 = vmatpush2.msra.mxu0 %v746_v46  ;;  %1096 = vmatpush2.msra.mxu1 %v810_v47  ;;  %v918_v46 = vld [vmem:[#allocation5 + $0x6b0] sm:$0xff]  ;;  %v853_v47 = vld [vmem:[#allocation5 + $0x4a8] sm:$0xff] }
  0xf3   :  { %1026 = vmatprep.subr.mxu0 %v745_v48  ;;  %1097 = vmatprep.subr.mxu1 %v809_v49  ;;  %v917_v48 = vld [vmem:[#allocation5 + $0x6a8] sm:$0xff]  ;;  %v852_v49 = vld [vmem:[#allocation5 + $0x4a0] sm:$0xff] }
  0xf4   :  { %1027 = vmatpush2.msra.mxu0 %v744_v50  ;;  %1098 = vmatpush2.msra.mxu1 %v808_v51  ;;  %v916_v50 = vld [vmem:[#allocation5 + $0x6a0] sm:$0xff]  ;;  %v851_v51 = vld [vmem:[#allocation5 + $0x498] sm:$0xff] }
  0xf5   :  { %1028 = vmatprep.subr.mxu0 %v743_v52  ;;  %1099 = vmatprep.subr.mxu1 %v807_v53  ;;  %v915_v52 = vld [vmem:[#allocation5 + $0x698] sm:$0xff]  ;;  %v850_v53 = vld [vmem:[#allocation5 + $0x490] sm:$0xff] }
  0xf6   :  { %1029 = vmatpush2.msra.mxu0 %v742_v54  ;;  %1100 = vmatpush2.msra.mxu1 %v806_v55  ;;  %v914_v54 = vld [vmem:[#allocation5 + $0x690] sm:$0xff]  ;;  %v849_v55 = vld [vmem:[#allocation5 + $0x488] sm:$0xff] }
  0xf7   :  { %1030 = vmatprep.subr.mxu0 %v741_v56  ;;  %1101 = vmatprep.subr.mxu1 %v805_v57  ;;  %v913_v56 = vld [vmem:[#allocation5 + $0x688] sm:$0xff]  ;;  %v848_v57 = vld [vmem:[#allocation5 + $0x480] sm:$0xff] }
  0xf8   :  { %1031 = vmatpush2.msra.mxu0 %v740_v58  ;;  %1102 = vmatpush2.msra.mxu1 %v804_v59  ;;  %v912_v58 = vld [vmem:[#allocation5 + $0x680] sm:$0xff]  ;;  %v847_v59 = vld [vmem:[#allocation5 + $0x478] sm:$0xff] }
  0xf9   :  { %1032 = vmatprep.subr.mxu0 %v739_v60  ;;  %1103 = vmatprep.subr.mxu1 %v803_v61  ;;  %v911_v60 = vld [vmem:[#allocation5 + $0x678] sm:$0xff]  ;;  %v846_v61 = vld [vmem:[#allocation5 + $0x470] sm:$0xff] }
  0xfa   :  { %1033 = vmatpush2.msra.mxu0 %v738_v62  ;;  %1104 = vmatpush2.msra.mxu1 %v802_v0  ;;  %v910_v62 = vld [vmem:[#allocation5 + $0x670] sm:$0xff]  ;;  %v845_v0 = vld [vmem:[#allocation5 + $0x468] sm:$0xff] }
  0xfb   :  { %1034 = vmatprep.subr.mxu0 %v737_v2  ;;  %1105 = vmatprep.subr.mxu1 %v801_v3  ;;  %v909_v2 = vld [vmem:[#allocation5 + $0x668] sm:$0xff]  ;;  %v844_v3 = vld [vmem:[#allocation5 + $0x460] sm:$0xff] }
  0xfc   :  { %1035 = vmatpush2.msra.mxu0 %v736_v4  ;;  %1106 = vmatpush2.msra.mxu1 %v800_v5  ;;  %v908_v4 = vld [vmem:[#allocation5 + $0x660] sm:$0xff]  ;;  %v843_v5 = vld [vmem:[#allocation5 + $0x458] sm:$0xff] }
  0xfd   :  { %1114 = vmatprep.subr.mxu0 %v863_v6  ;;  %1185 = vmatprep.subr.mxu1 %v927_v7  ;;  %v907_v6 = vld [vmem:[#allocation5 + $0x658] sm:$0xff]  ;;  %v842_v7 = vld [vmem:[#allocation5 + $0x450] sm:$0xff] }
 0x13a   :  { %v478_v18 = vpop.f32.mrf.mxu0  ;;  %v549_v1 = vpop.f32.mrf.mxu1 }
 0x13b   :  { %v550_v19 = vadd.f32 %v549_v1, %v383_v15  ;;  %v479_v20 = vadd.f32 %v478_v18, %v375_v16  ;;  %v841_v15 = vld [vmem:[#allocation5 + $0x448] sm:$0xff]  ;;  %v839_v18 = vld [vmem:[#allocation5 + $0x438] sm:$0xff] }
 0x13c   :  { %v480_v21 = vpop.f32.mrf.mxu0  ;;  %v551_v22 = vpop.f32.mrf.mxu1  ;;  %v905_v16 = vld [vmem:[#allocation5 + $0x648] sm:$0xff]  ;;  %v903_v1 = vld [vmem:[#allocation5 + $0x638] sm:$0xff] }
 0x13d   :  { %v481_v23 = vadd.f32 %v480_v21, %v379_v63  ;;  %v552_v24 = vadd.f32 %v551_v22, %v387_v17  ;;  %v698_v25 = vmax.f32 %v550_v19, 0.0  ;;  %v696_v28 = vmax.f32 %v479_v20, 0.0  ;;  %v840_v63 = vld [vmem:[#allocation5 + $0x440] sm:$0xff]  ;;  %v838_v19 = vld [vmem:[#allocation5 + $0x430] sm:$0xff]  ;;  %v837_v21 = vld [vmem:[#allocation5 + $0x428] sm:$0xff] }
 0x13e   :  { %v904_v17 = vld [vmem:[#allocation5 + $0x640] sm:$0xff]  ;;  %v902_v20 = vld [vmem:[#allocation5 + $0x630] sm:$0xff]  ;;  %v901_v22 = vld [vmem:[#allocation5 + $0x628] sm:$0xff] }
 0x13f   :  { %v697_v26 = vmax.f32 %v481_v23, 0.0  ;;  %v699_v27 = vmax.f32 %v552_v24, 0.0  ;;  %v836_v23 = vld [vmem:[#allocation5 + $0x420] sm:$0xff] }
 0x140   :  { %v900_v24 = vld [vmem:[#allocation5 + $0x620] sm:$0xff] }
 0x141   :  { %1036 = vmatprep.mubr.f32.mxu0 %v697_v26  ;;  %1107 = vmatprep.mubr.f32.mxu1 %v699_v27  ;;  %v899_v26 = vld [vmem:[#allocation5 + $0x618] sm:$0xff]  ;;  %v834_v27 = vld [vmem:[#allocation5 + $0x410] sm:$0xff] }
 0x142   :  { %1037 = vmatmul.mubr.f32.vlgmr.msra.gmra.mxu0 %v696_v28  ;;  %1108 = vmatmul.mubr.f32.vlgmr.msra.gmra.mxu1 %v698_v25  ;;  %v835_v25 = vld [vmem:[#allocation5 + $0x418] sm:$0xff]  ;;  %v898_v28 = vld [vmem:[#allocation5 + $0x610] sm:$0xff] }
 0x143   :  { %1115 = vmatpush1.msra.mxu0 %v862_v29  ;;  %1186 = vmatpush1.msra.mxu1 %v926_v30  ;;  %v833_v29 = vld [vmem:[#allocation5 + $0x408] sm:$0xff] }
 0x144   :  { %1116 = vmatprep.subr.mxu0 %v861_v31  ;;  %1187 = vmatprep.subr.mxu1 %v925_v32  ;;  %v897_v30 = vld [vmem:[#allocation5 + $0x608] sm:$0xff]  ;;  %v832_v31 = vld [vmem:[#allocation5 + $0x400] sm:$0xff] }
 0x145   :  { %1117 = vmatpush1.msra.mxu0 %v860_v33  ;;  %1188 = vmatpush1.msra.mxu1 %v924_v34  ;;  %v896_v32 = vld [vmem:[#allocation5 + $0x600] sm:$0xff]  ;;  %v895_v33 = vld [vmem:[#allocation5 + $0x5f8] sm:$0xff] }
 0x146   :  { %1118 = vmatprep.subr.mxu0 %v859_v35  ;;  %1189 = vmatprep.subr.mxu1 %v923_v36  ;;  %v959_v34 = vld [vmem:[#allocation5 + $0x7f8] sm:$0xff]  ;;  %v894_v35 = vld [vmem:[#allocation5 + $0x5f0] sm:$0xff] }
 0x147   :  { %1119 = vmatpush1.msra.mxu0 %v858_v37  ;;  %1190 = vmatpush1.msra.mxu1 %v922_v38  ;;  %v958_v36 = vld [vmem:[#allocation5 + $0x7f0] sm:$0xff]  ;;  %v893_v37 = vld [vmem:[#allocation5 + $0x5e8] sm:$0xff] }
 0x148   :  { %1120 = vmatprep.subr.mxu0 %v857_v39  ;;  %1191 = vmatprep.subr.mxu1 %v921_v40  ;;  %v957_v38 = vld [vmem:[#allocation5 + $0x7e8] sm:$0xff]  ;;  %v892_v39 = vld [vmem:[#allocation5 + $0x5e0] sm:$0xff] }
 0x149   :  { %1121 = vmatpush1.msra.mxu0 %v856_v41  ;;  %1192 = vmatpush1.msra.mxu1 %v920_v42  ;;  %v956_v40 = vld [vmem:[#allocation5 + $0x7e0] sm:$0xff]  ;;  %v891_v41 = vld [vmem:[#allocation5 + $0x5d8] sm:$0xff] }
 0x14a   :  { %1122 = vmatprep.subr.mxu0 %v855_v43  ;;  %1193 = vmatprep.subr.mxu1 %v919_v44  ;;  %v955_v42 = vld [vmem:[#allocation5 + $0x7d8] sm:$0xff]  ;;  %v890_v43 = vld [vmem:[#allocation5 + $0x5d0] sm:$0xff] }
 0x14b   :  { %1123 = vmatpush1.msra.mxu0 %v854_v45  ;;  %1194 = vmatpush1.msra.mxu1 %v918_v46  ;;  %v954_v44 = vld [vmem:[#allocation5 + $0x7d0] sm:$0xff]  ;;  %v889_v45 = vld [vmem:[#allocation5 + $0x5c8] sm:$0xff] }
 0x14c   :  { %1124 = vmatprep.subr.mxu0 %v853_v47  ;;  %1195 = vmatprep.subr.mxu1 %v917_v48  ;;  %v953_v46 = vld [vmem:[#allocation5 + $0x7c8] sm:$0xff]  ;;  %v888_v47 = vld [vmem:[#allocation5 + $0x5c0] sm:$0xff] }
 0x14d   :  { %1125 = vmatpush1.msra.mxu0 %v852_v49  ;;  %1196 = vmatpush1.msra.mxu1 %v916_v50  ;;  %v952_v48 = vld [vmem:[#allocation5 + $0x7c0] sm:$0xff]  ;;  %v887_v49 = vld [vmem:[#allocation5 + $0x5b8] sm:$0xff] }
 0x14e   :  { %1126 = vmatprep.subr.mxu0 %v851_v51  ;;  %1197 = vmatprep.subr.mxu1 %v915_v52  ;;  %v951_v50 = vld [vmem:[#allocation5 + $0x7b8] sm:$0xff]  ;;  %v886_v51 = vld [vmem:[#allocation5 + $0x5b0] sm:$0xff] }
 0x14f   :  { %1127 = vmatpush1.msra.mxu0 %v850_v53  ;;  %1198 = vmatpush1.msra.mxu1 %v914_v54  ;;  %v950_v52 = vld [vmem:[#allocation5 + $0x7b0] sm:$0xff]  ;;  %v885_v53 = vld [vmem:[#allocation5 + $0x5a8] sm:$0xff] }
 0x150   :  { %1128 = vmatprep.subr.mxu0 %v849_v55  ;;  %1199 = vmatprep.subr.mxu1 %v913_v56  ;;  %v949_v54 = vld [vmem:[#allocation5 + $0x7a8] sm:$0xff]  ;;  %v884_v55 = vld [vmem:[#allocation5 + $0x5a0] sm:$0xff] }
 0x151   :  { %1129 = vmatpush1.msra.mxu0 %v848_v57  ;;  %1200 = vmatpush1.msra.mxu1 %v912_v58  ;;  %v948_v56 = vld [vmem:[#allocation5 + $0x7a0] sm:$0xff]  ;;  %v883_v57 = vld [vmem:[#allocation5 + $0x598] sm:$0xff] }
 0x152   :  { %1130 = vmatprep.subr.mxu0 %v847_v59  ;;  %1201 = vmatprep.subr.mxu1 %v911_v60  ;;  %v947_v58 = vld [vmem:[#allocation5 + $0x798] sm:$0xff]  ;;  %v882_v59 = vld [vmem:[#allocation5 + $0x590] sm:$0xff] }
 0x153   :  { %1131 = vmatpush1.msra.mxu0 %v846_v61  ;;  %1202 = vmatpush1.msra.mxu1 %v910_v62  ;;  %v946_v60 = vld [vmem:[#allocation5 + $0x790] sm:$0xff]  ;;  %v881_v61 = vld [vmem:[#allocation5 + $0x588] sm:$0xff] }
 0x154   :  { %1132 = vmatprep.subr.mxu0 %v845_v0  ;;  %1203 = vmatprep.subr.mxu1 %v909_v2  ;;  %v945_v62 = vld [vmem:[#allocation5 + $0x788] sm:$0xff]  ;;  %v880_v0 = vld [vmem:[#allocation5 + $0x580] sm:$0xff] }
 0x155   :  { %1133 = vmatpush1.msra.mxu0 %v844_v3  ;;  %1204 = vmatpush1.msra.mxu1 %v908_v4  ;;  %v944_v2 = vld [vmem:[#allocation5 + $0x780] sm:$0xff]  ;;  %v879_v3 = vld [vmem:[#allocation5 + $0x578] sm:$0xff] }
 0x156   :  { %1134 = vmatprep.subr.mxu0 %v843_v5  ;;  %1205 = vmatprep.subr.mxu1 %v907_v6  ;;  %v943_v4 = vld [vmem:[#allocation5 + $0x778] sm:$0xff]  ;;  %v878_v5 = vld [vmem:[#allocation5 + $0x570] sm:$0xff] }
 0x157   :  { %1135 = vmatpush1.msra.mxu0 %v842_v7  ;;  %1206 = vmatpush1.msra.mxu1 %v906_v8  ;;  %v942_v6 = vld [vmem:[#allocation5 + $0x770] sm:$0xff]  ;;  %v877_v7 = vld [vmem:[#allocation5 + $0x568] sm:$0xff] }
 0x158   :  { %1136 = vmatprep.subr.mxu0 %v841_v15  ;;  %1207 = vmatprep.subr.mxu1 %v905_v16  ;;  %v941_v8 = vld [vmem:[#allocation5 + $0x768] sm:$0xff]  ;;  %v876_v15 = vld [vmem:[#allocation5 + $0x560] sm:$0xff] }
 0x159   :  { %1137 = vmatpush1.msra.mxu0 %v840_v63  ;;  %1208 = vmatpush1.msra.mxu1 %v904_v17  ;;  %v940_v16 = vld [vmem:[#allocation5 + $0x760] sm:$0xff]  ;;  %v875_v63 = vld [vmem:[#allocation5 + $0x558] sm:$0xff] }
 0x15a   :  { %1138 = vmatprep.subr.mxu0 %v839_v18  ;;  %1209 = vmatprep.subr.mxu1 %v903_v1  ;;  %v939_v17 = vld [vmem:[#allocation5 + $0x758] sm:$0xff]  ;;  %v874_v18 = vld [vmem:[#allocation5 + $0x550] sm:$0xff] }
 0x15b   :  { %1139 = vmatpush1.msra.mxu0 %v838_v19  ;;  %1210 = vmatpush1.msra.mxu1 %v902_v20  ;;  %v938_v1 = vld [vmem:[#allocation5 + $0x750] sm:$0xff]  ;;  %v873_v19 = vld [vmem:[#allocation5 + $0x548] sm:$0xff] }
 0x15c   :  { %1140 = vmatprep.subr.mxu0 %v837_v21  ;;  %1211 = vmatprep.subr.mxu1 %v901_v22  ;;  %v937_v20 = vld [vmem:[#allocation5 + $0x748] sm:$0xff]  ;;  %v398_v21 = vsub.s32 6, %v3163_v9  ;;  %v872_v22 = vld [vmem:[#allocation5 + $0x540] sm:$0xff] }
 0x15d   :  { %1141 = vmatpush1.msra.mxu0 %v836_v23  ;;  %1212 = vmatpush1.msra.mxu1 %v900_v24  ;;  %v936_v23 = vld [vmem:[#allocation5 + $0x740] sm:$0xff]  ;;  %v390_v24 = vsub.s32 4, %v3163_v9 }
 0x15e   :  { %1142 = vmatprep.subr.mxu0 %v835_v25  ;;  %1213 = vmatprep.subr.mxu1 %v899_v26  ;;  %v871_v25 = vld [vmem:[#allocation5 + $0x538] sm:$0xff] }
 0x15f   :  { %1143 = vmatpush1.msra.mxu0 %v834_v27  ;;  %1214 = vmatpush1.msra.mxu1 %v898_v28  ;;  %v935_v26 = vld [vmem:[#allocation5 + $0x738] sm:$0xff]  ;;  %v394_v27 = vsub.s32 5, %v3163_v9  ;;  %v402_v28 = vsub.s32 7, %v3163_v9  ;;  %v2396_v9 = vld [vmem:[#allocation8 + $0x508] sm:$0xff] }
 0x160   :  { %1144 = vmatprep.subr.mxu0 %v833_v29  ;;  %1215 = vmatprep.subr.mxu1 %v897_v30  ;;  %v870_v29 = vld [vmem:[#allocation5 + $0x530] sm:$0xff] }
 0x161   :  { %1145 = vmatpush1.msra.mxu0 %v832_v31  ;;  %1216 = vmatpush1.msra.mxu1 %v896_v32  ;;  %v934_v30 = vld [vmem:[#allocation5 + $0x730] sm:$0xff]  ;;  %v399_v31 = vrot.slane %v3172_v12, %v398_v21  ;;  %v869_v32 = vld [vmem:[#allocation5 + $0x528] sm:$0xff] }
 0x162   :  { %1146 = vmatprep.subr.mxu0 %v895_v33  ;;  %1217 = vmatprep.subr.mxu1 %v959_v34  ;;  %v933_v33 = vld [vmem:[#allocation5 + $0x728] sm:$0xff]  ;;  %v391_v34 = vrot.slane %v3172_v12, %v390_v24 }
 0x163   :  { %1147 = vmatpush2.msra.mxu0 %v894_v35  ;;  %1218 = vmatpush2.msra.mxu1 %v958_v36  ;;  %v868_v35 = vld [vmem:[#allocation5 + $0x520] sm:$0xff] }
 0x164   :  { %1148 = vmatprep.subr.mxu0 %v893_v37  ;;  %1219 = vmatprep.subr.mxu1 %v957_v38  ;;  %v932_v36 = vld [vmem:[#allocation5 + $0x720] sm:$0xff]  ;;  %v395_v37 = vrot.slane %v3172_v12, %v394_v27  ;;  %v403_v38 = vrot.slane %v3172_v12, %v402_v28 }
 0x165   :  { %1149 = vmatpush2.msra.mxu0 %v892_v39  ;;  %1220 = vmatpush2.msra.mxu1 %v956_v40  ;;  %v867_v39 = vld [vmem:[#allocation5 + $0x518] sm:$0xff]  ;;  %v928_v12 = vld [vmem:[#allocation5 + $0x700] sm:$0xff] }
 0x166   :  { %1150 = vmatprep.subr.mxu0 %v891_v41  ;;  %1221 = vmatprep.subr.mxu1 %v955_v42  ;;  %v931_v40 = vld [vmem:[#allocation5 + $0x718] sm:$0xff] }
 0x167   :  { %1151 = vmatpush2.msra.mxu0 %v890_v43  ;;  %1222 = vmatpush2.msra.mxu1 %v954_v44  ;;  %v866_v43 = vld [vmem:[#allocation5 + $0x510] sm:$0xff] }
 0x168   :  { %1152 = vmatprep.subr.mxu0 %v889_v45  ;;  %1223 = vmatprep.subr.mxu1 %v953_v46  ;;  %v930_v44 = vld [vmem:[#allocation5 + $0x710] sm:$0xff]  ;;  %v865_v46 = vld [vmem:[#allocation5 + $0x508] sm:$0xff] }
 0x169   :  { %1153 = vmatpush2.msra.mxu0 %v888_v47  ;;  %1224 = vmatpush2.msra.mxu1 %v952_v48  ;;  %v929_v47 = vld [vmem:[#allocation5 + $0x708] sm:$0xff] }
 0x16a   :  { %1154 = vmatprep.subr.mxu0 %v887_v49  ;;  %1225 = vmatprep.subr.mxu1 %v951_v50 }
 0x16b   :  { %1155 = vmatpush2.msra.mxu0 %v886_v51  ;;  %1226 = vmatpush2.msra.mxu1 %v950_v52  ;;  %v864_v51 = vld [vmem:[#allocation5 + $0x500] sm:$0xff] }
 0x16c   :  { %1156 = vmatprep.subr.mxu0 %v885_v53  ;;  %1227 = vmatprep.subr.mxu1 %v949_v54 }
 0x16d   :  { %1157 = vmatpush2.msra.mxu0 %v884_v55  ;;  %1228 = vmatpush2.msra.mxu1 %v948_v56 }
 0x16e   :  { %1158 = vmatprep.subr.mxu0 %v883_v57  ;;  %1229 = vmatprep.subr.mxu1 %v947_v58  ;;  %v1289_v58 = vld [vmem:[%s3458_s5 + $0xf8] sm:$0xff] }
 0x16f   :  { %1159 = vmatpush2.msra.mxu0 %v882_v59  ;;  %1230 = vmatpush2.msra.mxu1 %v946_v60  ;;  %v1273_v59 = vld [vmem:[%s3458_s5 + $0x78] sm:$0xff]  ;;  %v1288_v60 = vld [vmem:[%s3458_s5 + $0xf0] sm:$0xff] }
 0x170   :  { %1160 = vmatprep.subr.mxu0 %v881_v61  ;;  %1231 = vmatprep.subr.mxu1 %v945_v62  ;;  %v1272_v61 = vld [vmem:[%s3458_s5 + $0x70] sm:$0xff]  ;;  %v1287_v62 = vld [vmem:[%s3458_s5 + $0xe8] sm:$0xff] }
 0x171   :  { %1161 = vmatpush2.msra.mxu0 %v880_v0  ;;  %1232 = vmatpush2.msra.mxu1 %v944_v2  ;;  %v1271_v0 = vld [vmem:[%s3458_s5 + $0x68] sm:$0xff]  ;;  %v1286_v2 = vld [vmem:[%s3458_s5 + $0xe0] sm:$0xff] }
 0x172   :  { %1162 = vmatprep.subr.mxu0 %v879_v3  ;;  %1233 = vmatprep.subr.mxu1 %v943_v4  ;;  %v1270_v3 = vld [vmem:[%s3458_s5 + $0x60] sm:$0xff]  ;;  %v1285_v4 = vld [vmem:[%s3458_s5 + $0xd8] sm:$0xff] }
 0x173   :  { %1163 = vmatpush2.msra.mxu0 %v878_v5  ;;  %1234 = vmatpush2.msra.mxu1 %v942_v6  ;;  %v1269_v5 = vld [vmem:[%s3458_s5 + $0x58] sm:$0xff]  ;;  %v1284_v6 = vld [vmem:[%s3458_s5 + $0xd0] sm:$0xff] }
 0x174   :  { %1164 = vmatprep.subr.mxu0 %v877_v7  ;;  %1235 = vmatprep.subr.mxu1 %v941_v8  ;;  %v1268_v7 = vld [vmem:[%s3458_s5 + $0x50] sm:$0xff]  ;;  %v1283_v8 = vld [vmem:[%s3458_s5 + $0xc8] sm:$0xff] }
 0x175   :  { %1165 = vmatpush2.msra.mxu0 %v876_v15  ;;  %1236 = vmatpush2.msra.mxu1 %v940_v16  ;;  %v1267_v15 = vld [vmem:[%s3458_s5 + $0x48] sm:$0xff]  ;;  %v1282_v16 = vld [vmem:[%s3458_s5 + $0xc0] sm:$0xff] }
 0x176   :  { %1166 = vmatprep.subr.mxu0 %v875_v63  ;;  %1237 = vmatprep.subr.mxu1 %v939_v17  ;;  %v1266_v63 = vld [vmem:[%s3458_s5 + $0x40] sm:$0xff]  ;;  %v1281_v17 = vld [vmem:[%s3458_s5 + $0xb8] sm:$0xff] }
 0x177   :  { %1167 = vmatpush2.msra.mxu0 %v874_v18  ;;  %1238 = vmatpush2.msra.mxu1 %v938_v1  ;;  %v1265_v18 = vld [vmem:[%s3458_s5 + $0x38] sm:$0xff]  ;;  %v1280_v1 = vld [vmem:[%s3458_s5 + $0xb0] sm:$0xff] }
 0x178   :  { %1168 = vmatprep.subr.mxu0 %v873_v19  ;;  %1239 = vmatprep.subr.mxu1 %v937_v20  ;;  %v1264_v19 = vld [vmem:[%s3458_s5 + $0x30] sm:$0xff]  ;;  %v1279_v20 = vld [vmem:[%s3458_s5 + $0xa8] sm:$0xff] }
 0x179   :  { %1169 = vmatpush2.msra.mxu0 %v872_v22  ;;  %1240 = vmatpush2.msra.mxu1 %v936_v23  ;;  %v1263_v22 = vld [vmem:[%s3458_s5 + $0x28] sm:$0xff]  ;;  %v1278_v23 = vld [vmem:[%s3458_s5 + $0xa0] sm:$0xff] }
 0x17a   :  { %1170 = vmatprep.subr.mxu0 %v871_v25  ;;  %1241 = vmatprep.subr.mxu1 %v935_v26  ;;  %v1262_v25 = vld [vmem:[%s3458_s5 + $0x20] sm:$0xff]  ;;  %v1277_v26 = vld [vmem:[%s3458_s5 + $0x98] sm:$0xff] }
 0x17b   :  { %1171 = vmatpush2.msra.mxu0 %v870_v29  ;;  %1242 = vmatpush2.msra.mxu1 %v934_v30  ;;  %v1261_v29 = vld [vmem:[%s3458_s5 + $0x18] sm:$0xff]  ;;  %v1276_v30 = vld [vmem:[%s3458_s5 + $0x90] sm:$0xff] }
 0x17c   :  { %v620_v41 = vpop.f32.mrf.mxu0  ;;  %v691_v42 = vpop.f32.mrf.mxu1  ;;  %1172 = vmatprep.subr.mxu0 %v869_v32  ;;  %1243 = vmatprep.subr.mxu1 %v933_v33  ;;  %v1275_v32 = vld [vmem:[%s3458_s5 + $0x88] sm:$0xff] }
 0x17d   :  { %v692_v45 = vadd.f32 %v691_v42, %v399_v31  ;;  %1173 = vmatpush2.msra.mxu0 %v868_v35  ;;  %1244 = vmatpush2.msra.mxu1 %v932_v36  ;;  %v621_v48 = vadd.f32 %v620_v41, %v391_v34  ;;  %v1260_v31 = vld [vmem:[%s3458_s5 + $0x10] sm:$0xff]  ;;  %v1259_v33 = vld [vmem:[%s3458_s5 + $0x8] sm:$0xff]  ;;  %v1274_v34 = vld [vmem:[%s3458_s5 + $0x80] sm:$0xff] }
 0x17e   :  { %v622_v49 = vpop.f32.mrf.mxu0  ;;  %v693_v50 = vpop.f32.mrf.mxu1  ;;  %1174 = vmatprep.subr.mxu0 %v867_v39  ;;  %1245 = vmatprep.subr.mxu1 %v931_v40  ;;  %v1258_v35 = vld [vmem:[%s3458_s5] sm:$0xff]  ;;  %v1375_v36 = vld [vmem:[%s3460_s7 + $0x38] sm:$0xff]  ;;  %v1373_v39 = vld [vmem:[%s3460_s7 + $0x28] sm:$0xff] }
 0x17f   :  { %v623_v52 = vadd.f32 %v622_v49, %v395_v37  ;;  %v694_v53 = vadd.f32 %v693_v50, %v403_v38  ;;  %1175 = vmatpush2.msra.mxu0 %v866_v43  ;;  %1246 = vmatpush2.msra.mxu1 %v930_v44  ;;  %v702_v54 = vmax.f32 %v692_v45, 0.0  ;;  %v700_v57 = vmax.f32 %v621_v48, 0.0  ;;  %v1374_v38 = vld [vmem:[%s3460_s7 + $0x30] sm:$0xff]  ;;  %v960_v40 = vld [vmem:[%s3457_s4] sm:$0x3] }
 0x180   :  { %1176 = vmatprep.subr.mxu0 %v865_v46  ;;  %1247 = vmatprep.subr.mxu1 %v929_v47  ;;  %v3034_v37 = vmov 0.0   ;;  %v965_v42 = vrot.slane %v960_v40, %v3167_v11  ;;  %v969_v43 = vrot.slane %v960_v40, %v3175_v13  ;;  %v1768_v40 = vld [vmem:[#allocation7 + $0x3d8] sm:$0xff] }
 0x181   :  { %v701_v55 = vmax.f32 %v623_v52, 0.0  ;;  %v703_v56 = vmax.f32 %v694_v53, 0.0  ;;  %1177 = vmatpush2.msra.mxu0 %v864_v51  ;;  %1248 = vmatpush2.msra.mxu1 %v928_v12 }
 0x182   :  { %2826 = vmatprep.subr.mxu0 %v1289_v58  ;;  %2873 = vmatprep.subr.mxu1 %v3034_v37 }
 0x183   :  { %1178 = vmatprep.mubr.f32.mxu0 %v701_v55  ;;  %1249 = vmatprep.mubr.f32.mxu1 %v703_v56 }
 0x184   :  { %1179 = vmatmul.mubr.f32.vlgmr.msra.gmra.mxu0 %v700_v57  ;;  %1250 = vmatmul.mubr.f32.vlgmr.msra.gmra.mxu1 %v702_v54 }
 0x185   :  { %2827 = vmatpush3.msra.mxu0 %v1273_v59  ;;  %2874 = vmatpush3.msra.mxu1 %v1375_v36  ;;  %v1543_v36 = vld [vmem:[%s3464_s11 + $0x10] sm:$0xff] }
 0x186   :  { %2828 = vmatprep.subr.mxu0 %v1288_v60  ;;  %2875 = vmatprep.subr.mxu1 %v3034_v37  ;;  %v1372_v60 = vld [vmem:[%s3460_s7 + $0x20] sm:$0xff] }
 0x187   :  { %2829 = vmatpush3.msra.mxu0 %v1272_v61  ;;  %2876 = vmatpush3.msra.mxu1 %v1374_v38  ;;  %v1371_v61 = vld [vmem:[%s3460_s7 + $0x18] sm:$0xff]  ;;  %v1541_v38 = vld [vmem:[%s3464_s11] sm:$0xff] }
 0x188   :  { %2830 = vmatprep.subr.mxu0 %v1287_v62  ;;  %2877 = vmatprep.subr.mxu1 %v3034_v37  ;;  %v1370_v62 = vld [vmem:[%s3460_s7 + $0x10] sm:$0xff] }
 0x189   :  { %2831 = vmatpush3.msra.mxu0 %v1271_v0  ;;  %2878 = vmatpush3.msra.mxu1 %v1373_v39  ;;  %v1369_v0 = vld [vmem:[%s3460_s7 + $0x8] sm:$0xff] }
 0x18a   :  { %2832 = vmatprep.subr.mxu0 %v1286_v2  ;;  %2879 = vmatprep.subr.mxu1 %v3034_v37  ;;  %v1368_v2 = vld [vmem:[%s3460_s7] sm:$0xff]  ;;  %v1766_v39 = vld [vmem:[#allocation7 + $0x3c8] sm:$0xff] }
 0x18b   :  { %2833 = vmatpush3.msra.mxu0 %v1270_v3  ;;  %2880 = vmatpush3.msra.mxu1 %v1372_v60  ;;  %v1685_v60 = vld [vmem:[#allocation7 + $0x140] sm:$0xff] }
 0x18c   :  { %2834 = vmatprep.subr.mxu0 %v1285_v4  ;;  %2881 = vmatprep.subr.mxu1 %v3034_v37  ;;  %v2818_v4 = vld [vmem:[%s3459_s6] ss:$0 sm:$0xff] }
 0x18d   :  { %2835 = vmatpush3.msra.mxu0 %v1269_v5  ;;  %2882 = vmatpush3.msra.mxu1 %v1371_v61  ;;  %v1678_v61 = vld [vmem:[#allocation7 + $0x108] sm:$0xff] }
 0x18e   :  { %2836 = vmatprep.subr.mxu0 %v1284_v6  ;;  %2883 = vmatprep.subr.mxu1 %v3034_v37 }
 0x18f   :  { %2837 = vmatpush3.msra.mxu0 %v1268_v7  ;;  %2884 = vmatpush3.msra.mxu1 %v1370_v62  ;;  %v1677_v62 = vld [vmem:[#allocation7 + $0x100] sm:$0xff] }
 0x190   :  { %2838 = vmatprep.subr.mxu0 %v1283_v8  ;;  %2885 = vmatprep.subr.mxu1 %v3034_v37 }
 0x191   :  { %2839 = vmatpush3.msra.mxu0 %v1267_v15  ;;  %2886 = vmatpush3.msra.mxu1 %v1369_v0  ;;  %v1458_v15 = vld [vmem:[%s3462_s9 + $0x8] sm:$0xff] }
 0x192   :  { %2840 = vmatprep.subr.mxu0 %v1282_v16  ;;  %2887 = vmatprep.subr.mxu1 %v3034_v37  ;;  %v1457_v16 = vld [vmem:[%s3462_s9] sm:$0xff]  ;;  %v1670_v0 = vld [vmem:[#allocation7 + $0xc8] sm:$0xff] }
 0x193   :  { %2841 = vmatpush3.msra.mxu0 %v1266_v63  ;;  %2888 = vmatpush3.msra.mxu1 %v1368_v2  ;;  %v1556_v63 = vld [vmem:[%s3464_s11 + $0x78] sm:$0xff]  ;;  %v1669_v2 = vld [vmem:[#allocation7 + $0xc0] sm:$0xff] }
 0x194   :  { %2842 = vmatprep.subr.mxu0 %v1281_v17  ;;  %2889 = vmatprep.mubr.msk.f32.mxu1 %vm3035_vm0, %v3034_v37  ;;  %v2819_v17 = vld [vmem:[%s3461_s8] ss:$0 sm:$0xff] }
 0x195   :  { %2843 = vmatpush3.msra.mxu0 %v1265_v18  ;;  %2892 = vmatprep.subr.mxu1 %v3034_v37 }
 0x196   :  { %2844 = vmatprep.subr.mxu0 %v1280_v1 }
 0x197   :  { %2845 = vmatpush3.msra.mxu0 %v1264_v19  ;;  %v1555_v19 = vld [vmem:[%s3464_s11 + $0x70] sm:$0xff] }
 0x198   :  { %2846 = vmatprep.subr.mxu0 %v1279_v20 }
 0x199   :  { %2847 = vmatpush3.msra.mxu0 %v1263_v22  ;;  %v1554_v22 = vld [vmem:[%s3464_s11 + $0x68] sm:$0xff] }
 0x19a   :  { %2848 = vmatprep.subr.mxu0 %v1278_v23  ;;  %v1553_v23 = vld [vmem:[%s3464_s11 + $0x60] sm:$0xff] }
 0x19b   :  { %2849 = vmatpush3.msra.mxu0 %v1262_v25  ;;  %v1552_v25 = vld [vmem:[%s3464_s11 + $0x58] sm:$0xff] }
 0x19c   :  { %2850 = vmatprep.subr.mxu0 %v1277_v26  ;;  %v1551_v26 = vld [vmem:[%s3464_s11 + $0x50] sm:$0xff] }
 0x19d   :  { %2851 = vmatpush3.msra.mxu0 %v1261_v29  ;;  %v1550_v29 = vld [vmem:[%s3464_s11 + $0x48] sm:$0xff] }
 0x19e   :  { %2852 = vmatprep.subr.mxu0 %v1276_v30  ;;  %v1549_v30 = vld [vmem:[%s3464_s11 + $0x40] sm:$0xff] }
 0x19f   :  { %2853 = vmatpush3.msra.mxu0 %v1260_v31  ;;  %v1548_v31 = vld [vmem:[%s3464_s11 + $0x38] sm:$0xff] }
 0x1a0   :  { %2854 = vmatprep.subr.mxu0 %v1275_v32  ;;  %v1547_v32 = vld [vmem:[%s3464_s11 + $0x30] sm:$0xff] }
 0x1a1   :  { %2855 = vmatpush3.msra.mxu0 %v1259_v33  ;;  %v1546_v33 = vld [vmem:[%s3464_s11 + $0x28] sm:$0xff] }
 0x1a2   :  { %2856 = vmatprep.subr.mxu0 %v1274_v34  ;;  %v1545_v34 = vld [vmem:[%s3464_s11 + $0x20] sm:$0xff] }
 0x1a3   :  { %2857 = vmatpush3.msra.mxu0 %v1258_v35  ;;  %v1544_v35 = vld [vmem:[%s3464_s11 + $0x18] sm:$0xff] }
 0x1a4   :  { %1943 = vmatprep.subr.mxu0 %v1766_v39  ;;  %v1806_v39 = vld [vmem:[#allocation7 + $0x508] sm:$0xff] }
 0x202   :  { %v1038_v41 = vpop.f32.mrf.mxu0  ;;  %v1109_v44 = vpop.f32.mrf.mxu1 }
 0x203   :  { %v1039_v46 = vadd.f32 %v1038_v41, %v965_v42  ;;  %v1765_v41 = vld [vmem:[#allocation7 + $0x3c0] sm:$0xff]  ;;  %v1758_v42 = vld [vmem:[#allocation7 + $0x388] sm:$0xff] }
 0x204   :  { %v1040_v45 = vpop.f32.mrf.mxu0  ;;  %v1111_v48 = vpop.f32.mrf.mxu1 }
 0x205   :  { %v1041_v47 = vadd.f32 %v1040_v45, %v969_v43  ;;  %v1110_v49 = vadd.f32 %v1109_v44, %v1039_v46  ;;  %v1757_v43 = vld [vmem:[#allocation7 + $0x380] sm:$0xff]  ;;  %v1750_v44 = vld [vmem:[#allocation7 + $0x348] sm:$0xff] }
 0x206   :  { %v1749_v45 = vld [vmem:[#allocation7 + $0x340] sm:$0xff]  ;;  %v1742_v46 = vld [vmem:[#allocation7 + $0x308] sm:$0xff] }
 0x207   :  { %v1112_v12 = vadd.f32 %v1111_v48, %v1041_v47  ;;  %v1741_v47 = vld [vmem:[#allocation7 + $0x300] sm:$0xff]  ;;  %v1734_v48 = vld [vmem:[#allocation7 + $0x2c8] sm:$0xff] }
 0x244   :  { %v1180_v50 = vpop.f32.mrf.mxu0  ;;  %v1251_v51 = vpop.f32.mrf.mxu1 }
 0x245   :  { %v1181_v52 = vadd.f32 %v1180_v50, %v1110_v49  ;;  %v1733_v49 = vld [vmem:[#allocation7 + $0x2c0] sm:$0xff]  ;;  %v1726_v50 = vld [vmem:[#allocation7 + $0x288] sm:$0xff] }
 0x246   :  { %v1182_v53 = vpop.f32.mrf.mxu0  ;;  %v1253_v56 = vpop.f32.mrf.mxu1 }
 0x247   :  { %v1183_v54 = vadd.f32 %v1182_v53, %v1112_v12  ;;  %v1252_v55 = vadd.f32 %v1251_v51, %v1181_v52  ;;  %v1725_v51 = vld [vmem:[#allocation7 + $0x280] sm:$0xff]  ;;  %v1718_v12 = vld [vmem:[#allocation7 + $0x248] sm:$0xff] }
 0x248   :  { %v1717_v52 = vld [vmem:[#allocation7 + $0x240] sm:$0xff]  ;;  %v1710_v53 = vld [vmem:[#allocation7 + $0x208] sm:$0xff] }
 0x249   :  { %v1254_v57 = vadd.f32 %v1253_v56, %v1183_v54  ;;  %v1256_v59 = vmax.f32 %v1252_v55, 0.0  ;;  %v1709_v54 = vld [vmem:[#allocation7 + $0x200] sm:$0xff]  ;;  %v1702_v55 = vld [vmem:[#allocation7 + $0x1c8] sm:$0xff] }
 0x24a   :  { %v1701_v56 = vld [vmem:[#allocation7 + $0x1c0] sm:$0xff] }
 0x24b   :  { %v1257_v58 = vmax.f32 %v1254_v57, 0.0  ;;  %v1694_v57 = vld [vmem:[#allocation7 + $0x188] sm:$0xff] }
 0x24d   :  { %1361 = vmatprep.mubr.f32.mxu0 %v1257_v58  ;;  %v1693_v58 = vld [vmem:[#allocation7 + $0x180] sm:$0xff] }
 0x24e   :  { %1362 = vmatmul.mubr.f32.vlgmr.msra.gmra.mxu0 %v1256_v59  ;;  %v1686_v59 = vld [vmem:[#allocation7 + $0x148] sm:$0xff] }
 0x24f   :  { %1944 = vmatpush1.msra.mxu0 %v1765_v41  ;;  %v1798_v41 = vld [vmem:[#allocation7 + $0x4c8] sm:$0xff] }
 0x250   :  { %1945 = vmatprep.subr.mxu0 %v1758_v42  ;;  %v2821_v42 = vld [vmem:[%s3463_s10] ss:$0 sm:$0xff] }
 0x251   :  { %1946 = vmatpush1.msra.mxu0 %v1757_v43 }
 0x252   :  { %1947 = vmatprep.subr.mxu0 %v1750_v44 }
 0x253   :  { %1948 = vmatpush1.msra.mxu0 %v1749_v45 }
 0x254   :  { %1949 = vmatprep.subr.mxu0 %v1742_v46 }
 0x255   :  { %1950 = vmatpush1.msra.mxu0 %v1741_v47  ;;  %v1767_v47 = vld [vmem:[#allocation7 + $0x3d0] sm:$0xff] }
 0x256   :  { %1951 = vmatprep.subr.mxu0 %v1734_v48  ;;  %v1760_v48 = vld [vmem:[#allocation7 + $0x398] sm:$0xff] }
 0x257   :  { %1952 = vmatpush1.msra.mxu0 %v1733_v49  ;;  %v1759_v49 = vld [vmem:[#allocation7 + $0x390] sm:$0xff] }
 0x258   :  { %1953 = vmatprep.subr.mxu0 %v1726_v50  ;;  %v1752_v50 = vld [vmem:[#allocation7 + $0x358] sm:$0xff] }
 0x259   :  { %1954 = vmatpush1.msra.mxu0 %v1725_v51  ;;  %v1751_v51 = vld [vmem:[#allocation7 + $0x350] sm:$0xff] }
 0x25a   :  { %1955 = vmatprep.subr.mxu0 %v1718_v12  ;;  %v1744_v12 = vld [vmem:[#allocation7 + $0x318] sm:$0xff] }
 0x25b   :  { %1956 = vmatpush1.msra.mxu0 %v1717_v52  ;;  %v1743_v52 = vld [vmem:[#allocation7 + $0x310] sm:$0xff] }
 0x25c   :  { %1957 = vmatprep.subr.mxu0 %v1710_v53  ;;  %v1736_v53 = vld [vmem:[#allocation7 + $0x2d8] sm:$0xff] }
 0x25d   :  { %1958 = vmatpush1.msra.mxu0 %v1709_v54  ;;  %v1735_v54 = vld [vmem:[#allocation7 + $0x2d0] sm:$0xff] }
 0x25e   :  { %1959 = vmatprep.subr.mxu0 %v1702_v55  ;;  %v1728_v55 = vld [vmem:[#allocation7 + $0x298] sm:$0xff] }
 0x25f   :  { %1960 = vmatpush1.msra.mxu0 %v1701_v56  ;;  %v1727_v56 = vld [vmem:[#allocation7 + $0x290] sm:$0xff] }
 0x260   :  { %1961 = vmatprep.subr.mxu0 %v1694_v57  ;;  %v1720_v57 = vld [vmem:[#allocation7 + $0x258] sm:$0xff] }
 0x261   :  { %1962 = vmatpush1.msra.mxu0 %v1693_v58  ;;  %v1719_v58 = vld [vmem:[#allocation7 + $0x250] sm:$0xff] }
 0x262   :  { %1963 = vmatprep.subr.mxu0 %v1686_v59  ;;  %v1712_v59 = vld [vmem:[#allocation7 + $0x218] sm:$0xff] }
 0x263   :  { %1964 = vmatpush1.msra.mxu0 %v1685_v60  ;;  %v1711_v60 = vld [vmem:[#allocation7 + $0x210] sm:$0xff] }
 0x264   :  { %1965 = vmatprep.subr.mxu0 %v1678_v61  ;;  %v1704_v61 = vld [vmem:[#allocation7 + $0x1d8] sm:$0xff] }
 0x265   :  { %1966 = vmatpush1.msra.mxu0 %v1677_v62  ;;  %v1703_v62 = vld [vmem:[#allocation7 + $0x1d0] sm:$0xff] }
 0x266   :  { %1967 = vmatprep.subr.mxu0 %v1670_v0  ;;  %v1696_v0 = vld [vmem:[#allocation7 + $0x198] sm:$0xff] }
 0x267   :  { %1968 = vmatpush1.msra.mxu0 %v1669_v2  ;;  %v1695_v2 = vld [vmem:[#allocation7 + $0x190] sm:$0xff] }
 0x30e   :  { %v2858_v3 = vpop.f32.mrf.mxu0 }
 0x310   :  { %v2859_v5 = vpop.f32.mrf.mxu0 }
 0x311   :  { %v2860_v6 = vadd.f32 %v2859_v5, %v2858_v3  ;;  %v1662_v3 = vld [vmem:[#allocation7 + $0x88] sm:$0xff] }
 0x312   :  { %1969 = vmatprep.subr.mxu0 %v1662_v3  ;;  %v1654_v5 = vld [vmem:[#allocation7 + $0x48] sm:$0xff]  ;;  %v1688_v3 = vld [vmem:[#allocation7 + $0x158] sm:$0xff] }
 0x313   :  { %v1364_v7 = vadd.f32 %v2860_v6, %v2818_v4  ;;  %v1661_v4 = vld [vmem:[#allocation7 + $0x80] sm:$0xff] }
 0x314   :  { %1970 = vmatpush1.msra.mxu0 %v1661_v4  ;;  %v1653_v6 = vld [vmem:[#allocation7 + $0x40] sm:$0xff]  ;;  %v1687_v4 = vld [vmem:[#allocation7 + $0x150] sm:$0xff] }
 0x315   :  { %v1367_v8 = vmax.f32 %v1364_v7, 0.0  ;;  %1971 = vmatprep.subr.mxu0 %v1654_v5  ;;  %v1646_v7 = vld [vmem:[#allocation7 + $0x8] sm:$0xff]  ;;  %v1680_v5 = vld [vmem:[#allocation7 + $0x118] sm:$0xff] }
 0x316   :  { %1972 = vmatpush1.msra.mxu0 %v1653_v6  ;;  %v1679_v6 = vld [vmem:[#allocation7 + $0x110] sm:$0xff] }
 0x317   :  { %2890 = vmatmul.mubr.msk.f32.vlgmr.msra.gmra.mxu1 %vm1383_vm1, %v1367_v8  ;;  %v1645_v8 = vld [vmem:[#allocation7] sm:$0xff]  ;;  %1973 = vmatprep.subr.mxu0 %v1646_v7  ;;  %v1672_v7 = vld [vmem:[#allocation7 + $0xd8] sm:$0xff] }
 0x318   :  { %2893 = vmatpush3.msra.mxu1 %v1458_v15  ;;  %2896 = vmatprep.mubr.msk.f32.mxu1 %vm3035_vm0, %v3034_v37  ;;  %v1894_v15 = vld [vmem:[#allocation7 + $0x7c8] sm:$0xff] }
 0x319   :  { %2894 = vmatprep.subr.mxu1 %v3034_v37  ;;  %1974 = vmatpush1.msra.mxu0 %v1645_v8  ;;  %v1671_v8 = vld [vmem:[#allocation7 + $0xd0] sm:$0xff] }
 0x31a   :  { %2895 = vmatpush3.msra.mxu1 %v1457_v16  ;;  %v1893_v16 = vld [vmem:[#allocation7 + $0x7c0] sm:$0xff]  ;;  %1975 = vmatprep.subr.mxu0 %v1894_v15  ;;  %v1664_v15 = vld [vmem:[#allocation7 + $0x98] sm:$0xff] }
 0x31b   :  { %1588 = vmatprep.subr.mxu1 %v1556_v63  ;;  %v1886_v63 = vld [vmem:[#allocation7 + $0x788] sm:$0xff]  ;;  %1976 = vmatpush2.msra.mxu0 %v1893_v16  ;;  %v1663_v16 = vld [vmem:[#allocation7 + $0x90] sm:$0xff] }
 0x31c   :  { %1977 = vmatprep.subr.mxu0 %v1886_v63  ;;  %v1656_v63 = vld [vmem:[#allocation7 + $0x58] sm:$0xff] }
 0x3d7   :  { %v1453_v18 = vpop.f32.mrf.mxu1 }
 0x3d8   :  { %v1454_v1 = vadd.f32 %v2819_v17, %v1453_v18  ;;  %v1885_v17 = vld [vmem:[#allocation7 + $0x780] sm:$0xff]  ;;  %v1878_v18 = vld [vmem:[#allocation7 + $0x748] sm:$0xff] }
 0x3d9   :  { %v2891_v20 = vpop.f32.mrf.mxu1  ;;  %1978 = vmatpush2.msra.mxu0 %v1885_v17  ;;  %v1655_v17 = vld [vmem:[#allocation7 + $0x50] sm:$0xff] }
 0x3da   :  { %2897 = vmatmul.mubr.msk.f32.vlgmr.msra.gmra.mxu1 %vm1466_vm2, %v1454_v1  ;;  %v1877_v1 = vld [vmem:[#allocation7 + $0x740] sm:$0xff]  ;;  %1979 = vmatprep.subr.mxu0 %v1878_v18  ;;  %v1648_v18 = vld [vmem:[#allocation7 + $0x18] sm:$0xff] }
 0x3db   :  { %1589 = vmatpush1.msra.mxu1 %v1555_v19  ;;  %1636 = vmatprep.mubr.f32.mxu1 %v3034_v37  ;;  %v1542_v37 = vld [vmem:[%s3464_s11 + $0x8] sm:$0xff]  ;;  %v1869_v20 = vld [vmem:[#allocation7 + $0x700] sm:$0xff] }
 0x3dc   :  { %1590 = vmatprep.subr.mxu1 %v1554_v22  ;;  %v1870_v19 = vld [vmem:[#allocation7 + $0x708] sm:$0xff]  ;;  %1980 = vmatpush2.msra.mxu0 %v1877_v1  ;;  %v1647_v1 = vld [vmem:[#allocation7 + $0x10] sm:$0xff] }
 0x3dd   :  { %1591 = vmatpush1.msra.mxu1 %v1553_v23  ;;  %1981 = vmatprep.subr.mxu0 %v1870_v19  ;;  %v1862_v22 = vld [vmem:[#allocation7 + $0x6c8] sm:$0xff]  ;;  %v1861_v23 = vld [vmem:[#allocation7 + $0x6c0] sm:$0xff]  ;;  %v1896_v19 = vld [vmem:[#allocation7 + $0x7d8] sm:$0xff] }
 0x3de   :  { %1592 = vmatprep.subr.mxu1 %v1552_v25  ;;  %1982 = vmatpush2.msra.mxu0 %v1869_v20  ;;  %v1854_v25 = vld [vmem:[#allocation7 + $0x688] sm:$0xff]  ;;  %v1895_v20 = vld [vmem:[#allocation7 + $0x7d0] sm:$0xff] }
 0x3df   :  { %1593 = vmatpush1.msra.mxu1 %v1551_v26  ;;  %1983 = vmatprep.subr.mxu0 %v1862_v22  ;;  %v1853_v26 = vld [vmem:[#allocation7 + $0x680] sm:$0xff]  ;;  %v1888_v22 = vld [vmem:[#allocation7 + $0x798] sm:$0xff] }
 0x3e0   :  { %1594 = vmatprep.subr.mxu1 %v1550_v29  ;;  %1984 = vmatpush2.msra.mxu0 %v1861_v23  ;;  %v1846_v29 = vld [vmem:[#allocation7 + $0x648] sm:$0xff]  ;;  %v1887_v23 = vld [vmem:[#allocation7 + $0x790] sm:$0xff] }
 0x3e1   :  { %1595 = vmatpush1.msra.mxu1 %v1549_v30  ;;  %1985 = vmatprep.subr.mxu0 %v1854_v25  ;;  %v1845_v30 = vld [vmem:[#allocation7 + $0x640] sm:$0xff]  ;;  %v1880_v25 = vld [vmem:[#allocation7 + $0x758] sm:$0xff] }
 0x3e2   :  { %1596 = vmatprep.subr.mxu1 %v1548_v31  ;;  %1986 = vmatpush2.msra.mxu0 %v1853_v26  ;;  %v1838_v31 = vld [vmem:[#allocation7 + $0x608] sm:$0xff]  ;;  %v1879_v26 = vld [vmem:[#allocation7 + $0x750] sm:$0xff] }
 0x3e3   :  { %1597 = vmatpush1.msra.mxu1 %v1547_v32  ;;  %1987 = vmatprep.subr.mxu0 %v1846_v29  ;;  %v1837_v32 = vld [vmem:[#allocation7 + $0x600] sm:$0xff]  ;;  %v1872_v29 = vld [vmem:[#allocation7 + $0x718] sm:$0xff] }
 0x3e4   :  { %1598 = vmatprep.subr.mxu1 %v1546_v33  ;;  %1988 = vmatpush2.msra.mxu0 %v1845_v30  ;;  %v1830_v33 = vld [vmem:[#allocation7 + $0x5c8] sm:$0xff]  ;;  %v1871_v30 = vld [vmem:[#allocation7 + $0x710] sm:$0xff] }
 0x3e5   :  { %1599 = vmatpush1.msra.mxu1 %v1545_v34  ;;  %1989 = vmatprep.subr.mxu0 %v1838_v31  ;;  %v1829_v34 = vld [vmem:[#allocation7 + $0x5c0] sm:$0xff]  ;;  %v1864_v31 = vld [vmem:[#allocation7 + $0x6d8] sm:$0xff] }
 0x3e6   :  { %1600 = vmatprep.subr.mxu1 %v1544_v35  ;;  %1990 = vmatpush2.msra.mxu0 %v1837_v32  ;;  %v1822_v35 = vld [vmem:[#allocation7 + $0x588] sm:$0xff]  ;;  %v1863_v32 = vld [vmem:[#allocation7 + $0x6d0] sm:$0xff] }
 0x3e7   :  { %1601 = vmatpush1.msra.mxu1 %v1543_v36  ;;  %1991 = vmatprep.subr.mxu0 %v1830_v33  ;;  %v1821_v36 = vld [vmem:[#allocation7 + $0x580] sm:$0xff]  ;;  %v1856_v33 = vld [vmem:[#allocation7 + $0x698] sm:$0xff] }
 0x3e8   :  { %1602 = vmatprep.subr.mxu1 %v1542_v37  ;;  %1992 = vmatpush2.msra.mxu0 %v1829_v34  ;;  %v1814_v37 = vld [vmem:[#allocation7 + $0x548] sm:$0xff]  ;;  %v1855_v34 = vld [vmem:[#allocation7 + $0x690] sm:$0xff] }
 0x3e9   :  { %1603 = vmatpush1.msra.mxu1 %v1541_v38  ;;  %1993 = vmatprep.subr.mxu0 %v1822_v35  ;;  %v1813_v38 = vld [vmem:[#allocation7 + $0x540] sm:$0xff]  ;;  %v1848_v35 = vld [vmem:[#allocation7 + $0x658] sm:$0xff] }
 0x3ea   :  { %2014 = vmatprep.subr.mxu1 %v1768_v40  ;;  %1994 = vmatpush2.msra.mxu0 %v1821_v36  ;;  %v1805_v40 = vld [vmem:[#allocation7 + $0x500] sm:$0xff]  ;;  %v1847_v36 = vld [vmem:[#allocation7 + $0x650] sm:$0xff] }
 0x3eb   :  { %1995 = vmatprep.subr.mxu0 %v1814_v37  ;;  %v1840_v37 = vld [vmem:[#allocation7 + $0x618] sm:$0xff] }
 0x3ec   :  { %1996 = vmatpush2.msra.mxu0 %v1813_v38  ;;  %v1839_v38 = vld [vmem:[#allocation7 + $0x610] sm:$0xff] }
 0x3ed   :  { %1997 = vmatprep.subr.mxu0 %v1806_v39  ;;  %v1832_v39 = vld [vmem:[#allocation7 + $0x5d8] sm:$0xff] }
 0x3ee   :  { %1998 = vmatpush2.msra.mxu0 %v1805_v40  ;;  %v1831_v40 = vld [vmem:[#allocation7 + $0x5d0] sm:$0xff] }
 0x3ef   :  { %1999 = vmatprep.subr.mxu0 %v1798_v41  ;;  %v1824_v41 = vld [vmem:[#allocation7 + $0x598] sm:$0xff] }
 0x49a   :  { %v1536_v43 = vpop.f32.mrf.mxu1 }
 0x49b   :  { %v1537_v44 = vadd.f32 %v2821_v42, %v1536_v43  ;;  %v1823_v42 = vld [vmem:[#allocation7 + $0x590] sm:$0xff]  ;;  %v1816_v43 = vld [vmem:[#allocation7 + $0x558] sm:$0xff] }
 0x49c   :  { %v2898_v45 = vpop.f32.mrf.mxu1 }
 0x49d   :  { %v1540_v46 = vmax.f32 %v1537_v44, 0.0  ;;  %v1815_v44 = vld [vmem:[#allocation7 + $0x550] sm:$0xff]  ;;  %v1808_v45 = vld [vmem:[#allocation7 + $0x518] sm:$0xff] }
 0x49f   :  { %2823 = vmatmul.mubr.msk.f32.vlgmr.msra.gmra.mxu1 %vm1383_vm1, %v1540_v46  ;;  %v1807_v46 = vld [vmem:[#allocation7 + $0x510] sm:$0xff] }
 0x4a0   :  { %2015 = vmatpush1.msra.mxu1 %v1767_v47  ;;  %v1800_v47 = vld [vmem:[#allocation7 + $0x4d8] sm:$0xff] }
 0x4a1   :  { %2016 = vmatprep.subr.mxu1 %v1760_v48  ;;  %v1797_v48 = vld [vmem:[#allocation7 + $0x4c0] sm:$0xff] }
 0x4a2   :  { %2017 = vmatpush1.msra.mxu1 %v1759_v49  ;;  %v1799_v49 = vld [vmem:[#allocation7 + $0x4d0] sm:$0xff]  ;;  %2000 = vmatpush2.msra.mxu0 %v1797_v48  ;;  %v1706_v48 = vld [vmem:[#allocation7 + $0x1e8] sm:$0xff] }
 0x4a3   :  { %2018 = vmatprep.subr.mxu1 %v1752_v50  ;;  %v1790_v50 = vld [vmem:[#allocation7 + $0x488] sm:$0xff] }
 0x4a4   :  { %2019 = vmatpush1.msra.mxu1 %v1751_v51  ;;  %v1792_v51 = vld [vmem:[#allocation7 + $0x498] sm:$0xff]  ;;  %2001 = vmatprep.subr.mxu0 %v1790_v50  ;;  %v1705_v50 = vld [vmem:[#allocation7 + $0x1e0] sm:$0xff] }
 0x4a5   :  { %2020 = vmatprep.subr.mxu1 %v1744_v12  ;;  %v1789_v12 = vld [vmem:[#allocation7 + $0x480] sm:$0xff] }
 0x4a6   :  { %2021 = vmatpush1.msra.mxu1 %v1743_v52  ;;  %v1791_v52 = vld [vmem:[#allocation7 + $0x490] sm:$0xff]  ;;  %2002 = vmatpush2.msra.mxu0 %v1789_v12  ;;  %v1698_v12 = vld [vmem:[#allocation7 + $0x1a8] sm:$0xff] }
 0x4a7   :  { %2022 = vmatprep.subr.mxu1 %v1736_v53  ;;  %v1782_v53 = vld [vmem:[#allocation7 + $0x448] sm:$0xff] }
 0x4a8   :  { %2023 = vmatpush1.msra.mxu1 %v1735_v54  ;;  %v1784_v54 = vld [vmem:[#allocation7 + $0x458] sm:$0xff]  ;;  %2003 = vmatprep.subr.mxu0 %v1782_v53  ;;  %v1697_v53 = vld [vmem:[#allocation7 + $0x1a0] sm:$0xff] }
 0x4a9   :  { %2024 = vmatprep.subr.mxu1 %v1728_v55  ;;  %v1781_v55 = vld [vmem:[#allocation7 + $0x440] sm:$0xff] }
 0x4aa   :  { %2025 = vmatpush1.msra.mxu1 %v1727_v56  ;;  %v1783_v56 = vld [vmem:[#allocation7 + $0x450] sm:$0xff]  ;;  %2004 = vmatpush2.msra.mxu0 %v1781_v55  ;;  %v1690_v55 = vld [vmem:[#allocation7 + $0x168] sm:$0xff] }
 0x4ab   :  { %2026 = vmatprep.subr.mxu1 %v1720_v57  ;;  %v1774_v57 = vld [vmem:[#allocation7 + $0x408] sm:$0xff] }
 0x4ac   :  { %2027 = vmatpush1.msra.mxu1 %v1719_v58  ;;  %v1776_v58 = vld [vmem:[#allocation7 + $0x418] sm:$0xff]  ;;  %2005 = vmatprep.subr.mxu0 %v1774_v57  ;;  %v1689_v57 = vld [vmem:[#allocation7 + $0x160] sm:$0xff] }
 0x4ad   :  { %2028 = vmatprep.subr.mxu1 %v1712_v59  ;;  %v1773_v59 = vld [vmem:[#allocation7 + $0x400] sm:$0xff] }
 0x4ae   :  { %2029 = vmatpush1.msra.mxu1 %v1711_v60  ;;  %v1775_v60 = vld [vmem:[#allocation7 + $0x410] sm:$0xff]  ;;  %2006 = vmatpush2.msra.mxu0 %v1773_v59  ;;  %v1682_v59 = vld [vmem:[#allocation7 + $0x128] sm:$0xff] }
 0x4af   :  { %2030 = vmatprep.subr.mxu1 %v1704_v61  ;;  %v1770_v61 = vld [vmem:[#allocation7 + $0x3e8] sm:$0xff] }
 0x4b0   :  { %2031 = vmatpush1.msra.mxu1 %v1703_v62  ;;  %v1772_v62 = vld [vmem:[#allocation7 + $0x3f8] sm:$0xff]  ;;  %2085 = vmatprep.subr.mxu0 %v1770_v61  ;;  %v1681_v61 = vld [vmem:[#allocation7 + $0x120] sm:$0xff] }
 0x4b1   :  { %2032 = vmatprep.subr.mxu1 %v1696_v0  ;;  %v1557_v0 = vld [vmem:[%s3465_s12] sm:$0x3] }
 0x4b2   :  { %2033 = vmatpush1.msra.mxu1 %v1695_v2  ;;  %v1562_v2 = vrot.slane %v1557_v0, %v3167_v11 }
 0x4b3   :  { %2034 = vmatprep.subr.mxu1 %v1688_v3  ;;  %v1566_v3 = vrot.slane %v1557_v0, %v3175_v13  ;;  %v1674_v0 = vld [vmem:[#allocation7 + $0xe8] sm:$0xff] }
 0x4b4   :  { %2035 = vmatpush1.msra.mxu1 %v1687_v4 }
 0x4b5   :  { %2036 = vmatprep.subr.mxu1 %v1680_v5 }
 0x4b6   :  { %2037 = vmatpush1.msra.mxu1 %v1679_v6 }
 0x4b7   :  { %2038 = vmatprep.subr.mxu1 %v1672_v7 }
 0x4b8   :  { %2039 = vmatpush1.msra.mxu1 %v1671_v8 }
 0x4b9   :  { %2040 = vmatprep.subr.mxu1 %v1664_v15 }
 0x4ba   :  { %2041 = vmatpush1.msra.mxu1 %v1663_v16  ;;  %v1769_v16 = vld [vmem:[#allocation7 + $0x3e0] sm:$0xff] }
 0x4bb   :  { %2042 = vmatprep.subr.mxu1 %v1656_v63  ;;  %v1771_v63 = vld [vmem:[#allocation7 + $0x3f0] sm:$0xff] }
 0x4bc   :  { %2043 = vmatpush1.msra.mxu1 %v1655_v17  ;;  %v1762_v17 = vld [vmem:[#allocation7 + $0x3a8] sm:$0xff] }
 0x4bd   :  { %2044 = vmatprep.subr.mxu1 %v1648_v18  ;;  %v1764_v18 = vld [vmem:[#allocation7 + $0x3b8] sm:$0xff] }
 0x4be   :  { %2045 = vmatpush1.msra.mxu1 %v1647_v1  ;;  %v1761_v1 = vld [vmem:[#allocation7 + $0x3a0] sm:$0xff] }
 0x4bf   :  { %2046 = vmatprep.subr.mxu1 %v1896_v19  ;;  %v1763_v19 = vld [vmem:[#allocation7 + $0x3b0] sm:$0xff] }
 0x4c0   :  { %2047 = vmatpush2.msra.mxu1 %v1895_v20  ;;  %v1754_v20 = vld [vmem:[#allocation7 + $0x368] sm:$0xff] }
 0x4c1   :  { %2048 = vmatprep.subr.mxu1 %v1888_v22  ;;  %v1756_v22 = vld [vmem:[#allocation7 + $0x378] sm:$0xff] }
 0x4c2   :  { %2049 = vmatpush2.msra.mxu1 %v1887_v23  ;;  %v1753_v23 = vld [vmem:[#allocation7 + $0x360] sm:$0xff] }
 0x4c3   :  { %2050 = vmatprep.subr.mxu1 %v1880_v25  ;;  %v1755_v25 = vld [vmem:[#allocation7 + $0x370] sm:$0xff] }
 0x4c4   :  { %2051 = vmatpush2.msra.mxu1 %v1879_v26  ;;  %v1746_v26 = vld [vmem:[#allocation7 + $0x328] sm:$0xff] }
 0x4c5   :  { %2052 = vmatprep.subr.mxu1 %v1872_v29  ;;  %v1748_v29 = vld [vmem:[#allocation7 + $0x338] sm:$0xff] }
 0x4c6   :  { %2053 = vmatpush2.msra.mxu1 %v1871_v30  ;;  %v1745_v30 = vld [vmem:[#allocation7 + $0x320] sm:$0xff] }
 0x4c7   :  { %2054 = vmatprep.subr.mxu1 %v1864_v31  ;;  %v1747_v31 = vld [vmem:[#allocation7 + $0x330] sm:$0xff] }
 0x4c8   :  { %2055 = vmatpush2.msra.mxu1 %v1863_v32  ;;  %v1738_v32 = vld [vmem:[#allocation7 + $0x2e8] sm:$0xff] }
 0x4c9   :  { %2056 = vmatprep.subr.mxu1 %v1856_v33  ;;  %v1740_v33 = vld [vmem:[#allocation7 + $0x2f8] sm:$0xff] }
 0x4ca   :  { %2057 = vmatpush2.msra.mxu1 %v1855_v34  ;;  %v1737_v34 = vld [vmem:[#allocation7 + $0x2e0] sm:$0xff] }
 0x4cb   :  { %2058 = vmatprep.subr.mxu1 %v1848_v35  ;;  %v1739_v35 = vld [vmem:[#allocation7 + $0x2f0] sm:$0xff] }
 0x4cc   :  { %2059 = vmatpush2.msra.mxu1 %v1847_v36  ;;  %v1730_v36 = vld [vmem:[#allocation7 + $0x2a8] sm:$0xff] }
 0x4cd   :  { %2060 = vmatprep.subr.mxu1 %v1840_v37  ;;  %v1732_v37 = vld [vmem:[#allocation7 + $0x2b8] sm:$0xff] }
 0x4ce   :  { %2061 = vmatpush2.msra.mxu1 %v1839_v38  ;;  %v1729_v38 = vld [vmem:[#allocation7 + $0x2a0] sm:$0xff] }
 0x4cf   :  { %2062 = vmatprep.subr.mxu1 %v1832_v39  ;;  %v1731_v39 = vld [vmem:[#allocation7 + $0x2b0] sm:$0xff] }
 0x4d0   :  { %2063 = vmatpush2.msra.mxu1 %v1831_v40  ;;  %v1722_v40 = vld [vmem:[#allocation7 + $0x268] sm:$0xff] }
 0x4d1   :  { %2064 = vmatprep.subr.mxu1 %v1824_v41  ;;  %v1724_v41 = vld [vmem:[#allocation7 + $0x278] sm:$0xff] }
 0x4d2   :  { %2065 = vmatpush2.msra.mxu1 %v1823_v42  ;;  %v1721_v42 = vld [vmem:[#allocation7 + $0x260] sm:$0xff] }
 0x4d3   :  { %2066 = vmatprep.subr.mxu1 %v1816_v43  ;;  %v1723_v43 = vld [vmem:[#allocation7 + $0x270] sm:$0xff] }
 0x4d4   :  { %2067 = vmatpush2.msra.mxu1 %v1815_v44  ;;  %v1714_v44 = vld [vmem:[#allocation7 + $0x228] sm:$0xff] }
 0x4d5   :  { %2068 = vmatprep.subr.mxu1 %v1808_v45  ;;  %v1716_v45 = vld [vmem:[#allocation7 + $0x238] sm:$0xff] }
 0x4d6   :  { %2069 = vmatpush2.msra.mxu1 %v1807_v46  ;;  %v1713_v46 = vld [vmem:[#allocation7 + $0x220] sm:$0xff] }
 0x4d7   :  { %2070 = vmatprep.subr.mxu1 %v1800_v47  ;;  %v1715_v47 = vld [vmem:[#allocation7 + $0x230] sm:$0xff] }
 0x4d8   :  { %2071 = vmatpush2.msra.mxu1 %v1799_v49  ;;  %v1708_v49 = vld [vmem:[#allocation7 + $0x1f8] sm:$0xff] }
 0x4d9   :  { %2072 = vmatprep.subr.mxu1 %v1792_v51  ;;  %v1707_v51 = vld [vmem:[#allocation7 + $0x1f0] sm:$0xff] }
 0x4da   :  { %2073 = vmatpush2.msra.mxu1 %v1791_v52  ;;  %v1700_v52 = vld [vmem:[#allocation7 + $0x1b8] sm:$0xff] }
 0x4db   :  { %2074 = vmatprep.subr.mxu1 %v1784_v54  ;;  %v1699_v54 = vld [vmem:[#allocation7 + $0x1b0] sm:$0xff] }
 0x4dc   :  { %2075 = vmatpush2.msra.mxu1 %v1783_v56  ;;  %v1692_v56 = vld [vmem:[#allocation7 + $0x178] sm:$0xff] }
 0x4dd   :  { %2076 = vmatprep.subr.mxu1 %v1776_v58  ;;  %v1691_v58 = vld [vmem:[#allocation7 + $0x170] sm:$0xff] }
 0x4de   :  { %2077 = vmatpush2.msra.mxu1 %v1775_v60  ;;  %v1684_v60 = vld [vmem:[#allocation7 + $0x138] sm:$0xff] }
 0x4df   :  { %2156 = vmatprep.subr.mxu1 %v1772_v62  ;;  %v1683_v62 = vld [vmem:[#allocation7 + $0x130] sm:$0xff] }
 0x55f   :  { %v1638_v4 = vpop.f32.mrf.mxu1 }
 0x560   :  { %v1639_v5 = vadd.f32 %v1638_v4, %v1562_v2  ;;  %v1676_v2 = vld [vmem:[#allocation7 + $0xf8] sm:$0xff]  ;;  %v1675_v4 = vld [vmem:[#allocation7 + $0xf0] sm:$0xff] }
 0x561   :  { %v1640_v6 = vpop.f32.mrf.mxu1 }
 0x562   :  { %v1641_v7 = vadd.f32 %v1640_v6, %v1566_v3  ;;  %v3412_v15 = vmax.f32 %v1639_v5, 0.0  ;;  %v1673_v3 = vld [vmem:[#allocation7 + $0xe0] sm:$0xff]  ;;  %v1666_v5 = vld [vmem:[#allocation7 + $0xa8] sm:$0xff]  ;;  %v1668_v6 = vld [vmem:[#allocation7 + $0xb8] sm:$0xff] }
 0x564   :  { %v1644_v8 = vmax.f32 %v1641_v7, 0.0  ;;  %v1665_v7 = vld [vmem:[#allocation7 + $0xa0] sm:$0xff] }
 0x566   :  { %2007 = vmatprep.mubr.f32.mxu0 %v1644_v8  ;;  %2078 = vmatprep.mubr.f32.mxu1 %v1644_v8 }
 0x567   :  { %2008 = vmatmul.mubr.f32.vlgmr.msra.gmra.mxu0 %v3412_v15  ;;  %2079 = vmatmul.mubr.f32.vlgmr.msra.gmra.mxu1 %v3412_v15 }
 0x568   :  { %2086 = vmatpush1.msra.mxu0 %v1769_v16  ;;  %2157 = vmatpush1.msra.mxu1 %v1771_v63  ;;  %v1658_v16 = vld [vmem:[#allocation7 + $0x68] sm:$0xff]  ;;  %v1660_v63 = vld [vmem:[#allocation7 + $0x78] sm:$0xff] }
 0x569   :  { %2087 = vmatprep.subr.mxu0 %v1762_v17  ;;  %2149 = vmatprep.mubr.f32.mxu0 %v1644_v8  ;;  %v1657_v17 = vld [vmem:[#allocation7 + $0x60] sm:$0xff] }
 0x56a   :  { %2158 = vmatprep.subr.mxu1 %v1764_v18  ;;  %2220 = vmatprep.mubr.f32.mxu1 %v1644_v8  ;;  %v1667_v8 = vld [vmem:[#allocation7 + $0xb0] sm:$0xff] }
 0x56b   :  { %2088 = vmatpush1.msra.mxu0 %v1761_v1  ;;  %2159 = vmatpush1.msra.mxu1 %v1763_v19  ;;  %v1659_v18 = vld [vmem:[#allocation7 + $0x70] sm:$0xff]  ;;  %v1650_v1 = vld [vmem:[#allocation7 + $0x28] sm:$0xff]  ;;  %v1652_v19 = vld [vmem:[#allocation7 + $0x38] sm:$0xff] }
 0x56c   :  { %2089 = vmatprep.subr.mxu0 %v1754_v20  ;;  %2160 = vmatprep.subr.mxu1 %v1756_v22  ;;  %v1649_v20 = vld [vmem:[#allocation7 + $0x20] sm:$0xff]  ;;  %v1651_v22 = vld [vmem:[#allocation7 + $0x30] sm:$0xff] }
 0x56d   :  { %2090 = vmatpush1.msra.mxu0 %v1753_v23  ;;  %2161 = vmatpush1.msra.mxu1 %v1755_v25  ;;  %v1898_v23 = vld [vmem:[#allocation7 + $0x7e8] sm:$0xff]  ;;  %v1900_v25 = vld [vmem:[#allocation7 + $0x7f8] sm:$0xff] }
 0x56e   :  { %2091 = vmatprep.subr.mxu0 %v1746_v26  ;;  %2162 = vmatprep.subr.mxu1 %v1748_v29  ;;  %v1897_v26 = vld [vmem:[#allocation7 + $0x7e0] sm:$0xff]  ;;  %v1899_v29 = vld [vmem:[#allocation7 + $0x7f0] sm:$0xff] }
 0x56f   :  { %2092 = vmatpush1.msra.mxu0 %v1745_v30  ;;  %2163 = vmatpush1.msra.mxu1 %v1747_v31  ;;  %v1890_v30 = vld [vmem:[#allocation7 + $0x7a8] sm:$0xff]  ;;  %v1892_v31 = vld [vmem:[#allocation7 + $0x7b8] sm:$0xff] }
 0x570   :  { %2093 = vmatprep.subr.mxu0 %v1738_v32  ;;  %2164 = vmatprep.subr.mxu1 %v1740_v33  ;;  %v1889_v32 = vld [vmem:[#allocation7 + $0x7a0] sm:$0xff]  ;;  %v1891_v33 = vld [vmem:[#allocation7 + $0x7b0] sm:$0xff] }
 0x571   :  { %2094 = vmatpush1.msra.mxu0 %v1737_v34  ;;  %2165 = vmatpush1.msra.mxu1 %v1739_v35  ;;  %v1882_v34 = vld [vmem:[#allocation7 + $0x768] sm:$0xff]  ;;  %v1884_v35 = vld [vmem:[#allocation7 + $0x778] sm:$0xff] }
 0x572   :  { %2095 = vmatprep.subr.mxu0 %v1730_v36  ;;  %2166 = vmatprep.subr.mxu1 %v1732_v37  ;;  %v1881_v36 = vld [vmem:[#allocation7 + $0x760] sm:$0xff]  ;;  %v1883_v37 = vld [vmem:[#allocation7 + $0x770] sm:$0xff] }
 0x573   :  { %2096 = vmatpush1.msra.mxu0 %v1729_v38  ;;  %2167 = vmatpush1.msra.mxu1 %v1731_v39  ;;  %v1874_v38 = vld [vmem:[#allocation7 + $0x728] sm:$0xff]  ;;  %v1876_v39 = vld [vmem:[#allocation7 + $0x738] sm:$0xff] }
 0x574   :  { %2097 = vmatprep.subr.mxu0 %v1722_v40  ;;  %2168 = vmatprep.subr.mxu1 %v1724_v41  ;;  %v1873_v40 = vld [vmem:[#allocation7 + $0x720] sm:$0xff]  ;;  %v1875_v41 = vld [vmem:[#allocation7 + $0x730] sm:$0xff] }
 0x575   :  { %2098 = vmatpush1.msra.mxu0 %v1721_v42  ;;  %2169 = vmatpush1.msra.mxu1 %v1723_v43  ;;  %v1866_v42 = vld [vmem:[#allocation7 + $0x6e8] sm:$0xff]  ;;  %v1868_v43 = vld [vmem:[#allocation7 + $0x6f8] sm:$0xff] }
 0x576   :  { %2099 = vmatprep.subr.mxu0 %v1714_v44  ;;  %2170 = vmatprep.subr.mxu1 %v1716_v45  ;;  %v1865_v44 = vld [vmem:[#allocation7 + $0x6e0] sm:$0xff]  ;;  %v1867_v45 = vld [vmem:[#allocation7 + $0x6f0] sm:$0xff] }
 0x577   :  { %2100 = vmatpush1.msra.mxu0 %v1713_v46  ;;  %2171 = vmatpush1.msra.mxu1 %v1715_v47  ;;  %v1858_v46 = vld [vmem:[#allocation7 + $0x6a8] sm:$0xff]  ;;  %v1860_v47 = vld [vmem:[#allocation7 + $0x6b8] sm:$0xff] }
 0x578   :  { %2101 = vmatprep.subr.mxu0 %v1706_v48  ;;  %2172 = vmatprep.subr.mxu1 %v1708_v49  ;;  %v1857_v48 = vld [vmem:[#allocation7 + $0x6a0] sm:$0xff]  ;;  %v1859_v49 = vld [vmem:[#allocation7 + $0x6b0] sm:$0xff] }
 0x579   :  { %2102 = vmatpush1.msra.mxu0 %v1705_v50  ;;  %2173 = vmatpush1.msra.mxu1 %v1707_v51  ;;  %v1850_v50 = vld [vmem:[#allocation7 + $0x668] sm:$0xff]  ;;  %v1852_v51 = vld [vmem:[#allocation7 + $0x678] sm:$0xff] }
 0x57a   :  { %2103 = vmatprep.subr.mxu0 %v1698_v12  ;;  %2174 = vmatprep.subr.mxu1 %v1700_v52  ;;  %v1849_v12 = vld [vmem:[#allocation7 + $0x660] sm:$0xff]  ;;  %v1851_v52 = vld [vmem:[#allocation7 + $0x670] sm:$0xff] }
 0x57b   :  { %2104 = vmatpush1.msra.mxu0 %v1697_v53  ;;  %2175 = vmatpush1.msra.mxu1 %v1699_v54  ;;  %v1842_v53 = vld [vmem:[#allocation7 + $0x628] sm:$0xff]  ;;  %v1844_v54 = vld [vmem:[#allocation7 + $0x638] sm:$0xff] }
 0x57c   :  { %2105 = vmatprep.subr.mxu0 %v1690_v55  ;;  %2176 = vmatprep.subr.mxu1 %v1692_v56  ;;  %v1841_v55 = vld [vmem:[#allocation7 + $0x620] sm:$0xff]  ;;  %v1843_v56 = vld [vmem:[#allocation7 + $0x630] sm:$0xff] }
 0x57d   :  { %2106 = vmatpush1.msra.mxu0 %v1689_v57  ;;  %2177 = vmatpush1.msra.mxu1 %v1691_v58  ;;  %v1834_v57 = vld [vmem:[#allocation7 + $0x5e8] sm:$0xff]  ;;  %v1836_v58 = vld [vmem:[#allocation7 + $0x5f8] sm:$0xff] }
 0x57e   :  { %2107 = vmatprep.subr.mxu0 %v1682_v59  ;;  %2178 = vmatprep.subr.mxu1 %v1684_v60  ;;  %v1833_v59 = vld [vmem:[#allocation7 + $0x5e0] sm:$0xff]  ;;  %v1835_v60 = vld [vmem:[#allocation7 + $0x5f0] sm:$0xff] }
 0x57f   :  { %2108 = vmatpush1.msra.mxu0 %v1681_v61  ;;  %2179 = vmatpush1.msra.mxu1 %v1683_v62  ;;  %v1826_v61 = vld [vmem:[#allocation7 + $0x5a8] sm:$0xff]  ;;  %v1828_v62 = vld [vmem:[#allocation7 + $0x5b8] sm:$0xff] }
 0x580   :  { %2109 = vmatprep.subr.mxu0 %v1674_v0  ;;  %2180 = vmatprep.subr.mxu1 %v1676_v2  ;;  %v1825_v0 = vld [vmem:[#allocation7 + $0x5a0] sm:$0xff]  ;;  %v1827_v2 = vld [vmem:[#allocation7 + $0x5b0] sm:$0xff] }
 0x581   :  { %2110 = vmatpush1.msra.mxu0 %v1673_v3  ;;  %2181 = vmatpush1.msra.mxu1 %v1675_v4  ;;  %v1818_v3 = vld [vmem:[#allocation7 + $0x568] sm:$0xff]  ;;  %v1820_v4 = vld [vmem:[#allocation7 + $0x578] sm:$0xff] }
 0x582   :  { %2111 = vmatprep.subr.mxu0 %v1666_v5  ;;  %2182 = vmatprep.subr.mxu1 %v1668_v6  ;;  %v1817_v5 = vld [vmem:[#allocation7 + $0x560] sm:$0xff]  ;;  %v1819_v6 = vld [vmem:[#allocation7 + $0x570] sm:$0xff] }
 0x583   :  { %2112 = vmatpush1.msra.mxu0 %v1665_v7  ;;  %2183 = vmatpush1.msra.mxu1 %v1667_v8  ;;  %v1810_v7 = vld [vmem:[#allocation7 + $0x528] sm:$0xff]  ;;  %v1812_v8 = vld [vmem:[#allocation7 + $0x538] sm:$0xff] }
 0x584   :  { %2113 = vmatprep.subr.mxu0 %v1658_v16  ;;  %2184 = vmatprep.subr.mxu1 %v1660_v63  ;;  %v1809_v16 = vld [vmem:[#allocation7 + $0x520] sm:$0xff]  ;;  %v1811_v63 = vld [vmem:[#allocation7 + $0x530] sm:$0xff] }
 0x585   :  { %2114 = vmatpush1.msra.mxu0 %v1657_v17  ;;  %2185 = vmatpush1.msra.mxu1 %v1659_v18  ;;  %v1802_v17 = vld [vmem:[#allocation7 + $0x4e8] sm:$0xff]  ;;  %v1804_v18 = vld [vmem:[#allocation7 + $0x4f8] sm:$0xff] }
 0x586   :  { %2115 = vmatprep.subr.mxu0 %v1650_v1  ;;  %2186 = vmatprep.subr.mxu1 %v1652_v19  ;;  %v1801_v1 = vld [vmem:[#allocation7 + $0x4e0] sm:$0xff]  ;;  %v1803_v19 = vld [vmem:[#allocation7 + $0x4f0] sm:$0xff] }
 0x587   :  { %2116 = vmatpush1.msra.mxu0 %v1649_v20  ;;  %2187 = vmatpush1.msra.mxu1 %v1651_v22  ;;  %v1794_v20 = vld [vmem:[#allocation7 + $0x4a8] sm:$0xff]  ;;  %v1796_v22 = vld [vmem:[#allocation7 + $0x4b8] sm:$0xff] }
 0x588   :  { %2117 = vmatprep.subr.mxu0 %v1898_v23  ;;  %2188 = vmatprep.subr.mxu1 %v1900_v25  ;;  %v1793_v23 = vld [vmem:[#allocation7 + $0x4a0] sm:$0xff]  ;;  %v1795_v25 = vld [vmem:[#allocation7 + $0x4b0] sm:$0xff] }
 0x589   :  { %2118 = vmatpush2.msra.mxu0 %v1897_v26  ;;  %2189 = vmatpush2.msra.mxu1 %v1899_v29  ;;  %v1786_v26 = vld [vmem:[#allocation7 + $0x468] sm:$0xff]  ;;  %v1788_v29 = vld [vmem:[#allocation7 + $0x478] sm:$0xff] }
 0x58a   :  { %2119 = vmatprep.subr.mxu0 %v1890_v30  ;;  %2190 = vmatprep.subr.mxu1 %v1892_v31  ;;  %v1785_v30 = vld [vmem:[#allocation7 + $0x460] sm:$0xff]  ;;  %v1787_v31 = vld [vmem:[#allocation7 + $0x470] sm:$0xff] }
 0x58b   :  { %2120 = vmatpush2.msra.mxu0 %v1889_v32  ;;  %2191 = vmatpush2.msra.mxu1 %v1891_v33  ;;  %v1778_v32 = vld [vmem:[#allocation7 + $0x428] sm:$0xff]  ;;  %v1780_v33 = vld [vmem:[#allocation7 + $0x438] sm:$0xff] }
 0x58c   :  { %2121 = vmatprep.subr.mxu0 %v1882_v34  ;;  %2192 = vmatprep.subr.mxu1 %v1884_v35  ;;  %v1777_v34 = vld [vmem:[#allocation7 + $0x420] sm:$0xff]  ;;  %v1779_v35 = vld [vmem:[#allocation7 + $0x430] sm:$0xff] }
 0x58d   :  { %2122 = vmatpush2.msra.mxu0 %v1881_v36  ;;  %2193 = vmatpush2.msra.mxu1 %v1883_v37  ;;  %v2266_v36 = vld [vmem:[#allocation8 + $0xf8] sm:$0xff] }
 0x58e   :  { %2123 = vmatprep.subr.mxu0 %v1874_v38  ;;  %2194 = vmatprep.subr.mxu1 %v1876_v39  ;;  %v2330_v37 = vld [vmem:[#allocation8 + $0x2f8] sm:$0xff]  ;;  %v2265_v38 = vld [vmem:[#allocation8 + $0xf0] sm:$0xff] }
 0x58f   :  { %2124 = vmatpush2.msra.mxu0 %v1873_v40  ;;  %2195 = vmatpush2.msra.mxu1 %v1875_v41  ;;  %v2329_v39 = vld [vmem:[#allocation8 + $0x2f0] sm:$0xff]  ;;  %v2264_v40 = vld [vmem:[#allocation8 + $0xe8] sm:$0xff] }
 0x590   :  { %2125 = vmatprep.subr.mxu0 %v1866_v42  ;;  %2196 = vmatprep.subr.mxu1 %v1868_v43  ;;  %v2328_v41 = vld [vmem:[#allocation8 + $0x2e8] sm:$0xff]  ;;  %v2263_v42 = vld [vmem:[#allocation8 + $0xe0] sm:$0xff] }
 0x591   :  { %2126 = vmatpush2.msra.mxu0 %v1865_v44  ;;  %2197 = vmatpush2.msra.mxu1 %v1867_v45  ;;  %v2327_v43 = vld [vmem:[#allocation8 + $0x2e0] sm:$0xff]  ;;  %v2262_v44 = vld [vmem:[#allocation8 + $0xd8] sm:$0xff] }
 0x592   :  { %2127 = vmatprep.subr.mxu0 %v1858_v46  ;;  %2198 = vmatprep.subr.mxu1 %v1860_v47  ;;  %v2326_v45 = vld [vmem:[#allocation8 + $0x2d8] sm:$0xff]  ;;  %v2261_v46 = vld [vmem:[#allocation8 + $0xd0] sm:$0xff] }
 0x593   :  { %2128 = vmatpush2.msra.mxu0 %v1857_v48  ;;  %2199 = vmatpush2.msra.mxu1 %v1859_v49  ;;  %v2325_v47 = vld [vmem:[#allocation8 + $0x2d0] sm:$0xff]  ;;  %v2260_v48 = vld [vmem:[#allocation8 + $0xc8] sm:$0xff] }
 0x594   :  { %2129 = vmatprep.subr.mxu0 %v1850_v50  ;;  %2200 = vmatprep.subr.mxu1 %v1852_v51  ;;  %v2324_v49 = vld [vmem:[#allocation8 + $0x2c8] sm:$0xff]  ;;  %v2323_v50 = vld [vmem:[#allocation8 + $0x2c0] sm:$0xff]  ;;  %v2258_v51 = vld [vmem:[#allocation8 + $0xb8] sm:$0xff] }
 0x595   :  { %2130 = vmatpush2.msra.mxu0 %v1849_v12  ;;  %2201 = vmatpush2.msra.mxu1 %v1851_v52  ;;  %v2322_v12 = vld [vmem:[#allocation8 + $0x2b8] sm:$0xff]  ;;  %v2257_v52 = vld [vmem:[#allocation8 + $0xb0] sm:$0xff] }
 0x596   :  { %2131 = vmatprep.subr.mxu0 %v1842_v53  ;;  %2202 = vmatprep.subr.mxu1 %v1844_v54  ;;  %v2321_v53 = vld [vmem:[#allocation8 + $0x2b0] sm:$0xff]  ;;  %v2256_v54 = vld [vmem:[#allocation8 + $0xa8] sm:$0xff] }
 0x597   :  { %2132 = vmatpush2.msra.mxu0 %v1841_v55  ;;  %2203 = vmatpush2.msra.mxu1 %v1843_v56  ;;  %v2320_v55 = vld [vmem:[#allocation8 + $0x2a8] sm:$0xff]  ;;  %v2255_v56 = vld [vmem:[#allocation8 + $0xa0] sm:$0xff] }
 0x598   :  { %2133 = vmatprep.subr.mxu0 %v1834_v57  ;;  %2204 = vmatprep.subr.mxu1 %v1836_v58  ;;  %v2319_v57 = vld [vmem:[#allocation8 + $0x2a0] sm:$0xff]  ;;  %v2254_v58 = vld [vmem:[#allocation8 + $0x98] sm:$0xff] }
 0x599   :  { %2134 = vmatpush2.msra.mxu0 %v1833_v59  ;;  %2205 = vmatpush2.msra.mxu1 %v1835_v60  ;;  %v2318_v59 = vld [vmem:[#allocation8 + $0x298] sm:$0xff]  ;;  %v2253_v60 = vld [vmem:[#allocation8 + $0x90] sm:$0xff] }
 0x59a   :  { %2135 = vmatprep.subr.mxu0 %v1826_v61  ;;  %2206 = vmatprep.subr.mxu1 %v1828_v62  ;;  %v2317_v61 = vld [vmem:[#allocation8 + $0x290] sm:$0xff]  ;;  %v2252_v62 = vld [vmem:[#allocation8 + $0x88] sm:$0xff] }
 0x59b   :  { %2136 = vmatpush2.msra.mxu0 %v1825_v0  ;;  %2207 = vmatpush2.msra.mxu1 %v1827_v2  ;;  %v2316_v0 = vld [vmem:[#allocation8 + $0x288] sm:$0xff]  ;;  %v2251_v2 = vld [vmem:[#allocation8 + $0x80] sm:$0xff] }
 0x59c   :  { %2137 = vmatprep.subr.mxu0 %v1818_v3  ;;  %2208 = vmatprep.subr.mxu1 %v1820_v4  ;;  %v2315_v3 = vld [vmem:[#allocation8 + $0x280] sm:$0xff]  ;;  %v2250_v4 = vld [vmem:[#allocation8 + $0x78] sm:$0xff] }
 0x59d   :  { %2138 = vmatpush2.msra.mxu0 %v1817_v5  ;;  %2209 = vmatpush2.msra.mxu1 %v1819_v6  ;;  %v2314_v5 = vld [vmem:[#allocation8 + $0x278] sm:$0xff]  ;;  %v2249_v6 = vld [vmem:[#allocation8 + $0x70] sm:$0xff] }
 0x59e   :  { %2139 = vmatprep.subr.mxu0 %v1810_v7  ;;  %2210 = vmatprep.subr.mxu1 %v1812_v8  ;;  %v2313_v7 = vld [vmem:[#allocation8 + $0x270] sm:$0xff]  ;;  %v2248_v8 = vld [vmem:[#allocation8 + $0x68] sm:$0xff] }
 0x59f   :  { %2140 = vmatpush2.msra.mxu0 %v1809_v16  ;;  %2211 = vmatpush2.msra.mxu1 %v1811_v63  ;;  %v2312_v16 = vld [vmem:[#allocation8 + $0x268] sm:$0xff]  ;;  %v2247_v63 = vld [vmem:[#allocation8 + $0x60] sm:$0xff] }
 0x5a0   :  { %2141 = vmatprep.subr.mxu0 %v1802_v17  ;;  %2212 = vmatprep.subr.mxu1 %v1804_v18  ;;  %v2311_v17 = vld [vmem:[#allocation8 + $0x260] sm:$0xff]  ;;  %v2246_v18 = vld [vmem:[#allocation8 + $0x58] sm:$0xff] }
 0x5a1   :  { %2142 = vmatpush2.msra.mxu0 %v1801_v1  ;;  %2213 = vmatpush2.msra.mxu1 %v1803_v19  ;;  %v2310_v1 = vld [vmem:[#allocation8 + $0x258] sm:$0xff]  ;;  %v2245_v19 = vld [vmem:[#allocation8 + $0x50] sm:$0xff] }
 0x5a2   :  { %2143 = vmatprep.subr.mxu0 %v1794_v20  ;;  %2214 = vmatprep.subr.mxu1 %v1796_v22  ;;  %v2309_v20 = vld [vmem:[#allocation8 + $0x250] sm:$0xff]  ;;  %v2244_v22 = vld [vmem:[#allocation8 + $0x48] sm:$0xff] }
 0x5a3   :  { %2144 = vmatpush2.msra.mxu0 %v1793_v23  ;;  %2215 = vmatpush2.msra.mxu1 %v1795_v25  ;;  %v2308_v23 = vld [vmem:[#allocation8 + $0x248] sm:$0xff]  ;;  %v2243_v25 = vld [vmem:[#allocation8 + $0x40] sm:$0xff] }
 0x5a4   :  { %2145 = vmatprep.subr.mxu0 %v1786_v26  ;;  %2216 = vmatprep.subr.mxu1 %v1788_v29  ;;  %v2307_v26 = vld [vmem:[#allocation8 + $0x240] sm:$0xff]  ;;  %v2242_v29 = vld [vmem:[#allocation8 + $0x38] sm:$0xff] }
 0x5a5   :  { %2146 = vmatpush2.msra.mxu0 %v1785_v30  ;;  %2217 = vmatpush2.msra.mxu1 %v1787_v31  ;;  %v2306_v30 = vld [vmem:[#allocation8 + $0x238] sm:$0xff]  ;;  %v2241_v31 = vld [vmem:[#allocation8 + $0x30] sm:$0xff] }
 0x5a6   :  { %2147 = vmatprep.subr.mxu0 %v1778_v32  ;;  %2218 = vmatprep.subr.mxu1 %v1780_v33  ;;  %v2305_v32 = vld [vmem:[#allocation8 + $0x230] sm:$0xff]  ;;  %v2240_v33 = vld [vmem:[#allocation8 + $0x28] sm:$0xff] }
 0x5a7   :  { %2148 = vmatpush2.msra.mxu0 %v1777_v34  ;;  %2219 = vmatpush2.msra.mxu1 %v1779_v35  ;;  %v2304_v34 = vld [vmem:[#allocation8 + $0x228] sm:$0xff]  ;;  %v2239_v35 = vld [vmem:[#allocation8 + $0x20] sm:$0xff] }
 0x5a8   :  { %2150 = vmatmul.mubr.f32.vlgmr.msra.gmra.mxu0 %v3412_v15  ;;  %2221 = vmatmul.mubr.f32.vlgmr.msra.gmra.mxu1 %v3412_v15  ;;  %v2259_v15 = vld [vmem:[#allocation8 + $0xc0] sm:$0xff] }
 0x5a9   :  { %2503 = vmatprep.subr.mxu0 %v2266_v36  ;;  %2574 = vmatprep.subr.mxu1 %v2330_v37  ;;  %v2303_v36 = vld [vmem:[#allocation8 + $0x220] sm:$0xff]  ;;  %v2238_v37 = vld [vmem:[#allocation8 + $0x18] sm:$0xff] }
 0x5aa   :  { %2504 = vmatpush1.msra.mxu0 %v2265_v38  ;;  %2575 = vmatpush1.msra.mxu1 %v2329_v39  ;;  %v2302_v38 = vld [vmem:[#allocation8 + $0x218] sm:$0xff]  ;;  %v2237_v39 = vld [vmem:[#allocation8 + $0x10] sm:$0xff] }
 0x5ab   :  { %2505 = vmatprep.subr.mxu0 %v2264_v40  ;;  %2576 = vmatprep.subr.mxu1 %v2328_v41  ;;  %v2301_v40 = vld [vmem:[#allocation8 + $0x210] sm:$0xff]  ;;  %v2236_v41 = vld [vmem:[#allocation8 + $0x8] sm:$0xff] }
 0x5ac   :  { %2506 = vmatpush1.msra.mxu0 %v2263_v42  ;;  %2577 = vmatpush1.msra.mxu1 %v2327_v43  ;;  %v2300_v42 = vld [vmem:[#allocation8 + $0x208] sm:$0xff]  ;;  %v2235_v43 = vld [vmem:[#allocation8] sm:$0xff] }
 0x5ad   :  { %2507 = vmatprep.subr.mxu0 %v2262_v44  ;;  %2578 = vmatprep.subr.mxu1 %v2326_v45  ;;  %v2299_v44 = vld [vmem:[#allocation8 + $0x200] sm:$0xff]  ;;  %v2298_v45 = vld [vmem:[#allocation8 + $0x1f8] sm:$0xff] }
 0x5ae   :  { %2508 = vmatpush1.msra.mxu0 %v2261_v46  ;;  %2579 = vmatpush1.msra.mxu1 %v2325_v47  ;;  %v2362_v46 = vld [vmem:[#allocation8 + $0x3f8] sm:$0xff]  ;;  %v2297_v47 = vld [vmem:[#allocation8 + $0x1f0] sm:$0xff] }
 0x5af   :  { %2509 = vmatprep.subr.mxu0 %v2260_v48  ;;  %2580 = vmatprep.subr.mxu1 %v2324_v49  ;;  %v2361_v48 = vld [vmem:[#allocation8 + $0x3f0] sm:$0xff]  ;;  %v2296_v49 = vld [vmem:[#allocation8 + $0x1e8] sm:$0xff] }
 0x5b0   :  { %2510 = vmatpush1.msra.mxu0 %v2259_v15  ;;  %2581 = vmatpush1.msra.mxu1 %v2323_v50  ;;  %v2360_v15 = vld [vmem:[#allocation8 + $0x3e8] sm:$0xff]  ;;  %v2295_v50 = vld [vmem:[#allocation8 + $0x1e0] sm:$0xff] }
 0x5b1   :  { %2511 = vmatprep.subr.mxu0 %v2258_v51  ;;  %2582 = vmatprep.subr.mxu1 %v2322_v12  ;;  %v2359_v51 = vld [vmem:[#allocation8 + $0x3e0] sm:$0xff]  ;;  %v2294_v12 = vld [vmem:[#allocation8 + $0x1d8] sm:$0xff] }
 0x5b2   :  { %2512 = vmatpush1.msra.mxu0 %v2257_v52  ;;  %2583 = vmatpush1.msra.mxu1 %v2321_v53  ;;  %v2358_v52 = vld [vmem:[#allocation8 + $0x3d8] sm:$0xff]  ;;  %v2293_v53 = vld [vmem:[#allocation8 + $0x1d0] sm:$0xff] }
 0x5b3   :  { %2513 = vmatprep.subr.mxu0 %v2256_v54  ;;  %2584 = vmatprep.subr.mxu1 %v2320_v55  ;;  %v2357_v54 = vld [vmem:[#allocation8 + $0x3d0] sm:$0xff]  ;;  %v2292_v55 = vld [vmem:[#allocation8 + $0x1c8] sm:$0xff] }
 0x5b4   :  { %2514 = vmatpush1.msra.mxu0 %v2255_v56  ;;  %2585 = vmatpush1.msra.mxu1 %v2319_v57  ;;  %v2356_v56 = vld [vmem:[#allocation8 + $0x3c8] sm:$0xff]  ;;  %v2291_v57 = vld [vmem:[#allocation8 + $0x1c0] sm:$0xff] }
 0x5b5   :  { %2515 = vmatprep.subr.mxu0 %v2254_v58  ;;  %2586 = vmatprep.subr.mxu1 %v2318_v59  ;;  %v2355_v58 = vld [vmem:[#allocation8 + $0x3c0] sm:$0xff]  ;;  %v2290_v59 = vld [vmem:[#allocation8 + $0x1b8] sm:$0xff] }
 0x5b6   :  { %2516 = vmatpush1.msra.mxu0 %v2253_v60  ;;  %2587 = vmatpush1.msra.mxu1 %v2317_v61  ;;  %v2354_v60 = vld [vmem:[#allocation8 + $0x3b8] sm:$0xff]  ;;  %v2289_v61 = vld [vmem:[#allocation8 + $0x1b0] sm:$0xff] }
 0x5b7   :  { %2517 = vmatprep.subr.mxu0 %v2252_v62  ;;  %2588 = vmatprep.subr.mxu1 %v2316_v0  ;;  %v2353_v62 = vld [vmem:[#allocation8 + $0x3b0] sm:$0xff]  ;;  %v2288_v0 = vld [vmem:[#allocation8 + $0x1a8] sm:$0xff] }
 0x5b8   :  { %2518 = vmatpush1.msra.mxu0 %v2251_v2  ;;  %2589 = vmatpush1.msra.mxu1 %v2315_v3  ;;  %v2352_v2 = vld [vmem:[#allocation8 + $0x3a8] sm:$0xff]  ;;  %v2287_v3 = vld [vmem:[#allocation8 + $0x1a0] sm:$0xff] }
 0x5b9   :  { %2519 = vmatprep.subr.mxu0 %v2250_v4  ;;  %2590 = vmatprep.subr.mxu1 %v2314_v5  ;;  %v2351_v4 = vld [vmem:[#allocation8 + $0x3a0] sm:$0xff]  ;;  %v2286_v5 = vld [vmem:[#allocation8 + $0x198] sm:$0xff] }
 0x5ba   :  { %2520 = vmatpush1.msra.mxu0 %v2249_v6  ;;  %2591 = vmatpush1.msra.mxu1 %v2313_v7  ;;  %v2350_v6 = vld [vmem:[#allocation8 + $0x398] sm:$0xff]  ;;  %v2285_v7 = vld [vmem:[#allocation8 + $0x190] sm:$0xff] }
 0x5bb   :  { %2521 = vmatprep.subr.mxu0 %v2248_v8  ;;  %2592 = vmatprep.subr.mxu1 %v2312_v16  ;;  %v2349_v8 = vld [vmem:[#allocation8 + $0x390] sm:$0xff]  ;;  %v2284_v16 = vld [vmem:[#allocation8 + $0x188] sm:$0xff] }
 0x5bc   :  { %2522 = vmatpush1.msra.mxu0 %v2247_v63  ;;  %2593 = vmatpush1.msra.mxu1 %v2311_v17  ;;  %v2348_v63 = vld [vmem:[#allocation8 + $0x388] sm:$0xff]  ;;  %v2283_v17 = vld [vmem:[#allocation8 + $0x180] sm:$0xff] }
 0x5bd   :  { %2523 = vmatprep.subr.mxu0 %v2246_v18  ;;  %2594 = vmatprep.subr.mxu1 %v2310_v1  ;;  %v2347_v18 = vld [vmem:[#allocation8 + $0x380] sm:$0xff]  ;;  %v2282_v1 = vld [vmem:[#allocation8 + $0x178] sm:$0xff] }
 0x5be   :  { %2524 = vmatpush1.msra.mxu0 %v2245_v19  ;;  %2595 = vmatpush1.msra.mxu1 %v2309_v20  ;;  %v2346_v19 = vld [vmem:[#allocation8 + $0x378] sm:$0xff]  ;;  %v2281_v20 = vld [vmem:[#allocation8 + $0x170] sm:$0xff] }
 0x5bf   :  { %2525 = vmatprep.subr.mxu0 %v2244_v22  ;;  %2596 = vmatprep.subr.mxu1 %v2308_v23  ;;  %v2345_v22 = vld [vmem:[#allocation8 + $0x370] sm:$0xff]  ;;  %v2280_v23 = vld [vmem:[#allocation8 + $0x168] sm:$0xff] }
 0x5c0   :  { %2526 = vmatpush1.msra.mxu0 %v2243_v25  ;;  %2597 = vmatpush1.msra.mxu1 %v2307_v26  ;;  %v2344_v25 = vld [vmem:[#allocation8 + $0x368] sm:$0xff]  ;;  %v2279_v26 = vld [vmem:[#allocation8 + $0x160] sm:$0xff] }
 0x5c1   :  { %2527 = vmatprep.subr.mxu0 %v2242_v29  ;;  %2598 = vmatprep.subr.mxu1 %v2306_v30  ;;  %v2343_v29 = vld [vmem:[#allocation8 + $0x360] sm:$0xff]  ;;  %v2278_v30 = vld [vmem:[#allocation8 + $0x158] sm:$0xff] }
 0x5c2   :  { %2528 = vmatpush1.msra.mxu0 %v2241_v31  ;;  %2599 = vmatpush1.msra.mxu1 %v2305_v32  ;;  %v2342_v31 = vld [vmem:[#allocation8 + $0x358] sm:$0xff]  ;;  %v2277_v32 = vld [vmem:[#allocation8 + $0x150] sm:$0xff] }
 0x5c3   :  { %2529 = vmatprep.subr.mxu0 %v2240_v33  ;;  %2600 = vmatprep.subr.mxu1 %v2304_v34  ;;  %v2341_v33 = vld [vmem:[#allocation8 + $0x350] sm:$0xff]  ;;  %v2276_v34 = vld [vmem:[#allocation8 + $0x148] sm:$0xff] }
 0x5c4   :  { %2530 = vmatpush1.msra.mxu0 %v2239_v35  ;;  %2601 = vmatpush1.msra.mxu1 %v2303_v36  ;;  %v2340_v35 = vld [vmem:[#allocation8 + $0x348] sm:$0xff]  ;;  %v2275_v36 = vld [vmem:[#allocation8 + $0x140] sm:$0xff] }
 0x5c5   :  { %2531 = vmatprep.subr.mxu0 %v2238_v37  ;;  %2602 = vmatprep.subr.mxu1 %v2302_v38  ;;  %v2339_v37 = vld [vmem:[#allocation8 + $0x340] sm:$0xff]  ;;  %v2274_v38 = vld [vmem:[#allocation8 + $0x138] sm:$0xff] }
 0x5c6   :  { %2532 = vmatpush1.msra.mxu0 %v2237_v39  ;;  %2603 = vmatpush1.msra.mxu1 %v2301_v40  ;;  %v2338_v39 = vld [vmem:[#allocation8 + $0x338] sm:$0xff]  ;;  %v2273_v40 = vld [vmem:[#allocation8 + $0x130] sm:$0xff] }
 0x5c7   :  { %2533 = vmatprep.subr.mxu0 %v2236_v41  ;;  %2604 = vmatprep.subr.mxu1 %v2300_v42  ;;  %v2337_v41 = vld [vmem:[#allocation8 + $0x330] sm:$0xff]  ;;  %v2272_v42 = vld [vmem:[#allocation8 + $0x128] sm:$0xff] }
 0x5c8   :  { %2534 = vmatpush1.msra.mxu0 %v2235_v43  ;;  %2605 = vmatpush1.msra.mxu1 %v2299_v44  ;;  %v2336_v43 = vld [vmem:[#allocation8 + $0x328] sm:$0xff]  ;;  %v2271_v44 = vld [vmem:[#allocation8 + $0x120] sm:$0xff] }
 0x5c9   :  { %2535 = vmatprep.subr.mxu0 %v2298_v45  ;;  %2606 = vmatprep.subr.mxu1 %v2362_v46  ;;  %v2335_v45 = vld [vmem:[#allocation8 + $0x320] sm:$0xff]  ;;  %v2270_v46 = vld [vmem:[#allocation8 + $0x118] sm:$0xff] }
 0x5ca   :  { %2536 = vmatpush2.msra.mxu0 %v2297_v47  ;;  %2607 = vmatpush2.msra.mxu1 %v2361_v48  ;;  %v2334_v47 = vld [vmem:[#allocation8 + $0x318] sm:$0xff]  ;;  %v2269_v48 = vld [vmem:[#allocation8 + $0x110] sm:$0xff] }
 0x5cb   :  { %2537 = vmatprep.subr.mxu0 %v2296_v49  ;;  %2608 = vmatprep.subr.mxu1 %v2360_v15  ;;  %v2333_v49 = vld [vmem:[#allocation8 + $0x310] sm:$0xff]  ;;  %v2268_v15 = vld [vmem:[#allocation8 + $0x108] sm:$0xff] }
 0x5cc   :  { %2538 = vmatpush2.msra.mxu0 %v2295_v50  ;;  %2609 = vmatpush2.msra.mxu1 %v2359_v51  ;;  %v2332_v50 = vld [vmem:[#allocation8 + $0x308] sm:$0xff]  ;;  %v2267_v51 = vld [vmem:[#allocation8 + $0x100] sm:$0xff] }
 0x5cd   :  { %2539 = vmatprep.subr.mxu0 %v2294_v12  ;;  %2610 = vmatprep.subr.mxu1 %v2358_v52  ;;  %v2331_v12 = vld [vmem:[#allocation8 + $0x300] sm:$0xff]  ;;  %v2394_v52 = vld [vmem:[#allocation8 + $0x4f8] sm:$0xff] }
 0x5ce   :  { %2540 = vmatpush2.msra.mxu0 %v2293_v53  ;;  %2611 = vmatpush2.msra.mxu1 %v2357_v54  ;;  %v2458_v53 = vld [vmem:[#allocation8 + $0x6f8] sm:$0xff]  ;;  %v3421_v54 = vld [vmem:[%s3467_s14] sm:$0xff] }
 0x5cf   :  { %2541 = vmatprep.subr.mxu0 %v2292_v55  ;;  %2612 = vmatprep.subr.mxu1 %v2356_v56  ;;  %v1906_v55 = vrot.slane %v3421_v54, %v3167_v11  ;;  %v1914_v56 = vrot.slane %v3421_v54, %v382_v10  ;;  %v2393_v10 = vld [vmem:[#allocation8 + $0x4f0] sm:$0xff] }
 0x5d0   :  { %2542 = vmatpush2.msra.mxu0 %v2291_v57  ;;  %2613 = vmatpush2.msra.mxu1 %v2355_v58  ;;  %v1910_v57 = vrot.slane %v3421_v54, %v3175_v13  ;;  %v1918_v58 = vrot.slane %v3421_v54, %v386_v14  ;;  %v2391_v14 = vld [vmem:[#allocation8 + $0x4e0] sm:$0xff] }
 0x5d1   :  { %2543 = vmatprep.subr.mxu0 %v2290_v59  ;;  %2614 = vmatprep.subr.mxu1 %v2354_v60 }
 0x5d2   :  { %2544 = vmatpush2.msra.mxu0 %v2289_v61  ;;  %2615 = vmatpush2.msra.mxu1 %v2353_v62 }
 0x5d3   :  { %2545 = vmatprep.subr.mxu0 %v2288_v0  ;;  %2616 = vmatprep.subr.mxu1 %v2352_v2 }
 0x5d4   :  { %2546 = vmatpush2.msra.mxu0 %v2287_v3  ;;  %2617 = vmatpush2.msra.mxu1 %v2351_v4 }
 0x5d5   :  { %2547 = vmatprep.subr.mxu0 %v2286_v5  ;;  %2618 = vmatprep.subr.mxu1 %v2350_v6 }
 0x5d6   :  { %2548 = vmatpush2.msra.mxu0 %v2285_v7  ;;  %2619 = vmatpush2.msra.mxu1 %v2349_v8 }
 0x5d7   :  { %2549 = vmatprep.subr.mxu0 %v2284_v16  ;;  %2620 = vmatprep.subr.mxu1 %v2348_v63  ;;  %v2457_v16 = vld [vmem:[#allocation8 + $0x6f0] sm:$0xff]  ;;  %v2392_v63 = vld [vmem:[#allocation8 + $0x4e8] sm:$0xff] }
 0x5d8   :  { %2550 = vmatpush2.msra.mxu0 %v2283_v17  ;;  %2621 = vmatpush2.msra.mxu1 %v2347_v18  ;;  %v2456_v17 = vld [vmem:[#allocation8 + $0x6e8] sm:$0xff]  ;;  %v2455_v18 = vld [vmem:[#allocation8 + $0x6e0] sm:$0xff] }
 0x5d9   :  { %2551 = vmatprep.subr.mxu0 %v2282_v1  ;;  %2622 = vmatprep.subr.mxu1 %v2346_v19  ;;  %v2390_v1 = vld [vmem:[#allocation8 + $0x4d8] sm:$0xff] }
 0x5da   :  { %2552 = vmatpush2.msra.mxu0 %v2281_v20  ;;  %2623 = vmatpush2.msra.mxu1 %v2345_v22  ;;  %v2454_v19 = vld [vmem:[#allocation8 + $0x6d8] sm:$0xff]  ;;  %v2389_v20 = vld [vmem:[#allocation8 + $0x4d0] sm:$0xff] }
 0x5db   :  { %2553 = vmatprep.subr.mxu0 %v2280_v23  ;;  %2624 = vmatprep.subr.mxu1 %v2344_v25  ;;  %v2453_v22 = vld [vmem:[#allocation8 + $0x6d0] sm:$0xff]  ;;  %v2388_v23 = vld [vmem:[#allocation8 + $0x4c8] sm:$0xff] }
 0x5dc   :  { %2554 = vmatpush2.msra.mxu0 %v2279_v26  ;;  %2625 = vmatpush2.msra.mxu1 %v2343_v29  ;;  %v2452_v25 = vld [vmem:[#allocation8 + $0x6c8] sm:$0xff]  ;;  %v2387_v26 = vld [vmem:[#allocation8 + $0x4c0] sm:$0xff] }
 0x5dd   :  { %2555 = vmatprep.subr.mxu0 %v2278_v30  ;;  %2626 = vmatprep.subr.mxu1 %v2342_v31  ;;  %v2451_v29 = vld [vmem:[#allocation8 + $0x6c0] sm:$0xff]  ;;  %v2386_v30 = vld [vmem:[#allocation8 + $0x4b8] sm:$0xff] }
 0x5de   :  { %2556 = vmatpush2.msra.mxu0 %v2277_v32  ;;  %2627 = vmatpush2.msra.mxu1 %v2341_v33  ;;  %v2450_v31 = vld [vmem:[#allocation8 + $0x6b8] sm:$0xff]  ;;  %v2385_v32 = vld [vmem:[#allocation8 + $0x4b0] sm:$0xff] }
 0x5df   :  { %2557 = vmatprep.subr.mxu0 %v2276_v34  ;;  %2628 = vmatprep.subr.mxu1 %v2340_v35  ;;  %v2449_v33 = vld [vmem:[#allocation8 + $0x6b0] sm:$0xff]  ;;  %v2384_v34 = vld [vmem:[#allocation8 + $0x4a8] sm:$0xff] }
 0x5e0   :  { %2558 = vmatpush2.msra.mxu0 %v2275_v36  ;;  %2629 = vmatpush2.msra.mxu1 %v2339_v37  ;;  %v2448_v35 = vld [vmem:[#allocation8 + $0x6a8] sm:$0xff]  ;;  %v2383_v36 = vld [vmem:[#allocation8 + $0x4a0] sm:$0xff] }
 0x5e1   :  { %2559 = vmatprep.subr.mxu0 %v2274_v38  ;;  %2630 = vmatprep.subr.mxu1 %v2338_v39  ;;  %v2447_v37 = vld [vmem:[#allocation8 + $0x6a0] sm:$0xff]  ;;  %v2382_v38 = vld [vmem:[#allocation8 + $0x498] sm:$0xff] }
 0x5e2   :  { %2560 = vmatpush2.msra.mxu0 %v2273_v40  ;;  %2631 = vmatpush2.msra.mxu1 %v2337_v41  ;;  %v2446_v39 = vld [vmem:[#allocation8 + $0x698] sm:$0xff]  ;;  %v2381_v40 = vld [vmem:[#allocation8 + $0x490] sm:$0xff] }
 0x5e3   :  { %2561 = vmatprep.subr.mxu0 %v2272_v42  ;;  %2632 = vmatprep.subr.mxu1 %v2336_v43  ;;  %v2445_v41 = vld [vmem:[#allocation8 + $0x690] sm:$0xff]  ;;  %v2380_v42 = vld [vmem:[#allocation8 + $0x488] sm:$0xff] }
 0x5e4   :  { %2562 = vmatpush2.msra.mxu0 %v2271_v44  ;;  %2633 = vmatpush2.msra.mxu1 %v2335_v45  ;;  %v2444_v43 = vld [vmem:[#allocation8 + $0x688] sm:$0xff]  ;;  %v2379_v44 = vld [vmem:[#allocation8 + $0x480] sm:$0xff] }
 0x5e5   :  { %2563 = vmatprep.subr.mxu0 %v2270_v46  ;;  %2634 = vmatprep.subr.mxu1 %v2334_v47  ;;  %v2443_v45 = vld [vmem:[#allocation8 + $0x680] sm:$0xff]  ;;  %v2378_v46 = vld [vmem:[#allocation8 + $0x478] sm:$0xff] }
 0x5e6   :  { %2564 = vmatpush2.msra.mxu0 %v2269_v48  ;;  %2635 = vmatpush2.msra.mxu1 %v2333_v49  ;;  %v2442_v47 = vld [vmem:[#allocation8 + $0x678] sm:$0xff]  ;;  %v2377_v48 = vld [vmem:[#allocation8 + $0x470] sm:$0xff] }
 0x5e7   :  { %2565 = vmatprep.subr.mxu0 %v2268_v15  ;;  %2636 = vmatprep.subr.mxu1 %v2332_v50  ;;  %v2441_v49 = vld [vmem:[#allocation8 + $0x670] sm:$0xff]  ;;  %v2376_v15 = vld [vmem:[#allocation8 + $0x468] sm:$0xff] }
 0x5e8   :  { %2566 = vmatpush2.msra.mxu0 %v2267_v51  ;;  %2637 = vmatpush2.msra.mxu1 %v2331_v12  ;;  %v2440_v50 = vld [vmem:[#allocation8 + $0x668] sm:$0xff]  ;;  %v2375_v51 = vld [vmem:[#allocation8 + $0x460] sm:$0xff] }
 0x5e9   :  { %2645 = vmatprep.subr.mxu0 %v2394_v52  ;;  %2716 = vmatprep.subr.mxu1 %v2458_v53  ;;  %v2439_v12 = vld [vmem:[#allocation8 + $0x660] sm:$0xff]  ;;  %v2374_v52 = vld [vmem:[#allocation8 + $0x458] sm:$0xff] }
 0x5ea   :  { %v2438_v53 = vld [vmem:[#allocation8 + $0x658] sm:$0xff] }
 0x627   :  { %v2009_v59 = vpop.f32.mrf.mxu0  ;;  %v2080_v60 = vpop.f32.mrf.mxu1 }
 0x628   :  { %v2010_v61 = vadd.f32 %v2009_v59, %v1906_v55  ;;  %v2081_v62 = vadd.f32 %v2080_v60, %v1914_v56  ;;  %v2373_v55 = vld [vmem:[#allocation8 + $0x450] sm:$0xff]  ;;  %v2371_v59 = vld [vmem:[#allocation8 + $0x440] sm:$0xff] }
 0x629   :  { %v2011_v0 = vpop.f32.mrf.mxu0  ;;  %v2082_v2 = vpop.f32.mrf.mxu1  ;;  %v2437_v56 = vld [vmem:[#allocation8 + $0x650] sm:$0xff]  ;;  %v2435_v60 = vld [vmem:[#allocation8 + $0x640] sm:$0xff] }
 0x62a   :  { %v2012_v3 = vadd.f32 %v2011_v0, %v1910_v57  ;;  %v2083_v4 = vadd.f32 %v2082_v2, %v1918_v58  ;;  %v2227_v7 = vmax.f32 %v2010_v61, 0.0  ;;  %v2229_v8 = vmax.f32 %v2081_v62, 0.0  ;;  %v2372_v57 = vld [vmem:[#allocation8 + $0x448] sm:$0xff]  ;;  %v2370_v61 = vld [vmem:[#allocation8 + $0x438] sm:$0xff]  ;;  %v2369_v0 = vld [vmem:[#allocation8 + $0x430] sm:$0xff] }
 0x62b   :  { %v2436_v58 = vld [vmem:[#allocation8 + $0x648] sm:$0xff]  ;;  %v2434_v62 = vld [vmem:[#allocation8 + $0x638] sm:$0xff]  ;;  %v2433_v2 = vld [vmem:[#allocation8 + $0x630] sm:$0xff] }
 0x62c   :  { %v2228_v5 = vmax.f32 %v2012_v3, 0.0  ;;  %v2230_v6 = vmax.f32 %v2083_v4, 0.0  ;;  %v2368_v3 = vld [vmem:[#allocation8 + $0x428] sm:$0xff] }
 0x62d   :  { %v2432_v4 = vld [vmem:[#allocation8 + $0x628] sm:$0xff] }
 0x62e   :  { %2567 = vmatprep.mubr.f32.mxu0 %v2228_v5  ;;  %2638 = vmatprep.mubr.f32.mxu1 %v2230_v6  ;;  %v2367_v5 = vld [vmem:[#allocation8 + $0x420] sm:$0xff] }
 0x62f   :  { %2568 = vmatmul.mubr.f32.vlgmr.msra.gmra.mxu0 %v2227_v7  ;;  %2639 = vmatmul.mubr.f32.vlgmr.msra.gmra.mxu1 %v2229_v8  ;;  %v2431_v6 = vld [vmem:[#allocation8 + $0x620] sm:$0xff]  ;;  %v2366_v7 = vld [vmem:[#allocation8 + $0x418] sm:$0xff] }
 0x630   :  { %2646 = vmatpush1.msra.mxu0 %v2393_v10  ;;  %2717 = vmatpush1.msra.mxu1 %v2457_v16  ;;  %v2430_v8 = vld [vmem:[#allocation8 + $0x618] sm:$0xff]  ;;  %v2365_v10 = vld [vmem:[#allocation8 + $0x410] sm:$0xff] }
 0x631   :  { %2647 = vmatprep.subr.mxu0 %v2392_v63  ;;  %2718 = vmatprep.subr.mxu1 %v2456_v17  ;;  %v2429_v16 = vld [vmem:[#allocation8 + $0x610] sm:$0xff]  ;;  %v2364_v63 = vld [vmem:[#allocation8 + $0x408] sm:$0xff] }
 0x632   :  { %2648 = vmatpush1.msra.mxu0 %v2391_v14  ;;  %2719 = vmatpush1.msra.mxu1 %v2455_v18  ;;  %v2428_v17 = vld [vmem:[#allocation8 + $0x608] sm:$0xff]  ;;  %v2363_v14 = vld [vmem:[#allocation8 + $0x400] sm:$0xff] }
 0x633   :  { %2649 = vmatprep.subr.mxu0 %v2390_v1  ;;  %2720 = vmatprep.subr.mxu1 %v2454_v19  ;;  %v2427_v18 = vld [vmem:[#allocation8 + $0x600] sm:$0xff]  ;;  %v2426_v1 = vld [vmem:[#allocation8 + $0x5f8] sm:$0xff] }
 0x634   :  { %2650 = vmatpush1.msra.mxu0 %v2389_v20  ;;  %2721 = vmatpush1.msra.mxu1 %v2453_v22  ;;  %v2490_v19 = vld [vmem:[#allocation8 + $0x7f8] sm:$0xff]  ;;  %v2425_v20 = vld [vmem:[#allocation8 + $0x5f0] sm:$0xff] }
 0x635   :  { %2651 = vmatprep.subr.mxu0 %v2388_v23  ;;  %2722 = vmatprep.subr.mxu1 %v2452_v25  ;;  %v2489_v22 = vld [vmem:[#allocation8 + $0x7f0] sm:$0xff]  ;;  %v2424_v23 = vld [vmem:[#allocation8 + $0x5e8] sm:$0xff] }
 0x636   :  { %2652 = vmatpush1.msra.mxu0 %v2387_v26  ;;  %2723 = vmatpush1.msra.mxu1 %v2451_v29  ;;  %v2488_v25 = vld [vmem:[#allocation8 + $0x7e8] sm:$0xff]  ;;  %v2423_v26 = vld [vmem:[#allocation8 + $0x5e0] sm:$0xff] }
 0x637   :  { %2653 = vmatprep.subr.mxu0 %v2386_v30  ;;  %2724 = vmatprep.subr.mxu1 %v2450_v31  ;;  %v2487_v29 = vld [vmem:[#allocation8 + $0x7e0] sm:$0xff]  ;;  %v2422_v30 = vld [vmem:[#allocation8 + $0x5d8] sm:$0xff] }
 0x638   :  { %2654 = vmatpush1.msra.mxu0 %v2385_v32  ;;  %2725 = vmatpush1.msra.mxu1 %v2449_v33  ;;  %v2486_v31 = vld [vmem:[#allocation8 + $0x7d8] sm:$0xff]  ;;  %v2421_v32 = vld [vmem:[#allocation8 + $0x5d0] sm:$0xff] }
 0x639   :  { %2655 = vmatprep.subr.mxu0 %v2384_v34  ;;  %2726 = vmatprep.subr.mxu1 %v2448_v35  ;;  %v2485_v33 = vld [vmem:[#allocation8 + $0x7d0] sm:$0xff]  ;;  %v2420_v34 = vld [vmem:[#allocation8 + $0x5c8] sm:$0xff] }
 0x63a   :  { %2656 = vmatpush1.msra.mxu0 %v2383_v36  ;;  %2727 = vmatpush1.msra.mxu1 %v2447_v37  ;;  %v2484_v35 = vld [vmem:[#allocation8 + $0x7c8] sm:$0xff]  ;;  %v2419_v36 = vld [vmem:[#allocation8 + $0x5c0] sm:$0xff] }
 0x63b   :  { %2657 = vmatprep.subr.mxu0 %v2382_v38  ;;  %2728 = vmatprep.subr.mxu1 %v2446_v39  ;;  %v2483_v37 = vld [vmem:[#allocation8 + $0x7c0] sm:$0xff]  ;;  %v2418_v38 = vld [vmem:[#allocation8 + $0x5b8] sm:$0xff] }
 0x63c   :  { %2658 = vmatpush1.msra.mxu0 %v2381_v40  ;;  %2729 = vmatpush1.msra.mxu1 %v2445_v41  ;;  %v2482_v39 = vld [vmem:[#allocation8 + $0x7b8] sm:$0xff]  ;;  %v2417_v40 = vld [vmem:[#allocation8 + $0x5b0] sm:$0xff] }
 0x63d   :  { %2659 = vmatprep.subr.mxu0 %v2380_v42  ;;  %2730 = vmatprep.subr.mxu1 %v2444_v43  ;;  %v2481_v41 = vld [vmem:[#allocation8 + $0x7b0] sm:$0xff]  ;;  %v2416_v42 = vld [vmem:[#allocation8 + $0x5a8] sm:$0xff] }
 0x63e   :  { %2660 = vmatpush1.msra.mxu0 %v2379_v44  ;;  %2731 = vmatpush1.msra.mxu1 %v2443_v45  ;;  %v2480_v43 = vld [vmem:[#allocation8 + $0x7a8] sm:$0xff]  ;;  %v2415_v44 = vld [vmem:[#allocation8 + $0x5a0] sm:$0xff] }
 0x63f   :  { %2661 = vmatprep.subr.mxu0 %v2378_v46  ;;  %2732 = vmatprep.subr.mxu1 %v2442_v47  ;;  %v2479_v45 = vld [vmem:[#allocation8 + $0x7a0] sm:$0xff]  ;;  %v2414_v46 = vld [vmem:[#allocation8 + $0x598] sm:$0xff] }
 0x640   :  { %2662 = vmatpush1.msra.mxu0 %v2377_v48  ;;  %2733 = vmatpush1.msra.mxu1 %v2441_v49  ;;  %v2478_v47 = vld [vmem:[#allocation8 + $0x798] sm:$0xff]  ;;  %v2413_v48 = vld [vmem:[#allocation8 + $0x590] sm:$0xff] }
 0x641   :  { %2663 = vmatprep.subr.mxu0 %v2376_v15  ;;  %2734 = vmatprep.subr.mxu1 %v2440_v50  ;;  %v2477_v49 = vld [vmem:[#allocation8 + $0x790] sm:$0xff]  ;;  %v2412_v15 = vld [vmem:[#allocation8 + $0x588] sm:$0xff] }
 0x642   :  { %2664 = vmatpush1.msra.mxu0 %v2375_v51  ;;  %2735 = vmatpush1.msra.mxu1 %v2439_v12  ;;  %v2476_v50 = vld [vmem:[#allocation8 + $0x788] sm:$0xff]  ;;  %v2411_v51 = vld [vmem:[#allocation8 + $0x580] sm:$0xff] }
 0x643   :  { %2665 = vmatprep.subr.mxu0 %v2374_v52  ;;  %2736 = vmatprep.subr.mxu1 %v2438_v53  ;;  %v2475_v12 = vld [vmem:[#allocation8 + $0x780] sm:$0xff]  ;;  %v2410_v52 = vld [vmem:[#allocation8 + $0x578] sm:$0xff] }
 0x644   :  { %2666 = vmatpush1.msra.mxu0 %v2373_v55  ;;  %2737 = vmatpush1.msra.mxu1 %v2437_v56  ;;  %v2474_v53 = vld [vmem:[#allocation8 + $0x778] sm:$0xff]  ;;  %v2409_v55 = vld [vmem:[#allocation8 + $0x570] sm:$0xff] }
 0x645   :  { %2667 = vmatprep.subr.mxu0 %v2372_v57  ;;  %2738 = vmatprep.subr.mxu1 %v2436_v58  ;;  %v2473_v56 = vld [vmem:[#allocation8 + $0x770] sm:$0xff]  ;;  %v2408_v57 = vld [vmem:[#allocation8 + $0x568] sm:$0xff] }
 0x646   :  { %2668 = vmatpush1.msra.mxu0 %v2371_v59  ;;  %2739 = vmatpush1.msra.mxu1 %v2435_v60  ;;  %v2472_v58 = vld [vmem:[#allocation8 + $0x768] sm:$0xff]  ;;  %v2407_v59 = vld [vmem:[#allocation8 + $0x560] sm:$0xff] }
 0x647   :  { %2669 = vmatprep.subr.mxu0 %v2370_v61  ;;  %2740 = vmatprep.subr.mxu1 %v2434_v62  ;;  %v2471_v60 = vld [vmem:[#allocation8 + $0x760] sm:$0xff]  ;;  %v2406_v61 = vld [vmem:[#allocation8 + $0x558] sm:$0xff] }
 0x648   :  { %2670 = vmatpush1.msra.mxu0 %v2369_v0  ;;  %2741 = vmatpush1.msra.mxu1 %v2433_v2  ;;  %v2470_v62 = vld [vmem:[#allocation8 + $0x758] sm:$0xff]  ;;  %v2405_v0 = vld [vmem:[#allocation8 + $0x550] sm:$0xff] }
 0x649   :  { %2671 = vmatprep.subr.mxu0 %v2368_v3  ;;  %2742 = vmatprep.subr.mxu1 %v2432_v4  ;;  %v2469_v2 = vld [vmem:[#allocation8 + $0x750] sm:$0xff]  ;;  %v2404_v3 = vld [vmem:[#allocation8 + $0x548] sm:$0xff] }
 0x64a   :  { %2672 = vmatpush1.msra.mxu0 %v2367_v5  ;;  %2743 = vmatpush1.msra.mxu1 %v2431_v6  ;;  %v2468_v4 = vld [vmem:[#allocation8 + $0x748] sm:$0xff]  ;;  %v2403_v5 = vld [vmem:[#allocation8 + $0x540] sm:$0xff] }
 0x64b   :  { %2673 = vmatprep.subr.mxu0 %v2366_v7  ;;  %2744 = vmatprep.subr.mxu1 %v2430_v8  ;;  %v2467_v6 = vld [vmem:[#allocation8 + $0x740] sm:$0xff]  ;;  %v2402_v7 = vld [vmem:[#allocation8 + $0x538] sm:$0xff] }
 0x64c   :  { %2674 = vmatpush1.msra.mxu0 %v2365_v10  ;;  %2745 = vmatpush1.msra.mxu1 %v2429_v16  ;;  %v2466_v8 = vld [vmem:[#allocation8 + $0x738] sm:$0xff]  ;;  %v2401_v10 = vld [vmem:[#allocation8 + $0x530] sm:$0xff] }
 0x64d   :  { %2675 = vmatprep.subr.mxu0 %v2364_v63  ;;  %2746 = vmatprep.subr.mxu1 %v2428_v17  ;;  %v2465_v16 = vld [vmem:[#allocation8 + $0x730] sm:$0xff]  ;;  %v1922_v63 = vrot.slane %v3421_v54, %v390_v24  ;;  %v1930_v17 = vrot.slane %v3421_v54, %v398_v21  ;;  %v2462_v21 = vld [vmem:[#allocation8 + $0x718] sm:$0xff] }
 0x64e   :  { %2676 = vmatpush1.msra.mxu0 %v2363_v14  ;;  %2747 = vmatpush1.msra.mxu1 %v2427_v18  ;;  %v2400_v14 = vld [vmem:[#allocation8 + $0x528] sm:$0xff] }
 0x64f   :  { %2677 = vmatprep.subr.mxu0 %v2426_v1  ;;  %2748 = vmatprep.subr.mxu1 %v2490_v19  ;;  %v2464_v18 = vld [vmem:[#allocation8 + $0x728] sm:$0xff]  ;;  %v1926_v1 = vrot.slane %v3421_v54, %v394_v27  ;;  %v1934_v19 = vrot.slane %v3421_v54, %v402_v28 }
 0x650   :  { %2678 = vmatpush2.msra.mxu0 %v2425_v20  ;;  %2749 = vmatpush2.msra.mxu1 %v2489_v22  ;;  %v2399_v20 = vld [vmem:[#allocation8 + $0x520] sm:$0xff]  ;;  %v2460_v28 = vld [vmem:[#allocation8 + $0x708] sm:$0xff] }
 0x651   :  { %2679 = vmatprep.subr.mxu0 %v2424_v23  ;;  %2750 = vmatprep.subr.mxu1 %v2488_v25  ;;  %v2463_v22 = vld [vmem:[#allocation8 + $0x720] sm:$0xff]  ;;  %v2398_v25 = vld [vmem:[#allocation8 + $0x518] sm:$0xff] }
 0x652   :  { %2680 = vmatpush2.msra.mxu0 %v2423_v26  ;;  %2751 = vmatpush2.msra.mxu1 %v2487_v29  ;;  %v2397_v26 = vld [vmem:[#allocation8 + $0x510] sm:$0xff] }
 0x653   :  { %2681 = vmatprep.subr.mxu0 %v2422_v30  ;;  %2752 = vmatprep.subr.mxu1 %v2486_v31  ;;  %v2461_v29 = vld [vmem:[#allocation8 + $0x710] sm:$0xff] }
 0x654   :  { %2682 = vmatpush2.msra.mxu0 %v2421_v32  ;;  %2753 = vmatpush2.msra.mxu1 %v2485_v33 }
 0x655   :  { %2683 = vmatprep.subr.mxu0 %v2420_v34  ;;  %2754 = vmatprep.subr.mxu1 %v2484_v35  ;;  %v2395_v34 = vld [vmem:[#allocation8 + $0x500] sm:$0xff] }
 0x656   :  { %2684 = vmatpush2.msra.mxu0 %v2419_v36  ;;  %2755 = vmatpush2.msra.mxu1 %v2483_v37  ;;  %v2459_v35 = vld [vmem:[#allocation8 + $0x700] sm:$0xff] }
 0x657   :  { %2685 = vmatprep.subr.mxu0 %v2418_v38  ;;  %2756 = vmatprep.subr.mxu1 %v2482_v39 }
 0x658   :  { %2686 = vmatpush2.msra.mxu0 %v2417_v40  ;;  %2757 = vmatpush2.msra.mxu1 %v2481_v41  ;;  %v2491_v40 = vld [vmem:[%s3469_s16] sm:$0x3]  ;;  %s3036_s16 = smov [#allocation10]  }
 0x659   :  { %2687 = vmatprep.subr.mxu0 %v2416_v42  ;;  %2758 = vmatprep.subr.mxu1 %v2480_v43  ;;  %v2496_v42 = vrot.slane %v2491_v40, %v3167_v11  ;;  %v2500_v43 = vrot.slane %v2491_v40, %v3175_v13  ;;  %s2807_s20 = sshll.u32 %s3036_s16, 4  ;;  %s2808_s20 = int_to_ptr.vmem [resolvable:$true] %s2807_s20 }
 0x65a   :  { %2688 = vmatpush2.msra.mxu0 %v2415_v44  ;;  %2759 = vmatpush2.msra.mxu1 %v2479_v45  ;;  %s2998_s22 = scalar_lea.vmem %s2808_s20, 256  ;;  %p3003_p7 = scmp.lt.s32.totalorder %s2808_s20, %s2808_s20 }
 0x65b   :  { %2689 = vmatprep.subr.mxu0 %v2414_v46  ;;  %2760 = vmatprep.subr.mxu1 %v2478_v47  ;;  %p2999_p6 = scmp.ne.s32.totalorder %s2808_s20, %s2998_s22  ;;  %p3004_p8 = scmp.lt.s32.totalorder %s2998_s22, %s2998_s22 }
 0x65c   :  { %2690 = vmatpush2.msra.mxu0 %v2413_v48  ;;  %2761 = vmatpush2.msra.mxu1 %v2477_v49 }
 0x65d   :  { %2691 = vmatprep.subr.mxu0 %v2412_v15  ;;  %2762 = vmatprep.subr.mxu1 %v2476_v50  ;;  %p3005_p9 = por %p3004_p8, %p3003_p7 }
 0x65e   :  { %2692 = vmatpush2.msra.mxu0 %v2411_v51  ;;  %2763 = vmatpush2.msra.mxu1 %v2475_v12 }
 0x65f   :  { %2693 = vmatprep.subr.mxu0 %v2410_v52  ;;  %2764 = vmatprep.subr.mxu1 %v2474_v53  ;;  %p3006_p10 = pnand %p3005_p9, %p2999_p6 }
 0x660   :  { %2694 = vmatpush2.msra.mxu0 %v2409_v55  ;;  %2765 = vmatpush2.msra.mxu1 %v2473_v56 }
 0x661   :  { %2695 = vmatprep.subr.mxu0 %v2408_v57  ;;  %2766 = vmatprep.subr.mxu1 %v2472_v58 }
 0x662   :  { %2696 = vmatpush2.msra.mxu0 %v2407_v59  ;;  %2767 = vmatpush2.msra.mxu1 %v2471_v60 }
 0x663   :  { %2697 = vmatprep.subr.mxu0 %v2406_v61  ;;  %2768 = vmatprep.subr.mxu1 %v2470_v62 }
 0x664   :  { %2698 = vmatpush2.msra.mxu0 %v2405_v0  ;;  %2769 = vmatpush2.msra.mxu1 %v2469_v2 }
 0x665   :  { %2699 = vmatprep.subr.mxu0 %v2404_v3  ;;  %2770 = vmatprep.subr.mxu1 %v2468_v4 }
 0x666   :  { %2700 = vmatpush2.msra.mxu0 %v2403_v5  ;;  %2771 = vmatpush2.msra.mxu1 %v2467_v6 }
 0x667   :  { %2701 = vmatprep.subr.mxu0 %v2402_v7  ;;  %2772 = vmatprep.subr.mxu1 %v2466_v8 }
 0x668   :  { %v2151_v23 = vpop.f32.mrf.mxu0  ;;  %v2222_v24 = vpop.f32.mrf.mxu1  ;;  %2702 = vmatpush2.msra.mxu0 %v2401_v10  ;;  %2773 = vmatpush2.msra.mxu1 %v2465_v16 }
 0x669   :  { %2703 = vmatprep.subr.mxu0 %v2400_v14  ;;  %2774 = vmatprep.subr.mxu1 %v2464_v18  ;;  %v2152_v30 = vadd.f32 %v2151_v23, %v1922_v63  ;;  %v2223_v31 = vadd.f32 %v2222_v24, %v1930_v17 }
 0x66a   :  { %v2153_v32 = vpop.f32.mrf.mxu0  ;;  %v2224_v27 = vpop.f32.mrf.mxu1  ;;  %2704 = vmatpush2.msra.mxu0 %v2399_v20  ;;  %2775 = vmatpush2.msra.mxu1 %v2463_v22 }
 0x66b   :  { %v2154_v54 = vadd.f32 %v2153_v32, %v1926_v1  ;;  %v2225_v33 = vadd.f32 %v2224_v27, %v1934_v19  ;;  %2705 = vmatprep.subr.mxu0 %v2398_v25  ;;  %2776 = vmatprep.subr.mxu1 %v2462_v21  ;;  %v2231_v38 = vmax.f32 %v2152_v30, 0.0  ;;  %v2233_v39 = vmax.f32 %v2223_v31, 0.0 }
 0x66c   :  { %2706 = vmatpush2.msra.mxu0 %v2397_v26  ;;  %2777 = vmatpush2.msra.mxu1 %v2461_v29 }
 0x66d   :  { %v2232_v36 = vmax.f32 %v2154_v54, 0.0  ;;  %v2234_v37 = vmax.f32 %v2225_v33, 0.0  ;;  %2707 = vmatprep.subr.mxu0 %v2396_v9  ;;  %2778 = vmatprep.subr.mxu1 %v2460_v28 }
 0x66e   :  { %2708 = vmatpush2.msra.mxu0 %v2395_v34  ;;  %2779 = vmatpush2.msra.mxu1 %v2459_v35 }
 0x66f   :  { %2709 = vmatprep.mubr.f32.mxu0 %v2232_v36  ;;  %2780 = vmatprep.mubr.f32.mxu1 %v2234_v37 }
 0x670   :  { %2710 = vmatmul.mubr.f32.vlgmr.msra.gmra.mxu0 %v2231_v38  ;;  %2781 = vmatmul.mubr.f32.vlgmr.msra.gmra.mxu1 %v2233_v39 }
 0x6ef   :  { %v2569_v41 = vpop.f32.mrf.mxu0  ;;  %v2640_v44 = vpop.f32.mrf.mxu1 }
 0x6f0   :  { %v2570_v46 = vadd.f32 %v2569_v41, %v2496_v42 }
 0x6f1   :  { %v2571_v45 = vpop.f32.mrf.mxu0  ;;  %v2642_v48 = vpop.f32.mrf.mxu1 }
 0x6f2   :  { %v2572_v47 = vadd.f32 %v2571_v45, %v2500_v43  ;;  %v2641_v49 = vadd.f32 %v2640_v44, %v2570_v46 }
 0x6f4   :  { %v2643_v51 = vadd.f32 %v2642_v48, %v2572_v47 }
 0x730   :  { %v2711_v15 = vpop.f32.mrf.mxu0  ;;  %v2782_v50 = vpop.f32.mrf.mxu1 }
 0x731   :  { %v2712_v12 = vadd.f32 %v2711_v15, %v2641_v49 }
 0x732   :  { %v2713_v52 = vpop.f32.mrf.mxu0  ;;  %v2784_v56 = vpop.f32.mrf.mxu1 }
 0x733   :  { %v2783_v53 = vadd.f32 %v2782_v50, %v2712_v12  ;;  %v2714_v55 = vadd.f32 %v2713_v52, %v2643_v51 }
 0x735   :  { %v2824_v57 = vmul.f32 -1.442695, %v2783_v53  ;;  %v2785_v58 = vadd.f32 %v2784_v56, %v2714_v55 }
 0x737   :  { %2910 = vpow2.f32 %v2824_v57  ;;  %v2825_v11 = vmul.f32 -1.442695, %v2785_v58 }
 0x739   :  { %2912 = vpow2.f32 %v2825_v11 }
 0x744   :  { %v2911_v13 = vpop.eup %2910 }
 0x745   :  { %v2793_v59 = vadd.f32 1.0, %v2911_v13 }
 0x746   :  { %v2913_v60 = vpop.eup %2912 }
 0x747   :  { %2914 = vrcp.f32 %v2793_v59  ;;  %v2794_v61 = vadd.f32 1.0, %v2913_v60 }
 0x749   :  { %2916 = vrcp.f32 %v2794_v61 }
 0x754   :  { %v2915_v62 = vpop.eup %2914 }
 0x755   :  { %2799 = vst [vmem:[#allocation10] sm:$0xff] %v2915_v62 }
 0x756   :  { %v2917_v0 = vpop.eup %2916 }
 0x757   :  { %2800 = vst [vmem:[#allocation10 + $0x8] sm:$0xff] %v2917_v0 }
 0x758   :  { %3009 = shalt.err (!%p3006_p10)
}
 0x759   :  { %2810 = dma.vmem_to_hbm [thread:$0]  %s2808_s20, 256, %s3470_s17, [#allocation4]  }
 0x75a   :  { %3024 = dma.done.wait [#allocation4], 256  }
 0x75b   :  { %3025 = vsyncadd [#allocation4], 4294967040 }
 0x75c   :  { %2814 = vsyncpa [#allocation3], 1 }
 0x75d   :  { %2815 = vsyncpa [#allocation6], 1 }
 0x75e   :  { %2816 = vsyncpa [#allocation9], 1 }
 0x75f   :  { %2817 = vsyncpa [#allocation4], 1 }

</bundles_post_ra>
